<compile_context>
chip_gen: v7x
topology: tpu7x:2x2x1
jax: 0.10.0
libtpu: 0.0.40
codegen_flags: <defaults>
</compile_context>

<pallas_src>
import jax
import jax.numpy as jnp
from jax.experimental import pallas as pl
from jax.experimental.pallas import tpu as pltpu

F_NUM = 11
SIZE = 6
C = F_NUM * SIZE          # 66 attention channels (Conv1d out_channels)
TB = 8                    # batch rows processed per grid step


def self_atten_kernel(s_ref, xr_ref, xc_ref, out_ref):
    # s_ref (SMEM, (8,) f32): [wq.wk, wq.bk, bq.wk, bq.bk, wo.wv, wo.bv, bo, 0]
    s_ww = s_ref[0]
    s_wb = s_ref[1]
    s_bw = s_ref[2]
    s_bb = s_ref[3]
    s_ow = s_ref[4]
    s_ob = s_ref[5]
    bo = s_ref[6]

    xr = xr_ref[...]                  # (TB, 1, L)  x along lanes    (query index i)
    xc = xc_ref[...]                  # (TB, L, 1)  x along sublanes (key index j)

    # Transposed energy built as a rank-1 broadcast (pure VPU, no MXU / transposes):
    #   zT[b, j, i] = energy[b, i, j] = x_i*(s_ww*x_j + s_wb) + (s_bw*x_j + s_bb)
    g = s_ww * xc + s_wb              # (TB, L, 1)
    h = s_bw * xc + s_bb              # (TB, L, 1)
    zT = g * xr + h                   # (TB, L, L)

    # softmax over j == sublane axis; normalization deferred to the (TB,1,L) result.
    m = jnp.max(zT, axis=1, keepdims=True)            # (TB, 1, L) row max of energy
    pT = jnp.exp(zT - m)                              # (TB, L, L) unnormalized attn^T

    # Output conv folded into the value path: vo[j] = (wo.wv)*x_j + (wo.bv).
    vo = s_ow * xc + s_ob                             # (TB, L, 1)
    num = jnp.sum(pT * vo, axis=1, keepdims=True)     # (TB, 1, L)
    den = jnp.sum(pT, axis=1, keepdims=True)          # (TB, 1, L)

    # Only the (TB,1,L) result gets normalized; lane-dense store.
    out_ref[...] = jnp.abs(num / den + bo)


def self_atten(x, params, *, tb=TB):
    """x: (B, L) float32 -> (B, L) float32."""
    B, L = x.shape
    wq, bq, wk, bk, wv, bv, wo, bo = params
    wq = wq.reshape(C).astype(jnp.float32)
    bq = bq.reshape(C).astype(jnp.float32)
    wk = wk.reshape(C).astype(jnp.float32)
    bk = bk.reshape(C).astype(jnp.float32)
    wv = wv.reshape(C).astype(jnp.float32)
    bv = bv.reshape(C).astype(jnp.float32)
    wo = wo.reshape(C).astype(jnp.float32)

    # The 6 weight contractions + output bias, packed into one tiny SMEM array.
    scal = jnp.stack([
        jnp.dot(wq, wk), jnp.dot(wq, bk), jnp.dot(bq, wk), jnp.dot(bq, bk),
        jnp.dot(wo, wv), jnp.dot(wo, bv),
        bo.reshape(()).astype(jnp.float32), jnp.zeros((), jnp.float32),
    ]).astype(jnp.float32)                            # (8,)

    x = x.astype(jnp.float32)
    nb = pl.cdiv(B, tb)
    Bp = nb * tb
    if Bp != B:                                       # pad batch to a TB multiple
        x = jnp.pad(x, ((0, Bp - B), (0, 0)))
    xr = x.reshape(Bp, 1, L)                          # lane-oriented copy of x
    xc = x.reshape(Bp, L, 1)                          # sublane-oriented copy of x

    out = pl.pallas_call(
        self_atten_kernel,
        out_shape=jax.ShapeDtypeStruct((Bp, 1, L), jnp.float32),
        grid=(nb,),
        in_specs=[
            pl.BlockSpec(memory_space=pltpu.MemorySpace.SMEM),     # packed scalars
            pl.BlockSpec((tb, 1, L), lambda i: (i, 0, 0)),         # x rows (lanes)
            pl.BlockSpec((tb, L, 1), lambda i: (i, 0, 0)),         # x cols (sublanes)
        ],
        out_specs=pl.BlockSpec((tb, 1, L), lambda i: (i, 0, 0)),
        compiler_params=pltpu.CompilerParams(dimension_semantics=("parallel",)),
    )(scal, xr, xc)
    return out.reshape(Bp, L)[:B]


def ref_forward(x, params):
    """Pure-JAX reference mirroring the PyTorch forward exactly."""
    wq, bq, wk, bk, wv, bv, wo, bo = params
    t = x[:, None, :]                                                         # (B, 1, L)
    proj_q = jnp.transpose(wq.reshape(1, C, 1) * t + bq.reshape(1, C, 1), (0, 2, 1))
    proj_k = wk.reshape(1, C, 1) * t + bk.reshape(1, C, 1)                    # (B, C, L)
    proj_v = wv.reshape(1, C, 1) * t + bv.reshape(1, C, 1)                    # (B, C, L)
    energy = jnp.einsum('blc,bcm->blm', proj_q, proj_k)                       # (B, L, L)
    attn_t = jnp.transpose(jax.nn.softmax(energy, axis=-1), (0, 2, 1))
    out = jnp.einsum('bcj,bjl->bcl', proj_v, attn_t)                          # (B, C, L)
    y = jnp.einsum('oc,bcl->bol', wo.reshape(1, C), out) + bo.reshape(1, 1, 1)
    return jnp.abs(y)[:, 0, :]


if __name__ == "__main__":
    key = jax.random.PRNGKey(0)
    ks = jax.random.split(key, 9)
    B, L = 16, 128                      # 2 grid steps of TB=8 -> both v7x TCs get work
    x = jax.random.normal(ks[0], (B, L), dtype=jnp.float32)

    # Deterministic synthetic params with the PyTorch __init__ shapes:
    #   q/k/v_conv.weight (66,1,1), .bias (66,); o_conv.weight (1,66,1), .bias (1,)
    wq = 0.1 * jax.random.normal(ks[1], (C, 1, 1), dtype=jnp.float32)
    bq = 0.1 * jax.random.normal(ks[2], (C,), dtype=jnp.float32)
    wk = 0.1 * jax.random.normal(ks[3], (C, 1, 1), dtype=jnp.float32)
    bk = 0.1 * jax.random.normal(ks[4], (C,), dtype=jnp.float32)
    wv = 0.1 * jax.random.normal(ks[5], (C, 1, 1), dtype=jnp.float32)
    bv = 0.1 * jax.random.normal(ks[6], (C,), dtype=jnp.float32)
    wo = 0.1 * jax.random.normal(ks[7], (1, C, 1), dtype=jnp.float32)
    bo = 0.1 * jax.random.normal(ks[8], (1,), dtype=jnp.float32)
    params = (wq, bq, wk, bk, wv, bv, wo, bo)

    y = jax.block_until_ready(self_atten(x, params))
    y_ref = ref_forward(x, params)
    assert y.shape == (B, L), y.shape
    assert jnp.allclose(y, y_ref, atol=1e-4, rtol=1e-4), float(jnp.max(jnp.abs(y - y_ref)))
    print("KERNEL_OK")
</pallas_src>

<mosaic_0001>
module attributes {stable_mosaic.version = 11 : i64} {
  func.func @self_atten_kernel(%arg0: i32, %arg1: memref<8xf32, #tpu.memory_space<smem>>, %arg2: memref<8x1x128xf32, #tpu.memory_space<vmem>>, %arg3: memref<8x128x1xf32, #tpu.memory_space<vmem>>, %arg4: memref<8x1x128xf32, #tpu.memory_space<vmem>>) attributes {dimension_semantics = [#tpu.dimension_semantics<parallel>], iteration_bounds = array<i64: 2>, scalar_prefetch = 0 : i64, scratch_operands = 0 : i64, tpu.core_type = #tpu.core_type<tc>, window_params = [{transform_indices = @transform_0, window_bounds = array<i64: 8>}, {transform_indices = @transform_1, window_bounds = array<i64: 8, 1, 128>}, {transform_indices = @transform_2, window_bounds = array<i64: 8, 128, 1>}, {transform_indices = @transform_3, window_bounds = array<i64: 8, 1, 128>}]} {
    %c0 = arith.constant 0 : index
    %0 = memref.load %arg1[%c0] : memref<8xf32, #tpu.memory_space<smem>>
    %c1 = arith.constant 1 : index
    %1 = memref.load %arg1[%c1] : memref<8xf32, #tpu.memory_space<smem>>
    %c2 = arith.constant 2 : index
    %2 = memref.load %arg1[%c2] : memref<8xf32, #tpu.memory_space<smem>>
    %c3 = arith.constant 3 : index
    %3 = memref.load %arg1[%c3] : memref<8xf32, #tpu.memory_space<smem>>
    %c4 = arith.constant 4 : index
    %4 = memref.load %arg1[%c4] : memref<8xf32, #tpu.memory_space<smem>>
    %c5 = arith.constant 5 : index
    %5 = memref.load %arg1[%c5] : memref<8xf32, #tpu.memory_space<smem>>
    %c6 = arith.constant 6 : index
    %6 = memref.load %arg1[%c6] : memref<8xf32, #tpu.memory_space<smem>>
    %c0_0 = arith.constant 0 : index
    %c0_1 = arith.constant 0 : index
    %c0_2 = arith.constant 0 : index
    %7 = vector.load %arg2[%c0_0, %c0_1, %c0_2] : memref<8x1x128xf32, #tpu.memory_space<vmem>>, vector<8x1x128xf32>
    %c0_3 = arith.constant 0 : index
    %c0_4 = arith.constant 0 : index
    %c0_5 = arith.constant 0 : index
    %8 = vector.load %arg3[%c0_3, %c0_4, %c0_5] : memref<8x128x1xf32, #tpu.memory_space<vmem>>, vector<8x128x1xf32>
    %9 = vector.broadcast %0 : f32 to vector<8x128x1xf32>
    %10 = arith.mulf %9, %8 : vector<8x128x1xf32>
    %11 = vector.broadcast %1 : f32 to vector<8x128x1xf32>
    %12 = arith.addf %10, %11 : vector<8x128x1xf32>
    %13 = vector.broadcast %2 : f32 to vector<8x128x1xf32>
    %14 = arith.mulf %13, %8 : vector<8x128x1xf32>
    %15 = vector.broadcast %3 : f32 to vector<8x128x1xf32>
    %16 = arith.addf %14, %15 : vector<8x128x1xf32>
    %17 = vector.broadcast %12 : vector<8x128x1xf32> to vector<8x128x128xf32>
    %18 = vector.broadcast %7 : vector<8x1x128xf32> to vector<8x128x128xf32>
    %19 = arith.mulf %17, %18 : vector<8x128x128xf32>
    %20 = vector.broadcast %16 : vector<8x128x1xf32> to vector<8x128x128xf32>
    %21 = arith.addf %19, %20 : vector<8x128x128xf32>
    %cst = arith.constant dense<0xFF800000> : vector<8x128xf32>
    %22 = vector.multi_reduction <maximumf>, %21, %cst [1] : vector<8x128x128xf32> to vector<8x128xf32>
    %23 = vector.shape_cast %22 : vector<8x128xf32> to vector<8x1x128xf32>
    %24 = vector.broadcast %23 : vector<8x1x128xf32> to vector<8x128x128xf32>
    %25 = arith.subf %21, %24 : vector<8x128x128xf32>
    %26 = math.exp %25 : vector<8x128x128xf32>
    %27 = vector.broadcast %4 : f32 to vector<8x128x1xf32>
    %28 = arith.mulf %27, %8 : vector<8x128x1xf32>
    %29 = vector.broadcast %5 : f32 to vector<8x128x1xf32>
    %30 = arith.addf %28, %29 : vector<8x128x1xf32>
    %31 = vector.broadcast %30 : vector<8x128x1xf32> to vector<8x128x128xf32>
    %32 = arith.mulf %26, %31 : vector<8x128x128xf32>
    %cst_6 = arith.constant dense<0.000000e+00> : vector<8x128xf32>
    %33 = vector.multi_reduction <add>, %32, %cst_6 [1] : vector<8x128x128xf32> to vector<8x128xf32>
    %34 = vector.shape_cast %33 : vector<8x128xf32> to vector<8x1x128xf32>
    %cst_7 = arith.constant dense<0.000000e+00> : vector<8x128xf32>
    %35 = vector.multi_reduction <add>, %26, %cst_7 [1] : vector<8x128x128xf32> to vector<8x128xf32>
    %36 = vector.shape_cast %35 : vector<8x128xf32> to vector<8x1x128xf32>
    %37 = arith.divf %34, %36 : vector<8x1x128xf32>
    %38 = vector.broadcast %6 : f32 to vector<8x1x128xf32>
    %39 = arith.addf %37, %38 : vector<8x1x128xf32>
    %40 = math.absf %39 : vector<8x1x128xf32>
    %c0_8 = arith.constant 0 : index
    %c0_9 = arith.constant 0 : index
    %c0_10 = arith.constant 0 : index
    %41 = vector.load %arg4[%c0_8, %c0_9, %c0_10] : memref<8x1x128xf32, #tpu.memory_space<vmem>>, vector<8x1x128xf32>
    tpu.vector_store %arg4[%c0_8, %c0_9, %c0_10], %40 {strides = array<i32>} : memref<8x1x128xf32, #tpu.memory_space<vmem>>, vector<8x1x128xf32>,
    return
  }
  func.func @transform_0(%arg0: i32) -> i32 {
    %c0_i32 = arith.constant 0 : i32
    %c0_i32_0 = arith.constant 0 : i32
    return %c0_i32 : i32
  }
  func.func @transform_1(%arg0: i32) -> (i32, i32, i32) {
    %c0_i32 = arith.constant 0 : i32
    %c0_i32_0 = arith.constant 0 : i32
    %c0_i32_1 = arith.constant 0 : i32
    return %arg0, %c0_i32, %c0_i32_0 : i32, i32, i32
  }
  func.func @transform_2(%arg0: i32) -> (i32, i32, i32) {
    %c0_i32 = arith.constant 0 : i32
    %c0_i32_0 = arith.constant 0 : i32
    %c0_i32_1 = arith.constant 0 : i32
    return %arg0, %c0_i32, %c0_i32_0 : i32, i32, i32
  }
  func.func @transform_3(%arg0: i32) -> (i32, i32, i32) {
    %c0_i32 = arith.constant 0 : i32
    %c0_i32_0 = arith.constant 0 : i32
    %c0_i32_1 = arith.constant 0 : i32
    return %arg0, %c0_i32, %c0_i32_0 : i32, i32, i32
  }
}

</mosaic_0001>

<bundles_post_ra>
// kernel: tpu_custom_call.1
= control target key start
LH: loop header
LB: loop body
LE: loop exit
PB: predicated region body
PF: predicated region fallthrough
CT: control target
= control target key end

     0   :  { %8 = vsyncpa [#allocation4], 0  ;;  %s9014_s0 = inlined_call_operand.vmem [shape: f32[8], index: 0, kind: input, shape index: {}]   ;;  %s9015_s1 = inlined_call_operand.vmem [shape: f32[16,1,128], index: 1, kind: input, shape index: {}]   ;;  %s9016_s2 = inlined_call_operand.vmem [shape: f32[16,128,1], index: 2, kind: input, shape index: {}]   ;;  %s9017_s3 = inlined_call_operand.hbm [shape: f32[16,1,128], index: 3, kind: output, shape index: {}]  }
   0x1   :  { %9 = vsyncpa [#allocation3], 0 }
   0x2   :  { %11 = vsyncpa [#allocation3 + $0x1], 0  ;;  %s5226_s12 = smov 0   ;;  %s5228_s13 = smov 0  }
   0x3   :  { %s5230_s14 = smov 0   ;;  %s5232_s15 = smov 0  }
   0x4 LB: > { %s5247_s16 = sadd.s32 4294967295, %s5199_s15   ;;  %s4503_s17 = sadd.s32 4294967294, %s5199_s15   ;;  %s5199_s15 = sphi %s5232_s15, %s9892_s15   ;;  %s5195_s14 = sphi %s5230_s14, %s9891_s14   ;;  %s5191_s13 = sphi %s5228_s13, %s9890_s13   ;;  %s5187_s12 = sphi %s5226_s12, %s9889_s12  }
   0x5   : > { %s5251_s18 = sadd.s32 1, %s5199_s15   ;;  %s97_s19 = sadd.s32 1, %s5195_s14 }
   0x6   : > { %s94_s20 = ssub.s32 %s5199_s15, %s5251_s18  ;;  %p107_p0 = scmp.ne.s32.totalorder %s5195_s14, %s5191_s13 }
   0x7   : > { %p95_p1 = scmp.eq.s32.totalorder %s94_s20, 0  ;;  %p108_p2 = scmp.eq.s32.totalorder %s5247_s16, 1 }
   0x8   : > { %p113_p3 = scmp.ne.s32.totalorder %s5191_s13, %s5187_s12  ;;  %p114_p4 = scmp.eq.s32.totalorder %s4503_s17, 1 }
   0x9   : > { %s5262_s21 = scalar_select %p95_p1, %s5195_s14, %s97_s19  }
   0xa   : > { %p5264_p5 = por %p108_p2, %p107_p0  ;;  %p5268_p6 = por %p114_p4, %p113_p3 }
   0xb   : > { %p4504_p7 = scmp.ge.s32.totalorder %s5199_s15, 1  ;;  %p121_p8 = scmp.lt.s32.totalorder %s5199_s15, 3 }
   0xc   : > { %p4549_p9 = scmp.eq.s32.totalorder %s5247_s16, 0  ;;  %s134_s27 = sshll.u32 %s9014_s0, 4  ;;  %s135_s27 = int_to_ptr.vmem [resolvable:$true] %s134_s27 }
   0xd   : > { %p5275_p10 = pnand %p4504_p7, %p121_p8  ;;  %s5118_s28 = scalar_lea.vmem %s135_s27, 16 }
   0xe   : > { %p5119_p13 = scmp.ne.s32.totalorder %s135_s27, %s5118_s28  ;;  %p5126_p3 = scmp.lt.s32.totalorder %s135_s27, %s135_s27 }
   0xf   : > { %p4541_p11 = pneg %p5275_p10  ;;  %p5127_p4 = scmp.lt.s32.totalorder %s5118_s28, %s5118_s28 }
  0x11   : > { %p4542_p12 = pnand %p4549_p9, %p4541_p11  ;;  %p5128_p7 = por %p5127_p4, %p5126_p3 }
  0x13   : > { %p5120_p0 = pneg %p4542_p12 }
  0x15   : > { %p5121_p1 = pnand %p5120_p0, %p5119_p13 }
  0x17   : > { %p5122_p2 = pneg %p5121_p1 }
  0x19   : > { %p5129_p8 = pnand %p5128_p7, %p5122_p2 }
  0x1b   : > { %5132 = shalt.err (!%p5129_p8)
}
  0x1c   : > { %s5201_s29 = smov [#allocation2]   ;;  %165 = sbr.rel (%p5275_p10) target bundleno = 987 (0x3db), region = 32 }
  0x1d   : > { %4544 = dma.vmem_to_smem (!%p4542_p12), %s135_s27, 16, %s5201_s29, [#allocation4]  }
  0x23   : > { %5178 = dma.done.wait (%p4549_p9), [#allocation4], 16  }
  0x24   : > { %5180 = vsyncadd (%p4549_p9), [#allocation4], 4294967280 }
  0x25   : > { %171 = sfence }
  0x26   : > { %s4510_s30 = sshll.u32 %s5247_s16, 3  ;;  %s208_s4 = sld [smem:[#allocation2]]  ;;  %v5202_v0 = vmov 0  }
  0x27   : > { %4589 = vset.pattern.permute.xlu1 %v5202_v0  ;;  %4588 = vset.pattern.permute.xlu0 %v5202_v0  ;;  %p196_p11 = scmp.lt.s32.totalorder %s4510_s30, 15  ;;  %s4514_s5 = sld [smem:[#allocation2 + $0x1]] }
  0x28   : > { %s4515_s10 = sld [smem:[#allocation2 + $0x2]]  ;;  %s4516_s11 = sld [smem:[#allocation2 + $0x3]] }
  0x29   : > { %s9894_s30 = smov (!%p196_p11, %s4510_s30), 15  ;;  %s6563_s24 = sld [smem:[#allocation2 + $0x4]] }
  0x2a   : > { %s4533_s6 = sshll.u32 %s9894_s30, 7  ;;  %s6235_s20 = scalar_lea.vmem %s9015_s1, %s9894_s30 }
  0x2b   : > { %s5299_s9 = scalar_lea.vmem %s9016_s2, %s4533_s6  ;;  %s6731_s25 = sld [smem:[#allocation2 + $0x5]] }
  0x2c   : > { %v5301_v1 = vstv %s208_s4  ;;  %v225_v2 = vld [vmem:[%s5299_s9 + $0x10] sm:$0xff]  ;;  %v223_v4 = vld [vmem:[%s5299_s9] sm:$0xff]  ;;  %v226_v5 = vld [vmem:[%s5299_s9 + $0x18] sm:$0xff]  ;;  %s7998_s26 = sld [smem:[#allocation2 + $0x6]]  ;;  %s192_s27 = sand.u32 1, %s5191_s13  }
  0x2d   : > { %v5304_v3 = vstv %s4514_s5  ;;  %v354_v6 = vmul.f32 %v5301_v1, %v225_v2  ;;  %v352_v7 = vmul.f32 %v5301_v1, %v223_v4  ;;  %v224_v8 = vld [vmem:[%s5299_s9 + $0x8] sm:$0xff]  ;;  %v227_v10 = vld [vmem:[%s5299_s9 + $0x20] sm:$0xff]  ;;  %v355_v13 = vmul.f32 %v5301_v1, %v226_v5  ;;  %v230_v19 = vld [vmem:[%s5299_s9 + $0x38] sm:$0xff]  ;;  %s8213_s28 = sshll.u32 %s192_s27, 3  ;;  %s4534_s30 = sshll.u32 %s5247_s16, 7 }
  0x2e   : > { %v228_v9 = vld [vmem:[%s5299_s9 + $0x28] sm:$0xff]  ;;  %v353_v14 = vmul.f32 %v5301_v1, %v224_v8  ;;  %v356_v18 = vmul.f32 %v5301_v1, %v227_v10  ;;  %v229_v20 = vld [vmem:[%s5299_s9 + $0x30] sm:$0xff]  ;;  %v359_v21 = vmul.f32 %v5301_v1, %v230_v19  ;;  %v231_v26 = vld [vmem:[%s5299_s9 + $0x40] sm:$0xff]  ;;  %s8246_s29 = scalar_lea.vmem [#allocation5], %s8213_s28  ;;  %s8965_s7 = scalar_lea.hbm %s9017_s3, %s4534_s30 }
  0x2f   : > { %v483_v11 = vadd.f32 %v5304_v3, %v354_v6  ;;  %v481_v12 = vadd.f32 %v5304_v3, %v352_v7  ;;  %v357_v15 = vmul.f32 %v5301_v1, %v228_v9  ;;  %v484_v16 = vadd.f32 %v5304_v3, %v355_v13  ;;  %v232_v25 = vld [vmem:[%s5299_s9 + $0x48] sm:$0xff]  ;;  %v234_v31 = vld [vmem:[%s5299_s9 + $0x58] sm:$0xff]  ;;  %v233_v32 = vld [vmem:[%s5299_s9 + $0x50] sm:$0xff]  ;;  %s4420_s4 = sshll.u32 %s8246_s29, 4  ;;  %s8973_s16 = scalar_lea.sflag [#allocation3], %s192_s27  ;;  %s8967_s4 = int_to_ptr.vmem [resolvable:$true] %s4420_s4 }
  0x30   : > { %v482_v17 = vadd.f32 %v5304_v3, %v353_v14  ;;  %v485_v23 = vadd.f32 %v5304_v3, %v356_v18  ;;  %v358_v24 = vmul.f32 %v5301_v1, %v229_v20  ;;  %v361_v27 = vmul.f32 %v5301_v1, %v232_v25  ;;  %v236_v37 = vld [vmem:[%s5299_s9 + $0x68] sm:$0xff]  ;;  %v235_v38 = vld [vmem:[%s5299_s9 + $0x60] sm:$0xff]  ;;  %v238_v43 = vld [vmem:[%s5299_s9 + $0x78] sm:$0xff]  ;;  %s5133_s8 = scalar_lea.vmem %s8967_s4, 128 }
  0x31   : > { %879 = vperm.xlu1 %4589, %v483_v11   ;;  %869 = vperm.xlu0 %4588, %v481_v12   ;;  %v486_v22 = vadd.f32 %v5304_v3, %v357_v15  ;;  %v488_v28 = vadd.f32 %v5304_v3, %v359_v21  ;;  %v360_v30 = vmul.f32 %v5301_v1, %v231_v26  ;;  %v237_v44 = vld [vmem:[%s5299_s9 + $0x70] sm:$0xff]  ;;  %v240_v49 = vld [vmem:[%s5299_s9 + $0x88] sm:$0xff]  ;;  %v239_v50 = vld [vmem:[%s5299_s9 + $0x80] sm:$0xff]  ;;  %p5134_p9 = scmp.ne.s32.totalorder %s8967_s4, %s5133_s8 }
  0x32   : > { %v487_v29 = vadd.f32 %v5304_v3, %v358_v24  ;;  %v490_v33 = vadd.f32 %v5304_v3, %v361_v27  ;;  %v363_v35 = vmul.f32 %v5301_v1, %v234_v31  ;;  %v362_v36 = vmul.f32 %v5301_v1, %v233_v32  ;;  %v242_v55 = vld [vmem:[%s5299_s9 + $0x98] sm:$0xff]  ;;  %v241_v56 = vld [vmem:[%s5299_s9 + $0x90] sm:$0xff]  ;;  %v244_v61 = vld [vmem:[%s5299_s9 + $0xa8] sm:$0xff] }
  0x33   : > { %v489_v34 = vadd.f32 %v5304_v3, %v360_v30  ;;  %v365_v39 = vmul.f32 %v5301_v1, %v236_v37  ;;  %v364_v42 = vmul.f32 %v5301_v1, %v235_v38  ;;  %v367_v45 = vmul.f32 %v5301_v1, %v238_v43  ;;  %v243_v62 = vld [vmem:[%s5299_s9 + $0xa0] sm:$0xff]  ;;  %v246_v5 = vld [vmem:[%s5299_s9 + $0xb8] sm:$0xff]  ;;  %v245_v6 = vld [vmem:[%s5299_s9 + $0xb0] sm:$0xff]  ;;  %p5135_p10 = pnand %p5134_p9, %p5264_p5 }
  0x34   : > { %v492_v40 = vadd.f32 %v5304_v3, %v363_v35  ;;  %v491_v41 = vadd.f32 %v5304_v3, %v362_v36  ;;  %v366_v48 = vmul.f32 %v5301_v1, %v237_v44  ;;  %v369_v53 = vmul.f32 %v5301_v1, %v240_v49  ;;  %v248_v11 = vld [vmem:[%s5299_s9 + $0xc8] sm:$0xff]  ;;  %v247_v12 = vld [vmem:[%s5299_s9 + $0xc0] sm:$0xff]  ;;  %v249_v18 = vld [vmem:[%s5299_s9 + $0xd0] sm:$0xff] }
  0x35   : > { %884 = vperm.xlu1 %4589, %v484_v16   ;;  %874 = vperm.xlu0 %4588, %v482_v17   ;;  %v494_v46 = vadd.f32 %v5304_v3, %v365_v39  ;;  %v493_v47 = vadd.f32 %v5304_v3, %v364_v42  ;;  %v496_v51 = vadd.f32 %v5304_v3, %v367_v45  ;;  %v250_v17 = vld [vmem:[%s5299_s9 + $0xd8] sm:$0xff]  ;;  %v251_v24 = vld [vmem:[%s5299_s9 + $0xe0] sm:$0xff]  ;;  %v253_v30 = vld [vmem:[%s5299_s9 + $0xf0] sm:$0xff]  ;;  %p5136_p12 = pneg %p5135_p10 }
  0x36   : > { %v495_v52 = vadd.f32 %v5304_v3, %v366_v48  ;;  %v368_v54 = vmul.f32 %v5301_v1, %v239_v50  ;;  %v371_v57 = vmul.f32 %v5301_v1, %v242_v55  ;;  %v498_v58 = vadd.f32 %v5304_v3, %v369_v53  ;;  %v256_v35 = vld [vmem:[%s5299_s9 + $0x108] sm:$0xff]  ;;  %v255_v36 = vld [vmem:[%s5299_s9 + $0x100] sm:$0xff]  ;;  %v257_v42 = vld [vmem:[%s5299_s9 + $0x110] sm:$0xff] }
  0x37   : > { %v370_v60 = vmul.f32 %v5301_v1, %v241_v56  ;;  %v373_v63 = vmul.f32 %v5301_v1, %v244_v61  ;;  %v372_v4 = vmul.f32 %v5301_v1, %v243_v62  ;;  %v375_v7 = vmul.f32 %v5301_v1, %v246_v5  ;;  %v259_v48 = vld [vmem:[%s5299_s9 + $0x120] sm:$0xff]  ;;  %v262_v53 = vld [vmem:[%s5299_s9 + $0x138] sm:$0xff] }
  0x38   : > { %v497_v59 = vadd.f32 %v5304_v3, %v368_v54  ;;  %v500_v0 = vadd.f32 %v5304_v3, %v371_v57  ;;  %v374_v10 = vmul.f32 %v5301_v1, %v245_v6  ;;  %v377_v15 = vmul.f32 %v5301_v1, %v248_v11  ;;  %v261_v54 = vld [vmem:[%s5299_s9 + $0x130] sm:$0xff] }
  0x39   : > { %894 = vperm.xlu1 %4589, %v486_v22   ;;  %889 = vperm.xlu0 %4588, %v485_v23   ;;  %v499_v2 = vadd.f32 %v5304_v3, %v370_v60  ;;  %v502_v8 = vadd.f32 %v5304_v3, %v373_v63  ;;  %v501_v9 = vadd.f32 %v5304_v3, %v372_v4  ;;  %v252_v23 = vld [vmem:[%s5299_s9 + $0xe8] sm:$0xff]  ;;  %v263_v60 = vld [vmem:[%s5299_s9 + $0x140] sm:$0xff]  ;;  %v265_v4 = vld [vmem:[%s5299_s9 + $0x150] sm:$0xff] }
  0x3a   : > { %v504_v13 = vadd.f32 %v5304_v3, %v375_v7  ;;  %v503_v14 = vadd.f32 %v5304_v3, %v374_v10  ;;  %v376_v16 = vmul.f32 %v5301_v1, %v247_v12  ;;  %v379_v19 = vmul.f32 %v5301_v1, %v250_v17  ;;  %v267_v10 = vld [vmem:[%s5299_s9 + $0x160] sm:$0xff] }
  0x3b   : > { %v506_v20 = vadd.f32 %v5304_v3, %v377_v15  ;;  %v378_v22 = vmul.f32 %v5301_v1, %v249_v18  ;;  %v381_v25 = vmul.f32 %v5301_v1, %v252_v23  ;;  %v385_v39 = vmul.f32 %v5301_v1, %v256_v35  ;;  %v270_v15 = vld [vmem:[%s5299_s9 + $0x178] sm:$0xff] }
  0x3c   : > { %v505_v21 = vadd.f32 %v5304_v3, %v376_v16  ;;  %v508_v26 = vadd.f32 %v5304_v3, %v379_v19  ;;  %v391_v55 = vmul.f32 %v5301_v1, %v262_v53  ;;  %v269_v16 = vld [vmem:[%s5299_s9 + $0x170] sm:$0xff]  ;;  %v399_v19 = vmul.f32 %v5301_v1, %v270_v15 }
  0x3d   : > { %904 = vperm.xlu1 %4589, %v488_v28   ;;  %899 = vperm.xlu0 %4588, %v487_v29   ;;  %v507_v27 = vadd.f32 %v5304_v3, %v378_v22  ;;  %v380_v28 = vmul.f32 %v5301_v1, %v251_v24  ;;  %v254_v29 = vld [vmem:[%s5299_s9 + $0xf8] sm:$0xff]  ;;  %v510_v32 = vadd.f32 %v5304_v3, %v381_v25  ;;  %v271_v22 = vld [vmem:[%s5299_s9 + $0x180] sm:$0xff] }
  0x3e   : > { %v383_v31 = vmul.f32 %v5301_v1, %v254_v29  ;;  %v514_v44 = vadd.f32 %v5304_v3, %v385_v39  ;;  %v520_v61 = vadd.f32 %v5304_v3, %v391_v55  ;;  %v528_v24 = vadd.f32 %v5304_v3, %v399_v19  ;;  %v278_v39 = vld [vmem:[%s5299_s9 + $0x1b8] sm:$0xff]  ;;  %v292_v19 = vld [vmem:[%s5299_s9 + $0x228] sm:$0xff] }
  0x40   : > { %v512_v37 = vadd.f32 %v5304_v3, %v383_v31 }
  0x41   : > { %914 = vperm.xlu1 %4589, %v490_v33   ;;  %909 = vperm.xlu0 %4588, %v489_v34   ;;  %v509_v33 = vadd.f32 %v5304_v3, %v380_v28  ;;  %v382_v34 = vmul.f32 %v5301_v1, %v253_v30  ;;  %v273_v28 = vld [vmem:[%s5299_s9 + $0x190] sm:$0xff] }
  0x43   : > { %v511_v38 = vadd.f32 %v5304_v3, %v382_v34  ;;  %v275_v34 = vld [vmem:[%s5299_s9 + $0x1a0] sm:$0xff] }
  0x45   : > { %924 = vperm.xlu1 %4589, %v492_v40   ;;  %919 = vperm.xlu0 %4588, %v491_v41   ;;  %v384_v40 = vmul.f32 %v5301_v1, %v255_v36  ;;  %v258_v41 = vld [vmem:[%s5299_s9 + $0x118] sm:$0xff] }
  0x46   : > { %v387_v43 = vmul.f32 %v5301_v1, %v258_v41 }
  0x47   : > { %v513_v45 = vadd.f32 %v5304_v3, %v384_v40  ;;  %v277_v40 = vld [vmem:[%s5299_s9 + $0x1b0] sm:$0xff] }
  0x48   : > { %v516_v50 = vadd.f32 %v5304_v3, %v387_v43  ;;  %v407_v43 = vmul.f32 %v5301_v1, %v278_v39 }
  0x49   : > { %934 = vperm.xlu1 %4589, %v494_v46   ;;  %929 = vperm.xlu0 %4588, %v493_v47   ;;  %v386_v46 = vmul.f32 %v5301_v1, %v257_v42  ;;  %v260_v47 = vld [vmem:[%s5299_s9 + $0x128] sm:$0xff] }
  0x4a   : > { %v389_v49 = vmul.f32 %v5301_v1, %v260_v47 }
  0x4c   : > { %v518_v56 = vadd.f32 %v5304_v3, %v389_v49 }
  0x4d   : > { %944 = vperm.xlu1 %4589, %v496_v51   ;;  %939 = vperm.xlu0 %4588, %v495_v52   ;;  %v515_v51 = vadd.f32 %v5304_v3, %v386_v46  ;;  %v388_v52 = vmul.f32 %v5301_v1, %v259_v48  ;;  %v279_v46 = vld [vmem:[%s5299_s9 + $0x1c0] sm:$0xff]  ;;  %v536_v48 = vadd.f32 %v5304_v3, %v407_v43  ;;  %v298_v43 = vld [vmem:[%s5299_s9 + $0x258] sm:$0xff] }
  0x4f   : > { %v517_v57 = vadd.f32 %v5304_v3, %v388_v52  ;;  %v281_v52 = vld [vmem:[%s5299_s9 + $0x1d0] sm:$0xff] }
  0x51   : > { %954 = vperm.xlu1 %4589, %v498_v58   ;;  %949 = vperm.xlu0 %4588, %v497_v59   ;;  %v390_v58 = vmul.f32 %v5301_v1, %v261_v54  ;;  %v264_v59 = vld [vmem:[%s5299_s9 + $0x148] sm:$0xff] }
  0x52   : > { %v393_v63 = vmul.f32 %v5301_v1, %v264_v59 }
  0x53   : > { %v519_v62 = vadd.f32 %v5304_v3, %v390_v58  ;;  %v283_v58 = vld [vmem:[%s5299_s9 + $0x1e0] sm:$0xff] }
  0x54   : > { %v522_v6 = vadd.f32 %v5304_v3, %v393_v63  ;;  %v286_v63 = vld [vmem:[%s5299_s9 + $0x1f8] sm:$0xff] }
  0x55   : > { %964 = vperm.xlu1 %4589, %v500_v0   ;;  %959 = vperm.xlu0 %4588, %v499_v2   ;;  %v392_v0 = vmul.f32 %v5301_v1, %v263_v60  ;;  %v266_v2 = vld [vmem:[%s5299_s9 + $0x158] sm:$0xff] }
  0x56   : > { %v395_v5 = vmul.f32 %v5301_v1, %v266_v2 }
  0x57   : > { %v521_v7 = vadd.f32 %v5304_v3, %v392_v0  ;;  %v285_v0 = vld [vmem:[%s5299_s9 + $0x1f0] sm:$0xff] }
  0x58   : > { %v524_v12 = vadd.f32 %v5304_v3, %v395_v5  ;;  %v415_v5 = vmul.f32 %v5301_v1, %v286_v63 }
  0x59   : > { %974 = vperm.xlu1 %4589, %v502_v8   ;;  %969 = vperm.xlu0 %4588, %v501_v9   ;;  %v394_v8 = vmul.f32 %v5301_v1, %v265_v4  ;;  %v268_v9 = vld [vmem:[%s5299_s9 + $0x168] sm:$0xff] }
  0x5a   : > { %v397_v11 = vmul.f32 %v5301_v1, %v268_v9 }
  0x5c   : > { %v526_v17 = vadd.f32 %v5304_v3, %v397_v11 }
  0x5d   : > { %984 = vperm.xlu1 %4589, %v504_v13   ;;  %979 = vperm.xlu0 %4588, %v503_v14   ;;  %v523_v13 = vadd.f32 %v5304_v3, %v394_v8  ;;  %v396_v14 = vmul.f32 %v5301_v1, %v267_v10  ;;  %v287_v8 = vld [vmem:[%s5299_s9 + $0x200] sm:$0xff]  ;;  %v544_v10 = vadd.f32 %v5304_v3, %v415_v5  ;;  %v304_v5 = vld [vmem:[%s5299_s9 + $0x288] sm:$0xff] }
  0x5f   : > { %v525_v18 = vadd.f32 %v5304_v3, %v396_v14  ;;  %v289_v14 = vld [vmem:[%s5299_s9 + $0x210] sm:$0xff] }
  0x61   : > { %994 = vperm.xlu1 %4589, %v506_v20   ;;  %989 = vperm.xlu0 %4588, %v505_v21   ;;  %v398_v20 = vmul.f32 %v5301_v1, %v269_v16  ;;  %v272_v21 = vld [vmem:[%s5299_s9 + $0x188] sm:$0xff] }
  0x62   : > { %v401_v23 = vmul.f32 %v5301_v1, %v272_v21 }
  0x63   : > { %v527_v25 = vadd.f32 %v5304_v3, %v398_v20  ;;  %v291_v20 = vld [vmem:[%s5299_s9 + $0x220] sm:$0xff] }
  0x64   : > { %v530_v30 = vadd.f32 %v5304_v3, %v401_v23  ;;  %v421_v23 = vmul.f32 %v5301_v1, %v292_v19 }
  0x65   : > { %1004 = vperm.xlu1 %4589, %v508_v26   ;;  %999 = vperm.xlu0 %4588, %v507_v27   ;;  %v400_v26 = vmul.f32 %v5301_v1, %v271_v22  ;;  %v274_v27 = vld [vmem:[%s5299_s9 + $0x198] sm:$0xff] }
  0x66   : > { %v403_v29 = vmul.f32 %v5301_v1, %v274_v27  ;;  %v294_v27 = vld [vmem:[%s5299_s9 + $0x238] sm:$0xff] }
  0x67   : > { %v529_v31 = vadd.f32 %v5304_v3, %v400_v26  ;;  %v420_v26 = vmul.f32 %v5301_v1, %v291_v20 }
  0x68   : > { %v532_v36 = vadd.f32 %v5304_v3, %v403_v29 }
  0x69   : > { %1014 = vperm.xlu1 %4589, %v510_v32   ;;  %1009 = vperm.xlu0 %4588, %v509_v33   ;;  %v402_v32 = vmul.f32 %v5301_v1, %v273_v28  ;;  %v276_v33 = vld [vmem:[%s5299_s9 + $0x1a8] sm:$0xff]  ;;  %v293_v28 = vld [vmem:[%s5299_s9 + $0x230] sm:$0xff] }
  0x6a   : > { %v405_v35 = vmul.f32 %v5301_v1, %v276_v33  ;;  %v423_v33 = vmul.f32 %v5301_v1, %v294_v27 }
  0x6c   : > { %v534_v41 = vadd.f32 %v5304_v3, %v405_v35  ;;  %v296_v35 = vld [vmem:[%s5299_s9 + $0x248] sm:$0xff] }
  0x6d   : > { %1024 = vperm.xlu1 %4589, %v512_v37   ;;  %1019 = vperm.xlu0 %4588, %v511_v38   ;;  %v531_v37 = vadd.f32 %v5304_v3, %v402_v32  ;;  %v404_v38 = vmul.f32 %v5301_v1, %v275_v34  ;;  %v549_v32 = vadd.f32 %v5304_v3, %v420_v26 }
  0x6e   : > { %v422_v34 = vmul.f32 %v5301_v1, %v293_v28  ;;  %v425_v39 = vmul.f32 %v5301_v1, %v296_v35 }
  0x6f   : > { %v533_v42 = vadd.f32 %v5304_v3, %v404_v38 }
  0x71   : > { %1034 = vperm.xlu1 %4589, %v514_v44   ;;  %1029 = vperm.xlu0 %4588, %v513_v45   ;;  %v406_v44 = vmul.f32 %v5301_v1, %v277_v40  ;;  %v280_v45 = vld [vmem:[%s5299_s9 + $0x1c8] sm:$0xff]  ;;  %v552_v40 = vadd.f32 %v5304_v3, %v423_v33  ;;  %v310_v33 = vld [vmem:[%s5299_s9 + $0x2b8] sm:$0xff] }
  0x72   : > { %v409_v47 = vmul.f32 %v5301_v1, %v280_v45 }
  0x73   : > { %v535_v49 = vadd.f32 %v5304_v3, %v406_v44  ;;  %v297_v44 = vld [vmem:[%s5299_s9 + $0x250] sm:$0xff] }
  0x74   : > { %v538_v54 = vadd.f32 %v5304_v3, %v409_v47  ;;  %v427_v47 = vmul.f32 %v5301_v1, %v298_v43  ;;  %v312_v43 = vld [vmem:[%s5299_s9 + $0x2c8] sm:$0xff] }
  0x75   : > { %1044 = vperm.xlu1 %4589, %v516_v50   ;;  %1039 = vperm.xlu0 %4588, %v515_v51   ;;  %v408_v50 = vmul.f32 %v5301_v1, %v279_v46  ;;  %v282_v51 = vld [vmem:[%s5299_s9 + $0x1d8] sm:$0xff] }
  0x76   : > { %v411_v53 = vmul.f32 %v5301_v1, %v282_v51  ;;  %v300_v51 = vld [vmem:[%s5299_s9 + $0x268] sm:$0xff] }
  0x77   : > { %v537_v55 = vadd.f32 %v5304_v3, %v408_v50  ;;  %v426_v50 = vmul.f32 %v5301_v1, %v297_v44  ;;  %v311_v44 = vld [vmem:[%s5299_s9 + $0x2c0] sm:$0xff] }
  0x78   : > { %v540_v60 = vadd.f32 %v5304_v3, %v411_v53 }
  0x79   : > { %1054 = vperm.xlu1 %4589, %v518_v56   ;;  %1049 = vperm.xlu0 %4588, %v517_v57   ;;  %v410_v56 = vmul.f32 %v5301_v1, %v281_v52  ;;  %v284_v57 = vld [vmem:[%s5299_s9 + $0x1e8] sm:$0xff]  ;;  %v299_v52 = vld [vmem:[%s5299_s9 + $0x260] sm:$0xff] }
  0x7a   : > { %v413_v59 = vmul.f32 %v5301_v1, %v284_v57  ;;  %v429_v57 = vmul.f32 %v5301_v1, %v300_v51 }
  0x7c   : > { %v542_v2 = vadd.f32 %v5304_v3, %v413_v59  ;;  %v302_v59 = vld [vmem:[%s5299_s9 + $0x278] sm:$0xff] }
  0x7d   : > { %1064 = vperm.xlu1 %4589, %v520_v61   ;;  %1059 = vperm.xlu0 %4588, %v519_v62   ;;  %v539_v61 = vadd.f32 %v5304_v3, %v410_v56  ;;  %v412_v62 = vmul.f32 %v5301_v1, %v283_v58  ;;  %v555_v56 = vadd.f32 %v5304_v3, %v426_v50 }
  0x7e   : > { %v428_v58 = vmul.f32 %v5301_v1, %v299_v52  ;;  %v431_v63 = vmul.f32 %v5301_v1, %v302_v59  ;;  %v440_v52 = vmul.f32 %v5301_v1, %v311_v44 }
  0x7f   : > { %v541_v4 = vadd.f32 %v5304_v3, %v412_v62 }
  0x81   : > { %1074 = vperm.xlu1 %4589, %v522_v6   ;;  %1069 = vperm.xlu0 %4588, %v521_v7   ;;  %v414_v6 = vmul.f32 %v5301_v1, %v285_v0  ;;  %v288_v7 = vld [vmem:[%s5299_s9 + $0x208] sm:$0xff]  ;;  %v558_v0 = vadd.f32 %v5304_v3, %v429_v57 }
  0x82   : > { %v417_v9 = vmul.f32 %v5301_v1, %v288_v7 }
  0x83   : > { %v543_v11 = vadd.f32 %v5304_v3, %v414_v6  ;;  %v303_v6 = vld [vmem:[%s5299_s9 + $0x280] sm:$0xff] }
  0x84   : > { %v546_v16 = vadd.f32 %v5304_v3, %v417_v9  ;;  %v433_v9 = vmul.f32 %v5301_v1, %v304_v5 }
  0x85   : > { %1084 = vperm.xlu1 %4589, %v524_v12   ;;  %1079 = vperm.xlu0 %4588, %v523_v13   ;;  %v416_v12 = vmul.f32 %v5301_v1, %v287_v8  ;;  %v290_v13 = vld [vmem:[%s5299_s9 + $0x218] sm:$0xff] }
  0x86   : > { %v419_v15 = vmul.f32 %v5301_v1, %v290_v13  ;;  %v306_v13 = vld [vmem:[%s5299_s9 + $0x298] sm:$0xff] }
  0x89   : > { %1094 = vperm.xlu1 %4589, %v526_v17   ;;  %1089 = vperm.xlu0 %4588, %v525_v18   ;;  %v545_v17 = vadd.f32 %v5304_v3, %v416_v12  ;;  %v418_v18 = vmul.f32 %v5301_v1, %v289_v14  ;;  %v432_v12 = vmul.f32 %v5301_v1, %v303_v6  ;;  %v305_v14 = vld [vmem:[%s5299_s9 + $0x290] sm:$0xff] }
  0x8a   : > { %v434_v20 = vmul.f32 %v5301_v1, %v305_v14  ;;  %v317_v14 = vld [vmem:[%s5299_s9 + $0x2f0] sm:$0xff] }
  0x8b   : > { %v561_v19 = vadd.f32 %v5304_v3, %v432_v12 }
  0x8c   : > { %v563_v28 = vadd.f32 %v5304_v3, %v434_v20 }
  0x8d   : > { %1104 = vperm.xlu1 %4589, %v528_v24   ;;  %1099 = vperm.xlu0 %4588, %v527_v25   ;;  %v548_v24 = vadd.f32 %v5304_v3, %v419_v15  ;;  %v547_v25 = vadd.f32 %v5304_v3, %v418_v18  ;;  %v562_v18 = vadd.f32 %v5304_v3, %v433_v9 }
  0x91   : > { %1114 = vperm.xlu1 %4589, %v530_v30   ;;  %1109 = vperm.xlu0 %4588, %v529_v31   ;;  %v550_v31 = vadd.f32 %v5304_v3, %v421_v23  ;;  %v308_v23 = vld [vmem:[%s5299_s9 + $0x2a8] sm:$0xff] }
  0x95   : > { %1124 = vperm.xlu1 %4589, %v532_v36   ;;  %1119 = vperm.xlu0 %4588, %v531_v37   ;;  %v295_v36 = vld [vmem:[%s5299_s9 + $0x240] sm:$0xff] }
  0x99   : > { %1134 = vperm.xlu1 %4589, %v534_v41   ;;  %1129 = vperm.xlu0 %4588, %v533_v42   ;;  %v551_v41 = vadd.f32 %v5304_v3, %v422_v34  ;;  %v424_v42 = vmul.f32 %v5301_v1, %v295_v36  ;;  %v309_v34 = vld [vmem:[%s5299_s9 + $0x2b0] sm:$0xff] }
  0x9d   : > { %1144 = vperm.xlu1 %4589, %v536_v48   ;;  %1139 = vperm.xlu0 %4588, %v535_v49   ;;  %v554_v48 = vadd.f32 %v5304_v3, %v425_v39  ;;  %v553_v49 = vadd.f32 %v5304_v3, %v424_v42  ;;  %v439_v39 = vmul.f32 %v5301_v1, %v310_v33 }
  0x9e   : > { %v438_v42 = vmul.f32 %v5301_v1, %v309_v34 }
  0x9f   : > { %v568_v50 = vadd.f32 %v5304_v3, %v439_v39 }
  0xa0   : > { %v567_v51 = vadd.f32 %v5304_v3, %v438_v42  ;;  %v321_v42 = vld [vmem:[%s5299_s9 + $0x310] sm:$0xff] }
  0xa1   : > { %1154 = vperm.xlu1 %4589, %v538_v54   ;;  %1149 = vperm.xlu0 %4588, %v537_v55   ;;  %v556_v55 = vadd.f32 %v5304_v3, %v427_v47 }
  0xa5   : > { %1164 = vperm.xlu1 %4589, %v540_v60   ;;  %1159 = vperm.xlu0 %4588, %v539_v61   ;;  %v301_v60 = vld [vmem:[%s5299_s9 + $0x270] sm:$0xff] }
  0xa9   : > { %1174 = vperm.xlu1 %4589, %v542_v2   ;;  %1169 = vperm.xlu0 %4588, %v541_v4   ;;  %v557_v2 = vadd.f32 %v5304_v3, %v428_v58  ;;  %v430_v4 = vmul.f32 %v5301_v1, %v301_v60  ;;  %v569_v60 = vadd.f32 %v5304_v3, %v440_v52 }
  0xaa   : > { %v450_v52 = vmul.f32 %v5301_v1, %v321_v42  ;;  %v329_v42 = vld [vmem:[%s5299_s9 + $0x350] sm:$0xff] }
  0xad   : > { %1184 = vperm.xlu1 %4589, %v544_v10   ;;  %1179 = vperm.xlu0 %4588, %v543_v11   ;;  %v560_v10 = vadd.f32 %v5304_v3, %v431_v63  ;;  %v559_v11 = vadd.f32 %v5304_v3, %v430_v4  ;;  %v315_v4 = vld [vmem:[%s5299_s9 + $0x2e0] sm:$0xff] }
  0xae   : > { %v444_v12 = vmul.f32 %v5301_v1, %v315_v4 }
  0xb0   : > { %v5509_v21 = vpop.permute.xlu1 %879  ;;  %v5511_v22 = vpop.permute.xlu0 %869  ;;  %v573_v20 = vadd.f32 %v5304_v3, %v444_v12 }
  0xb1   : > { %1194 = vperm.xlu1 %4589, %v546_v16   ;;  %1189 = vperm.xlu0 %4588, %v545_v17   ;;  %v435_v17 = vmul.f32 %v5301_v1, %v306_v13  ;;  %v318_v13 = vld [vmem:[%s5299_s9 + $0x2f8] sm:$0xff] }
  0xb3   : > { %v564_v27 = vadd.f32 %v5304_v3, %v435_v17 }
  0xb4   : > { %v5519_v29 = vpop.permute.xlu1 %884  ;;  %v5521_v30 = vpop.permute.xlu0 %874 }
  0xb5   : > { %1204 = vperm.xlu1 %4589, %v548_v24   ;;  %1199 = vperm.xlu0 %4588, %v547_v25   ;;  %v307_v24 = vld [vmem:[%s5299_s9 + $0x2a0] sm:$0xff] }
  0xb8   : > { %v5529_v37 = vpop.permute.xlu1 %894  ;;  %v5531_v38 = vpop.permute.xlu0 %889 }
  0xb9   : > { %1214 = vperm.xlu1 %4589, %v550_v31   ;;  %1209 = vperm.xlu0 %4588, %v549_v32   ;;  %v437_v31 = vmul.f32 %v5301_v1, %v308_v23  ;;  %v436_v32 = vmul.f32 %v5301_v1, %v307_v24  ;;  %v447_v23 = vmul.f32 %v5301_v1, %v318_v13 }
  0xba   : > { %v446_v24 = vmul.f32 %v5301_v1, %v317_v14 }
  0xbb   : > { %v576_v34 = vadd.f32 %v5304_v3, %v447_v23  ;;  %v328_v23 = vld [vmem:[%s5299_s9 + $0x348] sm:$0xff] }
  0xbc   : > { %v5539_v45 = vpop.permute.xlu1 %904  ;;  %v5541_v46 = vpop.permute.xlu0 %899  ;;  %v575_v39 = vadd.f32 %v5304_v3, %v446_v24  ;;  %v327_v24 = vld [vmem:[%s5299_s9 + $0x340] sm:$0xff] }
  0xbd   : > { %1224 = vperm.xlu1 %4589, %v552_v40   ;;  %1219 = vperm.xlu0 %4588, %v551_v41   ;;  %v566_v40 = vadd.f32 %v5304_v3, %v437_v31  ;;  %v565_v41 = vadd.f32 %v5304_v3, %v436_v32 }
  0xc0   : > { %v5549_v53 = vpop.permute.xlu1 %914  ;;  %v5551_v54 = vpop.permute.xlu0 %909 }
  0xc1   : > { %1234 = vperm.xlu1 %4589, %v554_v48   ;;  %1229 = vperm.xlu0 %4588, %v553_v49   ;;  %v441_v49 = vmul.f32 %v5301_v1, %v312_v43 }
  0xc3   : > { %v570_v59 = vadd.f32 %v5304_v3, %v441_v49 }
  0xc4   : > { %v5559_v61 = vpop.permute.xlu1 %924  ;;  %v5561_v62 = vpop.permute.xlu0 %919 }
  0xc5   : > { %1244 = vperm.xlu1 %4589, %v556_v55   ;;  %1239 = vperm.xlu0 %4588, %v555_v56   ;;  %v314_v55 = vld [vmem:[%s5299_s9 + $0x2d8] sm:$0xff]  ;;  %v313_v56 = vld [vmem:[%s5299_s9 + $0x2d0] sm:$0xff] }
  0xc6   : > { %v443_v63 = vmul.f32 %v5301_v1, %v314_v55  ;;  %v324_v55 = vld [vmem:[%s5299_s9 + $0x328] sm:$0xff] }
  0xc8   : > { %v5569_v7 = vpop.permute.xlu1 %934  ;;  %v5571_v8 = vpop.permute.xlu0 %929 }
  0xc9   : > { %1254 = vperm.xlu1 %4589, %v558_v0   ;;  %1249 = vperm.xlu0 %4588, %v557_v2   ;;  %v442_v0 = vmul.f32 %v5301_v1, %v313_v56  ;;  %v316_v2 = vld [vmem:[%s5299_s9 + $0x2e8] sm:$0xff]  ;;  %v323_v56 = vld [vmem:[%s5299_s9 + $0x320] sm:$0xff] }
  0xca   : > { %v445_v9 = vmul.f32 %v5301_v1, %v316_v2  ;;  %v579_v2 = vadd.f32 %v5304_v3, %v450_v52  ;;  %v452_v4 = vmul.f32 %v5301_v1, %v323_v56  ;;  %v458_v56 = vmul.f32 %v5301_v1, %v329_v42  ;;  %v335_v42 = vld [vmem:[%s5299_s9 + $0x380] sm:$0xff] }
  0xcc   : > { %v5579_v15 = vpop.permute.xlu1 %944  ;;  %v5581_v16 = vpop.permute.xlu0 %939  ;;  %v581_v14 = vadd.f32 %v5304_v3, %v452_v4 }
  0xcd   : > { %1264 = vperm.xlu1 %4589, %v560_v10   ;;  %1259 = vperm.xlu0 %4588, %v559_v11   ;;  %v572_v10 = vadd.f32 %v5304_v3, %v443_v63  ;;  %v571_v11 = vadd.f32 %v5304_v3, %v442_v0  ;;  %v453_v63 = vmul.f32 %v5301_v1, %v324_v55 }
  0xcf   : > { %v582_v13 = vadd.f32 %v5304_v3, %v453_v63  ;;  %v332_v63 = vld [vmem:[%s5299_s9 + $0x368] sm:$0xff] }
  0xd0   : > { %v5589_v25 = vpop.permute.xlu1 %954  ;;  %v5591_v26 = vpop.permute.xlu0 %949 }
  0xd1   : > { %1274 = vperm.xlu1 %4589, %v562_v18   ;;  %1269 = vperm.xlu0 %4588, %v561_v19   ;;  %v574_v19 = vadd.f32 %v5304_v3, %v445_v9  ;;  %v326_v9 = vld [vmem:[%s5299_s9 + $0x338] sm:$0xff] }
  0xd4   : > { %v5599_v35 = vpop.permute.xlu1 %964  ;;  %v5601_v36 = vpop.permute.xlu0 %959 }
  0xd5   : > { %1284 = vperm.xlu1 %4589, %v564_v27   ;;  %1279 = vperm.xlu0 %4588, %v563_v28   ;;  %v320_v27 = vld [vmem:[%s5299_s9 + $0x308] sm:$0xff]  ;;  %v319_v28 = vld [vmem:[%s5299_s9 + $0x300] sm:$0xff] }
  0xd6   : > { %v449_v33 = vmul.f32 %v5301_v1, %v320_v27 }
  0xd8   : > { %v5609_v47 = vpop.permute.xlu1 %974  ;;  %v5611_v48 = vpop.permute.xlu0 %969  ;;  %v578_v49 = vadd.f32 %v5304_v3, %v449_v33  ;;  %v457_v33 = vmul.f32 %v5301_v1, %v328_v23 }
  0xd9   : > { %1294 = vperm.xlu1 %4589, %v566_v40   ;;  %1289 = vperm.xlu0 %4588, %v565_v41   ;;  %v448_v40 = vmul.f32 %v5301_v1, %v319_v28  ;;  %v322_v41 = vld [vmem:[%s5299_s9 + $0x318] sm:$0xff] }
  0xdc   : > { %v5619_v57 = vpop.permute.xlu1 %984  ;;  %v5621_v58 = vpop.permute.xlu0 %979 }
  0xdd   : > { %1304 = vperm.xlu1 %4589, %v568_v50   ;;  %1299 = vperm.xlu0 %4588, %v567_v51   ;;  %v577_v50 = vadd.f32 %v5304_v3, %v448_v40  ;;  %v451_v51 = vmul.f32 %v5301_v1, %v322_v41  ;;  %v456_v40 = vmul.f32 %v5301_v1, %v327_v24  ;;  %v330_v41 = vld [vmem:[%s5299_s9 + $0x358] sm:$0xff] }
  0xde   : > { %v459_v55 = vmul.f32 %v5301_v1, %v330_v41  ;;  %v336_v41 = vld [vmem:[%s5299_s9 + $0x388] sm:$0xff] }
  0xdf   : > { %v580_v0 = vadd.f32 %v5304_v3, %v451_v51  ;;  %v586_v51 = vadd.f32 %v5304_v3, %v457_v33  ;;  %v585_v52 = vadd.f32 %v5304_v3, %v456_v40 }
  0xe0   : > { %v5629_v5 = vpop.permute.xlu1 %994  ;;  %v5631_v6 = vpop.permute.xlu0 %989 }
  0xe1   : > { %1314 = vperm.xlu1 %4589, %v570_v59   ;;  %1309 = vperm.xlu0 %4588, %v569_v60  }
  0xe4   : > { %v5639_v17 = vpop.permute.xlu1 %1004  ;;  %v5641_v18 = vpop.permute.xlu0 %999 }
  0xe5   : > { %9159 = vst [vmem:[#allocation8_spill] sm:$0xff] %v5639_v17  ;;  %1324 = vperm.xlu1 %4589, %v572_v10   ;;  %1319 = vperm.xlu0 %4588, %v571_v11   ;;  %v325_v10 = vld [vmem:[%s5299_s9 + $0x330] sm:$0xff] }
  0xe8   : > { %v5649_v31 = vpop.permute.xlu1 %1014  ;;  %v5651_v32 = vpop.permute.xlu0 %1009 }
  0xe9   : > { %9160 = vst [vmem:[#allocation9_spill] sm:$0xff] %v5649_v31  ;;  %9161 = vst [vmem:[#allocation10_spill] sm:$0xff] %v5651_v32  ;;  %1334 = vperm.xlu1 %4589, %v574_v19   ;;  %1329 = vperm.xlu0 %4588, %v573_v20   ;;  %v455_v19 = vmul.f32 %v5301_v1, %v326_v9  ;;  %v454_v20 = vmul.f32 %v5301_v1, %v325_v10  ;;  %v4947_v31 = vld [vmem:[%s5299_s9 + $0x2a0] sm:$0xff] }
  0xea   : > { %v461_v9 = vmul.f32 %v5301_v1, %v332_v63  ;;  %v588_v10 = vadd.f32 %v5304_v3, %v459_v55  ;;  %v465_v55 = vmul.f32 %v5301_v1, %v336_v41 }
  0xec   : > { %v5659_v43 = vpop.permute.xlu1 %1024  ;;  %v5661_v44 = vpop.permute.xlu0 %1019  ;;  %v590_v33 = vadd.f32 %v5304_v3, %v461_v9  ;;  %v338_v9 = vld [vmem:[%s5299_s9 + $0x398] sm:$0xff] }
  0xed   : > { %9162 = vst [vmem:[#allocation11_spill] sm:$0xff] %v5659_v43  ;;  %9163 = vst [vmem:[#allocation12_spill] sm:$0xff] %v5661_v44  ;;  %1344 = vperm.xlu1 %4589, %v576_v34   ;;  %1339 = vperm.xlu0 %4588, %v575_v39   ;;  %v584_v34 = vadd.f32 %v5304_v3, %v455_v19  ;;  %v583_v39 = vadd.f32 %v5304_v3, %v454_v20  ;;  %v334_v19 = vld [vmem:[%s5299_s9 + $0x378] sm:$0xff]  ;;  %v333_v20 = vld [vmem:[%s5299_s9 + $0x370] sm:$0xff] }
  0xee   : > { %v462_v40 = vmul.f32 %v5301_v1, %v333_v20 }
  0xf0   : > { %v5669_v59 = vpop.permute.xlu1 %1034  ;;  %v5671_v60 = vpop.permute.xlu0 %1029  ;;  %v591_v63 = vadd.f32 %v5304_v3, %v462_v40  ;;  %v339_v40 = vld [vmem:[%s5299_s9 + $0x3a0] sm:$0xff] }
  0xf1   : > { %1354 = vperm.xlu1 %4589, %v578_v49   ;;  %1349 = vperm.xlu0 %4588, %v577_v50  }
  0xf4   : > { %v5679_v11 = vpop.permute.xlu1 %1044  ;;  %v5681_v12 = vpop.permute.xlu0 %1039 }
  0xf5   : > { %9164 = vst [vmem:[#allocation13_spill] sm:$0xff] %v5679_v11  ;;  %9165 = vst [vmem:[#allocation14_spill] sm:$0xff] %v5681_v12  ;;  %1364 = vperm.xlu1 %4589, %v580_v0   ;;  %1359 = vperm.xlu0 %4588, %v579_v2   ;;  %v331_v0 = vld [vmem:[%s5299_s9 + $0x360] sm:$0xff] }
  0xf8   : > { %v5689_v27 = vpop.permute.xlu1 %1054  ;;  %v5691_v28 = vpop.permute.xlu0 %1049 }
  0xf9   : > { %9166 = vst [vmem:[#allocation15_spill] sm:$0xff] %v5689_v27  ;;  %9167 = vst [vmem:[#allocation16_spill] sm:$0xff] %v5691_v28  ;;  %1374 = vperm.xlu1 %4589, %v582_v13   ;;  %1369 = vperm.xlu0 %4588, %v581_v14   ;;  %v587_v13 = vadd.f32 %v5304_v3, %v458_v56  ;;  %v460_v14 = vmul.f32 %v5301_v1, %v331_v0  ;;  %v4942_v27 = vld [vmem:[%s5299_s9 + $0x288] sm:$0xff] }
  0xfa   : > { %v464_v0 = vmul.f32 %v5301_v1, %v335_v42 }
  0xfc   : > { %v5699_v49 = vpop.permute.xlu1 %1064  ;;  %v5701_v50 = vpop.permute.xlu0 %1059  ;;  %v593_v20 = vadd.f32 %v5304_v3, %v464_v0  ;;  %v342_v0 = vld [vmem:[%s5299_s9 + $0x3b8] sm:$0xff] }
  0xfd   : > { %9168 = vst [vmem:[#allocation17_spill] sm:$0xff] %v5699_v49  ;;  %9169 = vst [vmem:[#allocation18_spill] sm:$0xff] %v5701_v50  ;;  %1384 = vperm.xlu1 %4589, %v584_v34   ;;  %1379 = vperm.xlu0 %4588, %v583_v39   ;;  %v589_v34 = vadd.f32 %v5304_v3, %v460_v14  ;;  %v463_v39 = vmul.f32 %v5301_v1, %v334_v19 }
  0xfe   : > { %v594_v19 = vadd.f32 %v5304_v3, %v465_v55 }
  0xff   : > { %v592_v56 = vadd.f32 %v5304_v3, %v463_v39  ;;  %v340_v39 = vld [vmem:[%s5299_s9 + $0x3a8] sm:$0xff] }
 0x100   : > { %v5709_v2 = vpop.permute.xlu1 %1074  ;;  %v5711_v4 = vpop.permute.xlu0 %1069 }
 0x101   : > { %9170 = vst [vmem:[#allocation19_spill] sm:$0xff] %v5709_v2  ;;  %9171 = vst [vmem:[#allocation20_spill] sm:$0xff] %v5711_v4  ;;  %1394 = vperm.xlu1 %4589, %v586_v51   ;;  %1389 = vperm.xlu0 %4588, %v585_v52   ;;  %v4938_v4 = vld [vmem:[%s5299_s9 + $0x268] sm:$0xff] }
 0x104   : > { %v5719_v23 = vpop.permute.xlu1 %1084  ;;  %v5721_v24 = vpop.permute.xlu0 %1079 }
 0x105   : > { %9172 = vst [vmem:[#allocation21_spill] sm:$0xff] %v5719_v23  ;;  %9173 = vst [vmem:[#allocation22_spill] sm:$0xff] %v5721_v24  ;;  %1404 = vperm.xlu1 %4589, %v588_v10   ;;  %1399 = vperm.xlu0 %4588, %v587_v13   ;;  %v337_v10 = vld [vmem:[%s5299_s9 + $0x390] sm:$0xff] }
 0x108   : > { %v5729_v51 = vpop.permute.xlu1 %1094  ;;  %v5731_v52 = vpop.permute.xlu0 %1089 }
 0x109   : > { %9174 = vst [vmem:[#allocation23_spill] sm:$0xff] %v5729_v51  ;;  %9175 = vst [vmem:[#allocation24_spill] sm:$0xff] %v5731_v52  ;;  %1414 = vperm.xlu1 %4589, %v590_v33   ;;  %1409 = vperm.xlu0 %4588, %v589_v34   ;;  %v467_v33 = vmul.f32 %v5301_v1, %v338_v9  ;;  %v466_v34 = vmul.f32 %v5301_v1, %v337_v10  ;;  %v341_v9 = vld [vmem:[%s5299_s9 + $0x3b0] sm:$0xff]  ;;  %v4934_v52 = vld [vmem:[%s5299_s9 + $0x248] sm:$0xff] }
 0x10b   : > { %v596_v55 = vadd.f32 %v5304_v3, %v467_v33  ;;  %v470_v33 = vmul.f32 %v5301_v1, %v341_v9 }
 0x10c   : > { %v5739_v13 = vpop.permute.xlu1 %1104  ;;  %v5741_v14 = vpop.permute.xlu0 %1099 }
 0x10d   : > { %9176 = vst [vmem:[#allocation25_spill] sm:$0xff] %v5739_v13  ;;  %9177 = vst [vmem:[#allocation26_spill] sm:$0xff] %v5741_v14  ;;  %1424 = vperm.xlu1 %4589, %v592_v56   ;;  %1419 = vperm.xlu0 %4588, %v591_v63   ;;  %v469_v14 = vmul.f32 %v5301_v1, %v340_v39  ;;  %v595_v56 = vadd.f32 %v5304_v3, %v466_v34  ;;  %v344_v34 = vld [vmem:[%s5299_s9 + $0x3c8] sm:$0xff]  ;;  %v343_v39 = vld [vmem:[%s5299_s9 + $0x3c0] sm:$0xff] }
 0x10e   : > { %v468_v63 = vmul.f32 %v5301_v1, %v339_v40 }
 0x110   : > { %v5749_v41 = vpop.permute.xlu1 %1114  ;;  %v5751_v42 = vpop.permute.xlu0 %1109 }
 0x111   : > { %9178 = vst [vmem:[#allocation27_spill] sm:$0xff] %v5749_v41  ;;  %9179 = vst [vmem:[#allocation28_spill] sm:$0xff] %v5751_v42  ;;  %1434 = vperm.xlu1 %4589, %v594_v19   ;;  %1429 = vperm.xlu0 %4588, %v593_v20   ;;  %v598_v42 = vadd.f32 %v5304_v3, %v469_v14  ;;  %v597_v19 = vadd.f32 %v5304_v3, %v468_v63  ;;  %v346_v63 = vld [vmem:[%s5299_s9 + $0x3d8] sm:$0xff] }
 0x112   : > { %v471_v20 = vmul.f32 %v5301_v1, %v342_v0  ;;  %v345_v0 = vld [vmem:[%s5299_s9 + $0x3d0] sm:$0xff] }
 0x114   : > { %v5759_v10 = vpop.permute.xlu1 %1124  ;;  %v5761_v13 = vpop.permute.xlu0 %1119  ;;  %v600_v14 = vadd.f32 %v5304_v3, %v471_v20  ;;  %v474_v20 = vmul.f32 %v5301_v1, %v345_v0 }
 0x115   : > { %9180 = vst [vmem:[#allocation29_spill] sm:$0xff] %v5759_v10  ;;  %9181 = vst [vmem:[#allocation30_spill] sm:$0xff] %v5761_v13  ;;  %1444 = vperm.xlu1 %4589, %v596_v55   ;;  %1439 = vperm.xlu0 %4588, %v595_v56   ;;  %v473_v13 = vmul.f32 %v5301_v1, %v344_v34  ;;  %v599_v55 = vadd.f32 %v5304_v3, %v470_v33  ;;  %v348_v33 = vld [vmem:[%s5299_s9 + $0x3e8] sm:$0xff]  ;;  %v347_v34 = vld [vmem:[%s5299_s9 + $0x3e0] sm:$0xff] }
 0x116   : > { %v472_v56 = vmul.f32 %v5301_v1, %v343_v39 }
 0x118   : > { %v5769_v40 = vpop.permute.xlu1 %1134  ;;  %v5771_v41 = vpop.permute.xlu0 %1129 }
 0x119   : > { %9182 = vst [vmem:[#allocation31_spill] sm:$0xff] %v5769_v40  ;;  %9183 = vst [vmem:[#allocation32_spill] sm:$0xff] %v5771_v41  ;;  %1454 = vperm.xlu1 %4589, %v598_v42   ;;  %1449 = vperm.xlu0 %4588, %v597_v19   ;;  %v602_v41 = vadd.f32 %v5304_v3, %v473_v13  ;;  %v601_v42 = vadd.f32 %v5304_v3, %v472_v56  ;;  %v350_v56 = vld [vmem:[%s5299_s9 + $0x3f8] sm:$0xff] }
 0x11a   : > { %v475_v19 = vmul.f32 %v5301_v1, %v346_v63  ;;  %v349_v63 = vld [vmem:[%s5299_s9 + $0x3f0] sm:$0xff] }
 0x11c   : > { %v5779_v9 = vpop.permute.xlu1 %1144  ;;  %v5781_v10 = vpop.permute.xlu0 %1139  ;;  %v604_v13 = vadd.f32 %v5304_v3, %v475_v19  ;;  %v478_v19 = vmul.f32 %v5301_v1, %v349_v63 }
 0x11d   : > { %9184 = vst [vmem:[#allocation33_spill] sm:$0xff] %v5779_v9  ;;  %9185 = vst [vmem:[#allocation34_spill] sm:$0xff] %v5781_v10  ;;  %1464 = vperm.xlu1 %4589, %v600_v14   ;;  %1459 = vperm.xlu0 %4588, %v599_v55   ;;  %v477_v10 = vmul.f32 %v5301_v1, %v348_v33  ;;  %v603_v14 = vadd.f32 %v5304_v3, %v474_v20  ;;  %v5804_v33 = vstv %s4515_s10  ;;  %v4862_v20 = vld [vmem:[%s5299_s9] sm:$0xff] }
 0x11e   : > { %v476_v55 = vmul.f32 %v5301_v1, %v347_v34  ;;  %v610_v34 = vmul.f32 %v4862_v20, %v5804_v33  ;;  %v694_v28 = vmul.f32 %v4947_v31, %v5804_v33 }
 0x120   : > { %v5789_v39 = vpop.permute.xlu1 %1154  ;;  %v5791_v9 = vpop.permute.xlu0 %1149 }
 0x121   : > { %9186 = vst [vmem:[#allocation35_spill] sm:$0xff] %v5789_v39  ;;  %9187 = vst [vmem:[#allocation36_spill] sm:$0xff] %v5791_v9  ;;  %1474 = vperm.xlu1 %4589, %v602_v41   ;;  %1469 = vperm.xlu0 %4588, %v601_v42   ;;  %v606_v9 = vadd.f32 %v5304_v3, %v477_v10  ;;  %v605_v41 = vadd.f32 %v5304_v3, %v476_v55 }
 0x122   : > { %v479_v42 = vmul.f32 %v5301_v1, %v350_v56  ;;  %v5819_v56 = vstv %s4516_s11  ;;  %v4864_v1 = vld [vmem:[%s5299_s9 + $0x10] sm:$0xff] }
 0x123   : > { %v612_v63 = vmul.f32 %v4864_v1, %v5804_v33  ;;  %v4866_v1 = vld [vmem:[%s5299_s9 + $0x28] sm:$0xff]  ;;  %v823_v31 = vadd.f32 %v5819_v56, %v694_v28 }
 0x124   : > { %v5799_v0 = vpop.permute.xlu1 %1164  ;;  %v5801_v40 = vpop.permute.xlu0 %1159  ;;  %v608_v10 = vadd.f32 %v5304_v3, %v479_v42 }
 0x125   : > { %9188 = vst [vmem:[#allocation37_spill] sm:$0xff] %v5799_v0  ;;  %9189 = vst [vmem:[#allocation38_spill] sm:$0xff] %v5801_v40  ;;  %1484 = vperm.xlu1 %4589, %v604_v13   ;;  %1479 = vperm.xlu0 %4588, %v603_v14   ;;  %v607_v13 = vadd.f32 %v5304_v3, %v478_v19  ;;  %v4863_v14 = vld [vmem:[%s5299_s9 + $0x8] sm:$0xff]  ;;  %v739_v3 = vadd.f32 %v5819_v56, %v610_v34  ;;  %v4867_v34 = vld [vmem:[%s5299_s9 + $0x20] sm:$0xff] }
 0x126   : > { %v611_v55 = vmul.f32 %v4863_v14, %v5804_v33 }
 0x128   : > { %v5811_v0 = vpop.permute.xlu1 %1174  ;;  %v5813_v40 = vpop.permute.xlu0 %1169 }
 0x129   : > { %9190 = vst [vmem:[#allocation39_spill] sm:$0xff] %v5811_v0  ;;  %9191 = vst [vmem:[#allocation40_spill] sm:$0xff] %v5813_v40  ;;  %1494 = vperm.xlu1 %4589, %v606_v9   ;;  %1489 = vperm.xlu0 %4588, %v605_v41   ;;  %v740_v9 = vadd.f32 %v5819_v56, %v611_v55  ;;  %v4865_v41 = vld [vmem:[%s5299_s9 + $0x18] sm:$0xff]  ;;  %v614_v55 = vmul.f32 %v4867_v34, %v5804_v33 }
 0x12a   : > { %v613_v42 = vmul.f32 %v4865_v41, %v5804_v33 }
 0x12c   : > { %v5823_v20 = vpop.permute.xlu1 %1184  ;;  %v5825_v40 = vpop.permute.xlu0 %1179 }
 0x12d   : > { %9192 = vst [vmem:[#allocation41_spill] sm:$0xff] %v5823_v20  ;;  %9193 = vst [vmem:[#allocation42_spill] sm:$0xff] %v5825_v40  ;;  %1504 = vperm.xlu1 %4589, %v608_v10   ;;  %1499 = vperm.xlu0 %4588, %v607_v13   ;;  %v615_v20 = vmul.f32 %v4866_v1, %v5804_v33  ;;  %v742_v10 = vadd.f32 %v5819_v56, %v613_v42  ;;  %v4869_v1 = vld [vmem:[%s5299_s9 + $0x30] sm:$0xff] }
 0x12e   : > { %v741_v13 = vadd.f32 %v5819_v56, %v612_v63  ;;  %v616_v63 = vmul.f32 %v4869_v1, %v5804_v33 }
 0x130   : > { %v5831_v19 = vpop.permute.xlu1 %1194  ;;  %v5833_v14 = vpop.permute.xlu0 %1189 }
 0x131   : > { %9194 = vst [vmem:[#allocation43_spill] sm:$0xff] %v5831_v19  ;;  %9195 = vst [vmem:[#allocation44_spill] sm:$0xff] %v5833_v14  ;;  %1690 = vperm.xlu1 %4589, %v740_v9   ;;  %1685 = vperm.xlu0 %4588, %v739_v3   ;;  %v744_v14 = vadd.f32 %v5819_v56, %v615_v20  ;;  %v743_v9 = vadd.f32 %v5819_v56, %v614_v55  ;;  %v4868_v3 = vld [vmem:[%s5299_s9 + $0x38] sm:$0xff]  ;;  %v4871_v55 = vld [vmem:[%s5299_s9 + $0x40] sm:$0xff] }
 0x132   : > { %v617_v42 = vmul.f32 %v4868_v3, %v5804_v33  ;;  %v618_v3 = vmul.f32 %v4871_v55, %v5804_v33 }
 0x134   : > { %v5841_v41 = vpop.permute.xlu1 %1204  ;;  %v5843_v19 = vpop.permute.xlu0 %1199 }
 0x135   : > { %9196 = vst [vmem:[#allocation45_spill] sm:$0xff] %v5841_v41  ;;  %9197 = vst [vmem:[#allocation46_spill] sm:$0xff] %v5843_v19  ;;  %1700 = vperm.xlu1 %4589, %v742_v10   ;;  %1695 = vperm.xlu0 %4588, %v741_v13   ;;  %v4870_v41 = vld [vmem:[%s5299_s9 + $0x48] sm:$0xff]  ;;  %v746_v10 = vadd.f32 %v5819_v56, %v617_v42  ;;  %v745_v13 = vadd.f32 %v5819_v56, %v616_v63  ;;  %v4873_v42 = vld [vmem:[%s5299_s9 + $0x50] sm:$0xff] }
 0x136   : > { %v619_v20 = vmul.f32 %v4870_v41, %v5804_v33  ;;  %v4872_v41 = vld [vmem:[%s5299_s9 + $0x58] sm:$0xff]  ;;  %v620_v63 = vmul.f32 %v4873_v42, %v5804_v33 }
 0x138   : > { %v5851_v40 = vpop.permute.xlu1 %1214  ;;  %v5853_v34 = vpop.permute.xlu0 %1209 }
 0x139   : > { %9198 = vst [vmem:[#allocation47_spill] sm:$0xff] %v5851_v40  ;;  %9199 = vst [vmem:[#allocation48_spill] sm:$0xff] %v5853_v34  ;;  %1710 = vperm.xlu1 %4589, %v744_v14   ;;  %1705 = vperm.xlu0 %4588, %v743_v9   ;;  %v748_v34 = vadd.f32 %v5819_v56, %v619_v20  ;;  %v747_v14 = vadd.f32 %v5819_v56, %v618_v3  ;;  %v4875_v3 = vld [vmem:[%s5299_s9 + $0x60] sm:$0xff] }
 0x13a   : > { %v621_v9 = vmul.f32 %v4872_v41, %v5804_v33  ;;  %v622_v41 = vmul.f32 %v4875_v3, %v5804_v33 }
 0x13c   : > { %v5861_v1 = vpop.permute.xlu1 %1224  ;;  %v5863_v40 = vpop.permute.xlu0 %1219 }
 0x13d   : > { %9200 = vst [vmem:[#allocation49_spill] sm:$0xff] %v5861_v1  ;;  %9201 = vst [vmem:[#allocation50_spill] sm:$0xff] %v5863_v40  ;;  %1720 = vperm.xlu1 %4589, %v746_v10   ;;  %1715 = vperm.xlu0 %4588, %v745_v13   ;;  %v4874_v1 = vld [vmem:[%s5299_s9 + $0x68] sm:$0xff]  ;;  %v750_v10 = vadd.f32 %v5819_v56, %v621_v9  ;;  %v749_v13 = vadd.f32 %v5819_v56, %v620_v63  ;;  %v4877_v9 = vld [vmem:[%s5299_s9 + $0x70] sm:$0xff] }
 0x13e   : > { %v623_v20 = vmul.f32 %v4874_v1, %v5804_v33  ;;  %v4876_v1 = vld [vmem:[%s5299_s9 + $0x78] sm:$0xff]  ;;  %v624_v63 = vmul.f32 %v4877_v9, %v5804_v33 }
 0x140   : > { %v5871_v19 = vpop.permute.xlu1 %1234  ;;  %v5873_v55 = vpop.permute.xlu0 %1229 }
 0x141   : > { %9202 = vst [vmem:[#allocation51_spill] sm:$0xff] %v5871_v19  ;;  %9203 = vst [vmem:[#allocation52_spill] sm:$0xff] %v5873_v55  ;;  %1730 = vperm.xlu1 %4589, %v748_v34   ;;  %1725 = vperm.xlu0 %4588, %v747_v14   ;;  %v752_v55 = vadd.f32 %v5819_v56, %v623_v20  ;;  %v751_v34 = vadd.f32 %v5819_v56, %v622_v41  ;;  %v4879_v41 = vld [vmem:[%s5299_s9 + $0x80] sm:$0xff] }
 0x142   : > { %v625_v14 = vmul.f32 %v4876_v1, %v5804_v33  ;;  %v626_v1 = vmul.f32 %v4879_v41, %v5804_v33 }
 0x144   : > { %v5881_v42 = vpop.permute.xlu1 %1244  ;;  %v5883_v19 = vpop.permute.xlu0 %1239 }
 0x145   : > { %9204 = vst [vmem:[#allocation53_spill] sm:$0xff] %v5881_v42  ;;  %9205 = vst [vmem:[#allocation54_spill] sm:$0xff] %v5883_v19  ;;  %1740 = vperm.xlu1 %4589, %v750_v10   ;;  %1735 = vperm.xlu0 %4588, %v749_v13   ;;  %v4878_v42 = vld [vmem:[%s5299_s9 + $0x88] sm:$0xff]  ;;  %v754_v10 = vadd.f32 %v5819_v56, %v625_v14  ;;  %v753_v13 = vadd.f32 %v5819_v56, %v624_v63  ;;  %v4881_v14 = vld [vmem:[%s5299_s9 + $0x90] sm:$0xff] }
 0x146   : > { %v627_v20 = vmul.f32 %v4878_v42, %v5804_v33  ;;  %v4880_v42 = vld [vmem:[%s5299_s9 + $0x98] sm:$0xff]  ;;  %v628_v63 = vmul.f32 %v4881_v14, %v5804_v33 }
 0x148   : > { %v5891_v40 = vpop.permute.xlu1 %1254  ;;  %v5893_v3 = vpop.permute.xlu0 %1249 }
 0x149   : > { %9206 = vst [vmem:[#allocation55_spill] sm:$0xff] %v5891_v40  ;;  %9207 = vst [vmem:[#allocation56_spill] sm:$0xff] %v5893_v3  ;;  %1750 = vperm.xlu1 %4589, %v752_v55   ;;  %1745 = vperm.xlu0 %4588, %v751_v34   ;;  %v756_v3 = vadd.f32 %v5819_v56, %v627_v20  ;;  %v755_v55 = vadd.f32 %v5819_v56, %v626_v1  ;;  %v4883_v1 = vld [vmem:[%s5299_s9 + $0xa0] sm:$0xff] }
 0x14a   : > { %v629_v34 = vmul.f32 %v4880_v42, %v5804_v33  ;;  %v630_v42 = vmul.f32 %v4883_v1, %v5804_v33 }
 0x14c   : > { %v5901_v9 = vpop.permute.xlu1 %1264  ;;  %v5903_v40 = vpop.permute.xlu0 %1259 }
 0x14d   : > { %9208 = vst [vmem:[#allocation57_spill] sm:$0xff] %v5901_v9  ;;  %9209 = vst [vmem:[#allocation58_spill] sm:$0xff] %v5903_v40  ;;  %1760 = vperm.xlu1 %4589, %v754_v10   ;;  %1755 = vperm.xlu0 %4588, %v753_v13   ;;  %v4882_v9 = vld [vmem:[%s5299_s9 + $0xa8] sm:$0xff]  ;;  %v758_v10 = vadd.f32 %v5819_v56, %v629_v34  ;;  %v757_v13 = vadd.f32 %v5819_v56, %v628_v63  ;;  %v4885_v34 = vld [vmem:[%s5299_s9 + $0xb0] sm:$0xff] }
 0x14e   : > { %v631_v20 = vmul.f32 %v4882_v9, %v5804_v33  ;;  %v4884_v9 = vld [vmem:[%s5299_s9 + $0xb8] sm:$0xff]  ;;  %v632_v63 = vmul.f32 %v4885_v34, %v5804_v33 }
 0x150   : > { %v5911_v19 = vpop.permute.xlu1 %1274  ;;  %v5913_v41 = vpop.permute.xlu0 %1269 }
 0x151   : > { %9210 = vst [vmem:[#allocation59_spill] sm:$0xff] %v5911_v19  ;;  %9211 = vst [vmem:[#allocation60_spill] sm:$0xff] %v5913_v41  ;;  %1770 = vperm.xlu1 %4589, %v756_v3   ;;  %1765 = vperm.xlu0 %4588, %v755_v55   ;;  %v760_v41 = vadd.f32 %v5819_v56, %v631_v20  ;;  %v759_v3 = vadd.f32 %v5819_v56, %v630_v42  ;;  %v4887_v42 = vld [vmem:[%s5299_s9 + $0xc0] sm:$0xff] }
 0x152   : > { %v633_v55 = vmul.f32 %v4884_v9, %v5804_v33  ;;  %v634_v9 = vmul.f32 %v4887_v42, %v5804_v33 }
 0x154   : > { %v5921_v14 = vpop.permute.xlu1 %1284  ;;  %v5923_v19 = vpop.permute.xlu0 %1279 }
 0x155   : > { %9212 = vst [vmem:[#allocation61_spill] sm:$0xff] %v5921_v14  ;;  %9213 = vst [vmem:[#allocation62_spill] sm:$0xff] %v5923_v19  ;;  %1780 = vperm.xlu1 %4589, %v758_v10   ;;  %1775 = vperm.xlu0 %4588, %v757_v13   ;;  %v4886_v14 = vld [vmem:[%s5299_s9 + $0xc8] sm:$0xff]  ;;  %v762_v10 = vadd.f32 %v5819_v56, %v633_v55  ;;  %v761_v13 = vadd.f32 %v5819_v56, %v632_v63  ;;  %v4889_v55 = vld [vmem:[%s5299_s9 + $0xd0] sm:$0xff] }
 0x156   : > { %v635_v20 = vmul.f32 %v4886_v14, %v5804_v33  ;;  %v4888_v14 = vld [vmem:[%s5299_s9 + $0xd8] sm:$0xff]  ;;  %v636_v63 = vmul.f32 %v4889_v55, %v5804_v33 }
 0x158   : > { %v5931_v40 = vpop.permute.xlu1 %1294  ;;  %v5933_v1 = vpop.permute.xlu0 %1289 }
 0x159   : > { %9214 = vst [vmem:[#allocation63_spill] sm:$0xff] %v5931_v40  ;;  %9215 = vst [vmem:[#allocation64_spill] sm:$0xff] %v5933_v1  ;;  %1790 = vperm.xlu1 %4589, %v760_v41   ;;  %1785 = vperm.xlu0 %4588, %v759_v3   ;;  %v764_v1 = vadd.f32 %v5819_v56, %v635_v20  ;;  %v763_v41 = vadd.f32 %v5819_v56, %v634_v9  ;;  %v4891_v9 = vld [vmem:[%s5299_s9 + $0xe0] sm:$0xff] }
 0x15a   : > { %v637_v3 = vmul.f32 %v4888_v14, %v5804_v33  ;;  %v638_v14 = vmul.f32 %v4891_v9, %v5804_v33 }
 0x15c   : > { %v5941_v34 = vpop.permute.xlu1 %1304  ;;  %v5943_v40 = vpop.permute.xlu0 %1299 }
 0x15d   : > { %9216 = vst [vmem:[#allocation65_spill] sm:$0xff] %v5941_v34  ;;  %9217 = vst [vmem:[#allocation66_spill] sm:$0xff] %v5943_v40  ;;  %1800 = vperm.xlu1 %4589, %v762_v10   ;;  %1795 = vperm.xlu0 %4588, %v761_v13   ;;  %v4890_v34 = vld [vmem:[%s5299_s9 + $0xe8] sm:$0xff]  ;;  %v766_v10 = vadd.f32 %v5819_v56, %v637_v3  ;;  %v765_v13 = vadd.f32 %v5819_v56, %v636_v63  ;;  %v4893_v3 = vld [vmem:[%s5299_s9 + $0xf0] sm:$0xff] }
 0x15e   : > { %v639_v20 = vmul.f32 %v4890_v34, %v5804_v33  ;;  %v4892_v34 = vld [vmem:[%s5299_s9 + $0xf8] sm:$0xff]  ;;  %v640_v63 = vmul.f32 %v4893_v3, %v5804_v33 }
 0x160   : > { %v5951_v19 = vpop.permute.xlu1 %1314  ;;  %v5953_v42 = vpop.permute.xlu0 %1309 }
 0x161   : > { %9218 = vst [vmem:[#allocation67_spill] sm:$0xff] %v5951_v19  ;;  %9219 = vst [vmem:[#allocation68_spill] sm:$0xff] %v5953_v42  ;;  %1810 = vperm.xlu1 %4589, %v764_v1   ;;  %1805 = vperm.xlu0 %4588, %v763_v41   ;;  %v768_v42 = vadd.f32 %v5819_v56, %v639_v20  ;;  %v767_v1 = vadd.f32 %v5819_v56, %v638_v14  ;;  %v4895_v14 = vld [vmem:[%s5299_s9 + $0x100] sm:$0xff] }
 0x162   : > { %v641_v41 = vmul.f32 %v4892_v34, %v5804_v33  ;;  %v642_v34 = vmul.f32 %v4895_v14, %v5804_v33 }
 0x164   : > { %v5961_v55 = vpop.permute.xlu1 %1324  ;;  %v5963_v19 = vpop.permute.xlu0 %1319 }
 0x165   : > { %9220 = vst [vmem:[#allocation69_spill] sm:$0xff] %v5961_v55  ;;  %9221 = vst [vmem:[#allocation70_spill] sm:$0xff] %v5963_v19  ;;  %1820 = vperm.xlu1 %4589, %v766_v10   ;;  %1815 = vperm.xlu0 %4588, %v765_v13   ;;  %v4894_v55 = vld [vmem:[%s5299_s9 + $0x108] sm:$0xff]  ;;  %v770_v10 = vadd.f32 %v5819_v56, %v641_v41  ;;  %v769_v13 = vadd.f32 %v5819_v56, %v640_v63  ;;  %v4897_v41 = vld [vmem:[%s5299_s9 + $0x110] sm:$0xff] }
 0x166   : > { %v643_v20 = vmul.f32 %v4894_v55, %v5804_v33  ;;  %v4896_v55 = vld [vmem:[%s5299_s9 + $0x118] sm:$0xff]  ;;  %v644_v63 = vmul.f32 %v4897_v41, %v5804_v33 }
 0x168   : > { %v5971_v40 = vpop.permute.xlu1 %1334  ;;  %v5973_v9 = vpop.permute.xlu0 %1329 }
 0x169   : > { %9222 = vst [vmem:[#allocation71_spill] sm:$0xff] %v5971_v40  ;;  %9223 = vst [vmem:[#allocation72_spill] sm:$0xff] %v5973_v9  ;;  %1830 = vperm.xlu1 %4589, %v768_v42   ;;  %1825 = vperm.xlu0 %4588, %v767_v1   ;;  %v772_v9 = vadd.f32 %v5819_v56, %v643_v20  ;;  %v771_v42 = vadd.f32 %v5819_v56, %v642_v34  ;;  %v4899_v34 = vld [vmem:[%s5299_s9 + $0x120] sm:$0xff] }
 0x16a   : > { %v645_v1 = vmul.f32 %v4896_v55, %v5804_v33  ;;  %v646_v55 = vmul.f32 %v4899_v34, %v5804_v33 }
 0x16c   : > { %v5981_v3 = vpop.permute.xlu1 %1344  ;;  %v5983_v40 = vpop.permute.xlu0 %1339 }
 0x16d   : > { %9224 = vst [vmem:[#allocation73_spill] sm:$0xff] %v5981_v3  ;;  %9225 = vst [vmem:[#allocation74_spill] sm:$0xff] %v5983_v40  ;;  %1840 = vperm.xlu1 %4589, %v770_v10   ;;  %1835 = vperm.xlu0 %4588, %v769_v13   ;;  %v4898_v3 = vld [vmem:[%s5299_s9 + $0x128] sm:$0xff]  ;;  %v774_v10 = vadd.f32 %v5819_v56, %v645_v1  ;;  %v773_v13 = vadd.f32 %v5819_v56, %v644_v63  ;;  %v4901_v1 = vld [vmem:[%s5299_s9 + $0x130] sm:$0xff] }
 0x16e   : > { %v647_v20 = vmul.f32 %v4898_v3, %v5804_v33  ;;  %v4900_v3 = vld [vmem:[%s5299_s9 + $0x138] sm:$0xff]  ;;  %v648_v63 = vmul.f32 %v4901_v1, %v5804_v33 }
 0x170   : > { %v5991_v19 = vpop.permute.xlu1 %1354  ;;  %v5993_v14 = vpop.permute.xlu0 %1349 }
 0x171   : > { %9226 = vst [vmem:[#allocation75_spill] sm:$0xff] %v5991_v19  ;;  %9227 = vst [vmem:[#allocation76_spill] sm:$0xff] %v5993_v14  ;;  %1850 = vperm.xlu1 %4589, %v772_v9   ;;  %1845 = vperm.xlu0 %4588, %v771_v42   ;;  %v776_v14 = vadd.f32 %v5819_v56, %v647_v20  ;;  %v775_v9 = vadd.f32 %v5819_v56, %v646_v55  ;;  %v4903_v55 = vld [vmem:[%s5299_s9 + $0x140] sm:$0xff] }
 0x172   : > { %v649_v42 = vmul.f32 %v4900_v3, %v5804_v33  ;;  %v650_v3 = vmul.f32 %v4903_v55, %v5804_v33 }
 0x174   : > { %v6001_v41 = vpop.permute.xlu1 %1364  ;;  %v6003_v19 = vpop.permute.xlu0 %1359 }
 0x175   : > { %9228 = vst [vmem:[#allocation77_spill] sm:$0xff] %v6001_v41  ;;  %9229 = vst [vmem:[#allocation78_spill] sm:$0xff] %v6003_v19  ;;  %1860 = vperm.xlu1 %4589, %v774_v10   ;;  %1855 = vperm.xlu0 %4588, %v773_v13   ;;  %v4902_v41 = vld [vmem:[%s5299_s9 + $0x148] sm:$0xff]  ;;  %v778_v10 = vadd.f32 %v5819_v56, %v649_v42  ;;  %v777_v13 = vadd.f32 %v5819_v56, %v648_v63  ;;  %v4905_v42 = vld [vmem:[%s5299_s9 + $0x150] sm:$0xff] }
 0x176   : > { %v651_v20 = vmul.f32 %v4902_v41, %v5804_v33  ;;  %v4904_v41 = vld [vmem:[%s5299_s9 + $0x158] sm:$0xff]  ;;  %v652_v63 = vmul.f32 %v4905_v42, %v5804_v33 }
 0x178   : > { %v6011_v40 = vpop.permute.xlu1 %1374  ;;  %v6013_v34 = vpop.permute.xlu0 %1369 }
 0x179   : > { %9230 = vst [vmem:[#allocation79_spill] sm:$0xff] %v6011_v40  ;;  %9231 = vst [vmem:[#allocation80_spill] sm:$0xff] %v6013_v34  ;;  %1870 = vperm.xlu1 %4589, %v776_v14   ;;  %1865 = vperm.xlu0 %4588, %v775_v9   ;;  %v780_v34 = vadd.f32 %v5819_v56, %v651_v20  ;;  %v779_v14 = vadd.f32 %v5819_v56, %v650_v3  ;;  %v4907_v3 = vld [vmem:[%s5299_s9 + $0x160] sm:$0xff] }
 0x17a   : > { %v653_v9 = vmul.f32 %v4904_v41, %v5804_v33  ;;  %v654_v41 = vmul.f32 %v4907_v3, %v5804_v33 }
 0x17c   : > { %v6021_v1 = vpop.permute.xlu1 %1384  ;;  %v6023_v40 = vpop.permute.xlu0 %1379 }
 0x17d   : > { %9232 = vst [vmem:[#allocation81_spill] sm:$0xff] %v6021_v1  ;;  %9233 = vst [vmem:[#allocation82_spill] sm:$0xff] %v6023_v40  ;;  %1880 = vperm.xlu1 %4589, %v778_v10   ;;  %1875 = vperm.xlu0 %4588, %v777_v13   ;;  %v4906_v1 = vld [vmem:[%s5299_s9 + $0x168] sm:$0xff]  ;;  %v782_v10 = vadd.f32 %v5819_v56, %v653_v9  ;;  %v781_v13 = vadd.f32 %v5819_v56, %v652_v63  ;;  %v4909_v9 = vld [vmem:[%s5299_s9 + $0x170] sm:$0xff] }
 0x17e   : > { %v655_v20 = vmul.f32 %v4906_v1, %v5804_v33  ;;  %v4908_v1 = vld [vmem:[%s5299_s9 + $0x178] sm:$0xff]  ;;  %v656_v63 = vmul.f32 %v4909_v9, %v5804_v33 }
 0x180   : > { %v6031_v19 = vpop.permute.xlu1 %1394  ;;  %v6033_v55 = vpop.permute.xlu0 %1389 }
 0x181   : > { %9234 = vst [vmem:[#allocation83_spill] sm:$0xff] %v6031_v19  ;;  %9235 = vst [vmem:[#allocation84_spill] sm:$0xff] %v6033_v55  ;;  %1890 = vperm.xlu1 %4589, %v780_v34   ;;  %1885 = vperm.xlu0 %4588, %v779_v14   ;;  %v784_v55 = vadd.f32 %v5819_v56, %v655_v20  ;;  %v783_v34 = vadd.f32 %v5819_v56, %v654_v41  ;;  %v4911_v41 = vld [vmem:[%s5299_s9 + $0x180] sm:$0xff] }
 0x182   : > { %v657_v14 = vmul.f32 %v4908_v1, %v5804_v33  ;;  %v658_v1 = vmul.f32 %v4911_v41, %v5804_v33 }
 0x184   : > { %v6041_v42 = vpop.permute.xlu1 %1404  ;;  %v6043_v19 = vpop.permute.xlu0 %1399 }
 0x185   : > { %9236 = vst [vmem:[#allocation85_spill] sm:$0xff] %v6041_v42  ;;  %9237 = vst [vmem:[#allocation86_spill] sm:$0xff] %v6043_v19  ;;  %1900 = vperm.xlu1 %4589, %v782_v10   ;;  %1895 = vperm.xlu0 %4588, %v781_v13   ;;  %v4910_v42 = vld [vmem:[%s5299_s9 + $0x188] sm:$0xff]  ;;  %v786_v10 = vadd.f32 %v5819_v56, %v657_v14  ;;  %v785_v13 = vadd.f32 %v5819_v56, %v656_v63  ;;  %v4913_v14 = vld [vmem:[%s5299_s9 + $0x190] sm:$0xff] }
 0x186   : > { %v659_v20 = vmul.f32 %v4910_v42, %v5804_v33  ;;  %v4912_v42 = vld [vmem:[%s5299_s9 + $0x198] sm:$0xff]  ;;  %v660_v63 = vmul.f32 %v4913_v14, %v5804_v33 }
 0x188   : > { %v6051_v40 = vpop.permute.xlu1 %1414  ;;  %v6053_v3 = vpop.permute.xlu0 %1409 }
 0x189   : > { %9238 = vst [vmem:[#allocation87_spill] sm:$0xff] %v6051_v40  ;;  %9239 = vst [vmem:[#allocation88_spill] sm:$0xff] %v6053_v3  ;;  %1910 = vperm.xlu1 %4589, %v784_v55   ;;  %1905 = vperm.xlu0 %4588, %v783_v34   ;;  %v788_v3 = vadd.f32 %v5819_v56, %v659_v20  ;;  %v787_v55 = vadd.f32 %v5819_v56, %v658_v1  ;;  %v4915_v1 = vld [vmem:[%s5299_s9 + $0x1a0] sm:$0xff] }
 0x18a   : > { %v661_v34 = vmul.f32 %v4912_v42, %v5804_v33  ;;  %v662_v42 = vmul.f32 %v4915_v1, %v5804_v33 }
 0x18c   : > { %v6061_v9 = vpop.permute.xlu1 %1424  ;;  %v6063_v40 = vpop.permute.xlu0 %1419 }
 0x18d   : > { %9240 = vst [vmem:[#allocation89_spill] sm:$0xff] %v6061_v9  ;;  %9241 = vst [vmem:[#allocation90_spill] sm:$0xff] %v6063_v40  ;;  %1920 = vperm.xlu1 %4589, %v786_v10   ;;  %1915 = vperm.xlu0 %4588, %v785_v13   ;;  %v4914_v9 = vld [vmem:[%s5299_s9 + $0x1a8] sm:$0xff]  ;;  %v790_v10 = vadd.f32 %v5819_v56, %v661_v34  ;;  %v789_v13 = vadd.f32 %v5819_v56, %v660_v63  ;;  %v4917_v34 = vld [vmem:[%s5299_s9 + $0x1b0] sm:$0xff] }
 0x18e   : > { %v663_v20 = vmul.f32 %v4914_v9, %v5804_v33  ;;  %v4916_v9 = vld [vmem:[%s5299_s9 + $0x1b8] sm:$0xff]  ;;  %v664_v63 = vmul.f32 %v4917_v34, %v5804_v33 }
 0x190   : > { %v6071_v19 = vpop.permute.xlu1 %1434  ;;  %v6073_v41 = vpop.permute.xlu0 %1429 }
 0x191   : > { %9242 = vst [vmem:[#allocation91_spill] sm:$0xff] %v6071_v19  ;;  %9243 = vst [vmem:[#allocation92_spill] sm:$0xff] %v6073_v41  ;;  %1930 = vperm.xlu1 %4589, %v788_v3   ;;  %1925 = vperm.xlu0 %4588, %v787_v55   ;;  %v792_v41 = vadd.f32 %v5819_v56, %v663_v20  ;;  %v791_v3 = vadd.f32 %v5819_v56, %v662_v42  ;;  %v4919_v42 = vld [vmem:[%s5299_s9 + $0x1c0] sm:$0xff] }
 0x192   : > { %v665_v55 = vmul.f32 %v4916_v9, %v5804_v33  ;;  %v666_v9 = vmul.f32 %v4919_v42, %v5804_v33 }
 0x194   : > { %v6081_v14 = vpop.permute.xlu1 %1444  ;;  %v6083_v19 = vpop.permute.xlu0 %1439 }
 0x195   : > { %9244 = vst [vmem:[#allocation93_spill] sm:$0xff] %v6081_v14  ;;  %9245 = vst [vmem:[#allocation94_spill] sm:$0xff] %v6083_v19  ;;  %1940 = vperm.xlu1 %4589, %v790_v10   ;;  %1935 = vperm.xlu0 %4588, %v789_v13   ;;  %v4918_v14 = vld [vmem:[%s5299_s9 + $0x1c8] sm:$0xff]  ;;  %v794_v10 = vadd.f32 %v5819_v56, %v665_v55  ;;  %v793_v13 = vadd.f32 %v5819_v56, %v664_v63  ;;  %v4921_v55 = vld [vmem:[%s5299_s9 + $0x1d0] sm:$0xff] }
 0x196   : > { %v667_v20 = vmul.f32 %v4918_v14, %v5804_v33  ;;  %v4920_v14 = vld [vmem:[%s5299_s9 + $0x1d8] sm:$0xff]  ;;  %v668_v63 = vmul.f32 %v4921_v55, %v5804_v33 }
 0x198   : > { %v6091_v40 = vpop.permute.xlu1 %1454  ;;  %v6093_v1 = vpop.permute.xlu0 %1449 }
 0x199   : > { %9246 = vst [vmem:[#allocation95_spill] sm:$0xff] %v6091_v40  ;;  %9247 = vst [vmem:[#allocation96_spill] sm:$0xff] %v6093_v1  ;;  %1950 = vperm.xlu1 %4589, %v792_v41   ;;  %1945 = vperm.xlu0 %4588, %v791_v3   ;;  %v796_v1 = vadd.f32 %v5819_v56, %v667_v20  ;;  %v795_v41 = vadd.f32 %v5819_v56, %v666_v9  ;;  %v4923_v9 = vld [vmem:[%s5299_s9 + $0x1e0] sm:$0xff] }
 0x19a   : > { %v669_v3 = vmul.f32 %v4920_v14, %v5804_v33  ;;  %v670_v14 = vmul.f32 %v4923_v9, %v5804_v33 }
 0x19c   : > { %v6101_v34 = vpop.permute.xlu1 %1464  ;;  %v6103_v40 = vpop.permute.xlu0 %1459 }
 0x19d   : > { %9248 = vst [vmem:[#allocation97_spill] sm:$0xff] %v6101_v34  ;;  %9249 = vst [vmem:[#allocation98_spill] sm:$0xff] %v6103_v40  ;;  %1960 = vperm.xlu1 %4589, %v794_v10   ;;  %1955 = vperm.xlu0 %4588, %v793_v13   ;;  %v4922_v34 = vld [vmem:[%s5299_s9 + $0x1e8] sm:$0xff]  ;;  %v798_v10 = vadd.f32 %v5819_v56, %v669_v3  ;;  %v797_v13 = vadd.f32 %v5819_v56, %v668_v63  ;;  %v4925_v3 = vld [vmem:[%s5299_s9 + $0x1f0] sm:$0xff] }
 0x19e   : > { %v671_v20 = vmul.f32 %v4922_v34, %v5804_v33  ;;  %v4924_v34 = vld [vmem:[%s5299_s9 + $0x1f8] sm:$0xff]  ;;  %v672_v63 = vmul.f32 %v4925_v3, %v5804_v33 }
 0x1a0   : > { %v6111_v19 = vpop.permute.xlu1 %1474  ;;  %v6113_v42 = vpop.permute.xlu0 %1469 }
 0x1a1   : > { %9250 = vst [vmem:[#allocation99_spill] sm:$0xff] %v6111_v19  ;;  %9251 = vst [vmem:[#allocation100_spill] sm:$0xff] %v6113_v42  ;;  %1970 = vperm.xlu1 %4589, %v796_v1   ;;  %1965 = vperm.xlu0 %4588, %v795_v41   ;;  %v800_v42 = vadd.f32 %v5819_v56, %v671_v20  ;;  %v799_v1 = vadd.f32 %v5819_v56, %v670_v14  ;;  %v4927_v14 = vld [vmem:[%s5299_s9 + $0x200] sm:$0xff] }
 0x1a2   : > { %v673_v41 = vmul.f32 %v4924_v34, %v5804_v33  ;;  %v674_v34 = vmul.f32 %v4927_v14, %v5804_v33 }
 0x1a4   : > { %v6121_v55 = vpop.permute.xlu1 %1484  ;;  %v6123_v19 = vpop.permute.xlu0 %1479 }
 0x1a5   : > { %9252 = vst [vmem:[#allocation101_spill] sm:$0xff] %v6121_v55  ;;  %9253 = vst [vmem:[#allocation102_spill] sm:$0xff] %v6123_v19  ;;  %1980 = vperm.xlu1 %4589, %v798_v10   ;;  %1975 = vperm.xlu0 %4588, %v797_v13   ;;  %v4926_v55 = vld [vmem:[%s5299_s9 + $0x208] sm:$0xff]  ;;  %v802_v10 = vadd.f32 %v5819_v56, %v673_v41  ;;  %v801_v13 = vadd.f32 %v5819_v56, %v672_v63  ;;  %v4929_v41 = vld [vmem:[%s5299_s9 + $0x210] sm:$0xff] }
 0x1a6   : > { %v675_v20 = vmul.f32 %v4926_v55, %v5804_v33  ;;  %v4928_v55 = vld [vmem:[%s5299_s9 + $0x218] sm:$0xff]  ;;  %v676_v63 = vmul.f32 %v4929_v41, %v5804_v33 }
 0x1a8   : > { %v6131_v40 = vpop.permute.xlu1 %1494  ;;  %v6133_v9 = vpop.permute.xlu0 %1489 }
 0x1a9   : > { %9254 = vst [vmem:[#allocation103_spill] sm:$0xff] %v6131_v40  ;;  %9255 = vst [vmem:[#allocation104_spill] sm:$0xff] %v6133_v9  ;;  %1990 = vperm.xlu1 %4589, %v800_v42   ;;  %1985 = vperm.xlu0 %4588, %v799_v1   ;;  %v804_v9 = vadd.f32 %v5819_v56, %v675_v20  ;;  %v803_v42 = vadd.f32 %v5819_v56, %v674_v34  ;;  %v4931_v34 = vld [vmem:[%s5299_s9 + $0x220] sm:$0xff] }
 0x1aa   : > { %v677_v1 = vmul.f32 %v4928_v55, %v5804_v33  ;;  %v678_v55 = vmul.f32 %v4931_v34, %v5804_v33 }
 0x1ac   : > { %v6141_v3 = vpop.permute.xlu1 %1504  ;;  %v6143_v40 = vpop.permute.xlu0 %1499 }
 0x1ad   : > { %9256 = vst [vmem:[#allocation105_spill] sm:$0xff] %v6141_v3  ;;  %9257 = vst [vmem:[#allocation106_spill] sm:$0xff] %v6143_v40  ;;  %2000 = vperm.xlu1 %4589, %v802_v10   ;;  %1995 = vperm.xlu0 %4588, %v801_v13   ;;  %v4930_v3 = vld [vmem:[%s5299_s9 + $0x228] sm:$0xff]  ;;  %v806_v10 = vadd.f32 %v5819_v56, %v677_v1  ;;  %v805_v13 = vadd.f32 %v5819_v56, %v676_v63  ;;  %v4933_v1 = vld [vmem:[%s5299_s9 + $0x230] sm:$0xff] }
 0x1ae   : > { %v679_v20 = vmul.f32 %v4930_v3, %v5804_v33  ;;  %v4932_v3 = vld [vmem:[%s5299_s9 + $0x238] sm:$0xff]  ;;  %v680_v63 = vmul.f32 %v4933_v1, %v5804_v33 }
 0x1b0   : > { %v6151_v19 = vpop.permute.xlu1 %1690  ;;  %v6153_v14 = vpop.permute.xlu0 %1685  ;;  %v808_v0 = vadd.f32 %v5819_v56, %v679_v20  ;;  %v683_v20 = vmul.f32 %v4934_v52, %v5804_v33 }
 0x1b1   : > { %2010 = vperm.xlu1 %4589, %v804_v9   ;;  %2005 = vperm.xlu0 %4588, %v803_v42   ;;  %v807_v9 = vadd.f32 %v5819_v56, %v678_v55  ;;  %v681_v42 = vmul.f32 %v4932_v3, %v5804_v33  ;;  %v4935_v55 = vld [vmem:[%s5299_s9 + $0x240] sm:$0xff] }
 0x1b2   : > { %v682_v3 = vmul.f32 %v4935_v55, %v5804_v33  ;;  %v812_v24 = vadd.f32 %v5819_v56, %v683_v20  ;;  %v687_v20 = vmul.f32 %v4938_v4, %v5804_v33 }
 0x1b4   : > { %v6161_v41 = vpop.permute.xlu1 %1700  ;;  %v6163_v40 = vpop.permute.xlu0 %1695  ;;  %v811_v52 = vadd.f32 %v5819_v56, %v682_v3  ;;  %v4939_v3 = vld [vmem:[%s5299_s9 + $0x260] sm:$0xff]  ;;  %v816_v50 = vadd.f32 %v5819_v56, %v687_v20  ;;  %v691_v20 = vmul.f32 %v4942_v27, %v5804_v33 }
 0x1b5   : > { %2020 = vperm.xlu1 %4589, %v806_v10   ;;  %2015 = vperm.xlu0 %4588, %v805_v13   ;;  %v810_v10 = vadd.f32 %v5819_v56, %v681_v42  ;;  %v809_v13 = vadd.f32 %v5819_v56, %v680_v63  ;;  %v4937_v42 = vld [vmem:[%s5299_s9 + $0x250] sm:$0xff] }
 0x1b6   : > { %v684_v63 = vmul.f32 %v4937_v42, %v5804_v33  ;;  %v820_v43 = vadd.f32 %v5819_v56, %v691_v20 }
 0x1b8   : > { %v6171_v39 = vpop.permute.xlu1 %1710  ;;  %v6173_v34 = vpop.permute.xlu0 %1705 }
 0x1b9   : > { %2030 = vperm.xlu1 %4589, %v808_v0   ;;  %2025 = vperm.xlu0 %4588, %v807_v9   ;;  %v4936_v0 = vld [vmem:[%s5299_s9 + $0x258] sm:$0xff] }
 0x1ba   : > { %v685_v9 = vmul.f32 %v4936_v0, %v5804_v33  ;;  %v686_v0 = vmul.f32 %v4939_v3, %v5804_v33 }
 0x1bc   : > { %v6181_v1 = vpop.permute.xlu1 %1720  ;;  %v6183_v51 = vpop.permute.xlu0 %1715  ;;  %v815_v4 = vadd.f32 %v5819_v56, %v686_v0  ;;  %v4943_v0 = vld [vmem:[%s5299_s9 + $0x280] sm:$0xff] }
 0x1bd   : > { %2040 = vperm.xlu1 %4589, %v810_v10   ;;  %2035 = vperm.xlu0 %4588, %v809_v13   ;;  %v814_v10 = vadd.f32 %v5819_v56, %v685_v9  ;;  %v813_v13 = vadd.f32 %v5819_v56, %v684_v63  ;;  %v4941_v9 = vld [vmem:[%s5299_s9 + $0x270] sm:$0xff] }
 0x1be   : > { %v688_v63 = vmul.f32 %v4941_v9, %v5804_v33 }
 0x1c0   : > { %v6191_v23 = vpop.permute.xlu1 %1730  ;;  %v6193_v55 = vpop.permute.xlu0 %1725 }
 0x1c1   : > { %2050 = vperm.xlu1 %4589, %v812_v24   ;;  %2045 = vperm.xlu0 %4588, %v811_v52   ;;  %v4940_v24 = vld [vmem:[%s5299_s9 + $0x278] sm:$0xff] }
 0x1c2   : > { %v689_v52 = vmul.f32 %v4940_v24, %v5804_v33  ;;  %v690_v24 = vmul.f32 %v4943_v0, %v5804_v33 }
 0x1c4   : > { %v6201_v42 = vpop.permute.xlu1 %1740  ;;  %v6203_v2 = vpop.permute.xlu0 %1735  ;;  %v819_v27 = vadd.f32 %v5819_v56, %v690_v24 }
 0x1c5   : > { %2060 = vperm.xlu1 %4589, %v814_v10   ;;  %2055 = vperm.xlu0 %4588, %v813_v13   ;;  %v818_v10 = vadd.f32 %v5819_v56, %v689_v52  ;;  %v817_v13 = vadd.f32 %v5819_v56, %v688_v63  ;;  %v4945_v52 = vld [vmem:[%s5299_s9 + $0x290] sm:$0xff] }
 0x1c6   : > { %v692_v63 = vmul.f32 %v4945_v52, %v5804_v33 }
 0x1c8   : > { %v6211_v49 = vpop.permute.xlu1 %1750  ;;  %v6213_v3 = vpop.permute.xlu0 %1745  ;;  %v821_v24 = vadd.f32 %v5819_v56, %v692_v63 }
 0x1c9   : > { %2070 = vperm.xlu1 %4589, %v816_v50   ;;  %2065 = vperm.xlu0 %4588, %v815_v4   ;;  %v4944_v50 = vld [vmem:[%s5299_s9 + $0x298] sm:$0xff] }
 0x1ca   : > { %v693_v4 = vmul.f32 %v4944_v50, %v5804_v33  ;;  %v4946_v50 = vld [vmem:[%s5299_s9 + $0x2a8] sm:$0xff] }
 0x1cb   : > { %v695_v52 = vmul.f32 %v4946_v50, %v5804_v33  ;;  %v4949_v50 = vld [vmem:[%s5299_s9 + $0x2b0] sm:$0xff] }
 0x1cc   : > { %v6221_v9 = vpop.permute.xlu1 %1760  ;;  %v6223_v44 = vpop.permute.xlu0 %1755 }
 0x1cd   : > { %9258 = vst [vmem:[#allocation107_spill] sm:$0xff] %v6221_v9  ;;  %2080 = vperm.xlu1 %4589, %v818_v10   ;;  %2075 = vperm.xlu0 %4588, %v817_v13   ;;  %v6242_v10 = vld [vmem:[%s6235_s20] ss:$0 sm:$0xff]  ;;  %v822_v13 = vadd.f32 %v5819_v56, %v693_v4  ;;  %v4948_v4 = vld [vmem:[%s5299_s9 + $0x2b8] sm:$0xff] }
 0x1ce   : > { %v1555_v11 = vmul.f32 %v6242_v10, %v5511_v22  ;;  %v697_v63 = vmul.f32 %v4948_v4, %v5804_v33  ;;  %v696_v22 = vmul.f32 %v4949_v50, %v5804_v33  ;;  %v1557_v12 = vmul.f32 %v6242_v10, %v5509_v21  ;;  %v4950_v4 = vld [vmem:[%s5299_s9 + $0x2c8] sm:$0xff] }
 0x1cf   : > { %v699_v21 = vmul.f32 %v4950_v4, %v5804_v33 }
 0x1d0   : > { %v6237_v0 = vpop.permute.xlu1 %1770  ;;  %v6239_v20 = vpop.permute.xlu0 %1765  ;;  %v826_v28 = vadd.f32 %v5819_v56, %v697_v63 }
 0x1d1   : > { %2090 = vperm.xlu1 %4589, %v820_v43   ;;  %2085 = vperm.xlu0 %4588, %v819_v27   ;;  %v1556_v43 = vmul.f32 %v6242_v10, %v5521_v30  ;;  %v824_v27 = vadd.f32 %v5819_v56, %v695_v52  ;;  %v6270_v30 = vadd.f32 %v6153_v14, %v1555_v11  ;;  %v4951_v11 = vld [vmem:[%s5299_s9 + $0x2c0] sm:$0xff] }
 0x1d2   : > { %v6277_v52 = vadd.f32 %v6163_v40, %v1557_v12  ;;  %v698_v14 = vmul.f32 %v4951_v11, %v5804_v33  ;;  %v1558_v40 = vmul.f32 %v6242_v10, %v5519_v29  ;;  %v828_v63 = vadd.f32 %v5819_v56, %v699_v21  ;;  %v4953_v11 = vld [vmem:[%s5299_s9 + $0x2d0] sm:$0xff] }
 0x1d3   : > { %v6267_v9 = vadd.f32 %v6151_v19, %v1556_v43  ;;  %9260 = vst [vmem:[#allocation109_spill] sm:$0xff] %v6270_v30  ;;  %v825_v19 = vadd.f32 %v5819_v56, %v696_v22 }
 0x1d4   : > { %v6252_v32 = vpop.permute.xlu1 %1780  ;;  %v6254_v17 = vpop.permute.xlu0 %1775  ;;  %9261 = vst [vmem:[#allocation110_spill] sm:$0xff] %v6277_v52  ;;  %v827_v4 = vadd.f32 %v5819_v56, %v698_v14  ;;  %v6303_v29 = vadd.f32 %v6161_v41, %v1558_v40  ;;  %v4955_v40 = vld [vmem:[%s5299_s9 + $0x2e0] sm:$0xff] }
 0x1d5   : > { %2100 = vperm.xlu1 %4589, %v822_v13   ;;  %2095 = vperm.xlu0 %4588, %v821_v24   ;;  %9259 = vst [vmem:[#allocation108_spill] sm:$0xff] %v6267_v9  ;;  %v2451_v43 = vmax.f32 %v6270_v30, %v6267_v9  ;;  %v700_v30 = vmul.f32 %v4953_v11, %v5804_v33 }
 0x1d6   : > { %v1559_v9 = vmul.f32 %v6242_v10, %v5531_v38  ;;  %9262 = vst [vmem:[#allocation111_spill] sm:$0xff] %v6303_v29  ;;  %v702_v11 = vmul.f32 %v4955_v40, %v5804_v33 }
 0x1d7   : > { %v829_v41 = vadd.f32 %v5819_v56, %v700_v30 }
 0x1d8   : > { %v6272_v13 = vpop.permute.xlu1 %1790  ;;  %v6274_v24 = vpop.permute.xlu0 %1785  ;;  %v6310_v21 = vadd.f32 %v6173_v34, %v1559_v9  ;;  %v1560_v9 = vmul.f32 %v6242_v10, %v5529_v37  ;;  %v6335_v37 = vld [vmem:[%s6235_s20 + $0x1] ss:$0 sm:$0xff] }
 0x1d9   : > { %2110 = vperm.xlu1 %4589, %v824_v27   ;;  %2105 = vperm.xlu0 %4588, %v823_v31   ;;  %v2452_v27 = vmax.f32 %v2451_v43, %v6277_v52  ;;  %v4952_v31 = vld [vmem:[%s5299_s9 + $0x2d8] sm:$0xff] }
 0x1da   : > { %v701_v22 = vmul.f32 %v4952_v31, %v5804_v33  ;;  %9263 = vst [vmem:[#allocation112_spill] sm:$0xff] %v6310_v21  ;;  %v4954_v31 = vld [vmem:[%s5299_s9 + $0x2e8] sm:$0xff] }
 0x1db   : > { %v703_v38 = vmul.f32 %v4954_v31, %v5804_v33  ;;  %v4957_v31 = vld [vmem:[%s5299_s9 + $0x2f0] sm:$0xff] }
 0x1dc   : > { %v6287_v50 = vpop.permute.xlu1 %1800  ;;  %v6289_v12 = vpop.permute.xlu0 %1795  ;;  %v830_v14 = vadd.f32 %v5819_v56, %v701_v22  ;;  %v4956_v22 = vld [vmem:[%s5299_s9 + $0x2f8] sm:$0xff]  ;;  %v704_v40 = vmul.f32 %v4957_v31, %v5804_v33  ;;  %v4958_v31 = vld [vmem:[%s5299_s9 + $0x308] sm:$0xff] }
 0x1dd   : > { %2120 = vperm.xlu1 %4589, %v826_v28   ;;  %2115 = vperm.xlu0 %4588, %v825_v19   ;;  %v2453_v19 = vmax.f32 %v2452_v27, %v6303_v29  ;;  %v705_v30 = vmul.f32 %v4956_v22, %v5804_v33  ;;  %v1561_v29 = vmul.f32 %v6242_v10, %v5541_v46 }
 0x1de   : > { %v707_v46 = vmul.f32 %v4958_v31, %v5804_v33 }
 0x1df   : > { %v2454_v27 = vmax.f32 %v2453_v19, %v6310_v21  ;;  %v6338_v19 = vadd.f32 %v6171_v39, %v1560_v9  ;;  %v834_v22 = vadd.f32 %v5819_v56, %v705_v30  ;;  %v1572_v39 = vmul.f32 %v6335_v37, %v5589_v25 }
 0x1e0   : > { %v6305_v28 = vpop.permute.xlu1 %1810  ;;  %v6307_v43 = vpop.permute.xlu0 %1805  ;;  %v1571_v9 = vmul.f32 %v6335_v37, %v5591_v26  ;;  %v833_v21 = vadd.f32 %v5819_v56, %v704_v40  ;;  %v1562_v26 = vmul.f32 %v6242_v10, %v5539_v45  ;;  %v836_v40 = vadd.f32 %v5819_v56, %v707_v46 }
 0x1e1   : > { %2130 = vperm.xlu1 %4589, %v828_v63   ;;  %2125 = vperm.xlu0 %4588, %v827_v4   ;;  %v832_v63 = vadd.f32 %v5819_v56, %v703_v38  ;;  %v831_v4 = vadd.f32 %v5819_v56, %v702_v11  ;;  %v2455_v11 = vmax.f32 %v2454_v27, %v6338_v19 }
 0x1e2   : > { %v1573_v27 = vmul.f32 %v6335_v37, %v5601_v36  ;;  %v6364_v30 = vadd.f32 %v6239_v20, %v1571_v9  ;;  %v1563_v45 = vmul.f32 %v6242_v10, %v5551_v54 }
 0x1e4   : > { %v6319_v52 = vpop.permute.xlu1 %1820  ;;  %v6321_v34 = vpop.permute.xlu0 %1815 }
 0x1e5   : > { %2140 = vperm.xlu1 %4589, %v830_v14   ;;  %2135 = vperm.xlu0 %4588, %v829_v41   ;;  %v6345_v41 = vadd.f32 %v6183_v51, %v1561_v29  ;;  %v4959_v51 = vld [vmem:[%s5299_s9 + $0x300] sm:$0xff] }
 0x1e6   : > { %v706_v29 = vmul.f32 %v4959_v51, %v5804_v33  ;;  %v4960_v51 = vld [vmem:[%s5299_s9 + $0x318] sm:$0xff] }
 0x1e7   : > { %9264 = vst [vmem:[#allocation113_spill] sm:$0xff] %v6345_v41  ;;  %v709_v36 = vmul.f32 %v4960_v51, %v5804_v33  ;;  %v4962_v51 = vld [vmem:[%s5299_s9 + $0x328] sm:$0xff] }
 0x1e8   : > { %v6340_v14 = vpop.permute.xlu1 %1830  ;;  %v6342_v38 = vpop.permute.xlu0 %1825  ;;  %v835_v20 = vadd.f32 %v5819_v56, %v706_v29  ;;  %v711_v54 = vmul.f32 %v4962_v51, %v5804_v33 }
 0x1e9   : > { %2150 = vperm.xlu1 %4589, %v832_v63   ;;  %2145 = vperm.xlu0 %4588, %v831_v4   ;;  %v6361_v63 = vadd.f32 %v6237_v0, %v1572_v39  ;;  %v2456_v4 = vmax.f32 %v2455_v11, %v6345_v41  ;;  %v6377_v0 = vadd.f32 %v6254_v17, %v1573_v27  ;;  %v4961_v39 = vld [vmem:[%s5299_s9 + $0x310] sm:$0xff]  ;;  %v4963_v41 = vld [vmem:[%s5299_s9 + $0x320] sm:$0xff] }
 0x1ea   : > { %v708_v9 = vmul.f32 %v4961_v39, %v5804_v33  ;;  %v6385_v11 = vadd.f32 %v6181_v1, %v1562_v26  ;;  %v838_v27 = vadd.f32 %v5819_v56, %v709_v36  ;;  %v1574_v1 = vmul.f32 %v6335_v37, %v5599_v35 }
 0x1eb   : > { %v1564_v35 = vmul.f32 %v6242_v10, %v5549_v53 }
 0x1ec   : > { %v6366_v25 = vpop.permute.xlu1 %1840  ;;  %v6368_v31 = vpop.permute.xlu0 %1835  ;;  %v2457_v29 = vmax.f32 %v2456_v4, %v6385_v11  ;;  %v837_v39 = vadd.f32 %v5819_v56, %v708_v9  ;;  %v1575_v4 = vmul.f32 %v6335_v37, %v5611_v48  ;;  %v840_v9 = vadd.f32 %v5819_v56, %v711_v54 }
 0x1ed   : > { %2160 = vperm.xlu1 %4589, %v834_v22   ;;  %2155 = vperm.xlu0 %4588, %v833_v21   ;;  %v2472_v22 = vmax.f32 %v6364_v30, %v6361_v63  ;;  %v6394_v21 = vadd.f32 %v6193_v55, %v1563_v45  ;;  %v710_v55 = vmul.f32 %v4963_v41, %v5804_v33 }
 0x1ee   : > { %v6422_v48 = vadd.f32 %v6274_v24, %v1575_v4 }
 0x1ef   : > { %v2473_v26 = vmax.f32 %v2472_v22, %v6377_v0  ;;  %v4964_v22 = vld [vmem:[%s5299_s9 + $0x338] sm:$0xff]  ;;  %v839_v51 = vadd.f32 %v5819_v56, %v710_v55  ;;  %v4966_v55 = vld [vmem:[%s5299_s9 + $0x348] sm:$0xff] }
 0x1f0   : > { %v6389_v46 = vpop.permute.xlu1 %1850  ;;  %v6391_v17 = vpop.permute.xlu0 %1845  ;;  %v713_v41 = vmul.f32 %v4964_v22, %v5804_v33  ;;  %v715_v4 = vmul.f32 %v4966_v55, %v5804_v33 }
 0x1f1   : > { %2170 = vperm.xlu1 %4589, %v836_v40   ;;  %2165 = vperm.xlu0 %4588, %v835_v20   ;;  %v6409_v40 = vadd.f32 %v6252_v32, %v1574_v1  ;;  %v2458_v20 = vmax.f32 %v2457_v29, %v6394_v21  ;;  %v4965_v1 = vld [vmem:[%s5299_s9 + $0x330] sm:$0xff]  ;;  %v1565_v29 = vmul.f32 %v6242_v10, %v5561_v62 }
 0x1f2   : > { %v712_v53 = vmul.f32 %v4965_v1, %v5804_v33  ;;  %v1576_v62 = vmul.f32 %v6335_v37, %v5609_v47  ;;  %v4967_v1 = vld [vmem:[%s5299_s9 + $0x340] sm:$0xff]  ;;  %v1566_v47 = vmul.f32 %v6242_v10, %v5559_v61 }
 0x1f3   : > { %v2474_v32 = vmax.f32 %v2473_v26, %v6409_v40  ;;  %v6438_v24 = vadd.f32 %v6203_v2, %v1565_v29  ;;  %v714_v2 = vmul.f32 %v4967_v1, %v5804_v33  ;;  %v4969_v1 = vld [vmem:[%s5299_s9 + $0x350] sm:$0xff] }
 0x1f4   : > { %v6411_v36 = vpop.permute.xlu1 %1860  ;;  %v6413_v45 = vpop.permute.xlu0 %1855  ;;  %v716_v61 = vmul.f32 %v4969_v1, %v5804_v33  ;;  %v4971_v1 = vld [vmem:[%s5299_s9 + $0x360] sm:$0xff] }
 0x1f5   : > { %2180 = vperm.xlu1 %4589, %v838_v27   ;;  %2175 = vperm.xlu0 %4588, %v837_v39   ;;  %v6431_v27 = vadd.f32 %v6191_v23, %v1564_v35  ;;  %v842_v39 = vadd.f32 %v5819_v56, %v713_v41  ;;  %v2475_v23 = vmax.f32 %v2474_v32, %v6422_v48 }
 0x1f6   : > { %v841_v35 = vadd.f32 %v5819_v56, %v712_v53  ;;  %v4968_v53 = vld [vmem:[%s5299_s9 + $0x358] sm:$0xff] }
 0x1f7   : > { %v2459_v26 = vmax.f32 %v2458_v20, %v6431_v27  ;;  %v1577_v20 = vmul.f32 %v6335_v37, %v5621_v58  ;;  %v717_v55 = vmul.f32 %v4968_v53, %v5804_v33 }
 0x1f8   : > { %v6433_v54 = vpop.permute.xlu1 %1870  ;;  %v6435_v22 = vpop.permute.xlu0 %1865 }
 0x1f9   : > { %2190 = vperm.xlu1 %4589, %v840_v9   ;;  %2185 = vperm.xlu0 %4588, %v839_v51   ;;  %v6453_v9 = vadd.f32 %v6272_v13, %v1576_v62  ;;  %v2460_v32 = vmax.f32 %v2459_v26, %v6438_v24  ;;  %v844_v51 = vadd.f32 %v5819_v56, %v715_v4 }
 0x1fa   : > { %v6466_v58 = vadd.f32 %v6289_v12, %v1577_v20  ;;  %v843_v62 = vadd.f32 %v5819_v56, %v714_v2  ;;  %v1567_v26 = vmul.f32 %v6242_v10, %v5571_v8  ;;  %v4970_v2 = vld [vmem:[%s5299_s9 + $0x368] sm:$0xff]  ;;  %v1578_v8 = vmul.f32 %v6335_v37, %v5619_v57 }
 0x1fb   : > { %9265 = vst [vmem:[#allocation114_spill] sm:$0xff] %v6453_v9  ;;  %v2476_v13 = vmax.f32 %v2475_v23, %v6453_v9  ;;  %v719_v20 = vmul.f32 %v4970_v2, %v5804_v33  ;;  %v1568_v57 = vmul.f32 %v6242_v10, %v5569_v7  ;;  %v9329_v9 = vld [vmem:[#allocation36_spill] sm:$0xff] }
 0x1fc   : > { %v6455_v41 = vpop.permute.xlu1 %1880  ;;  %v6457_v29 = vpop.permute.xlu0 %1875  ;;  %9266 = vst [vmem:[#allocation115_spill] sm:$0xff] %v6466_v58  ;;  %v6482_v12 = vadd.f32 %v6213_v3, %v1567_v26  ;;  %v718_v3 = vmul.f32 %v4971_v1, %v5804_v33  ;;  %v4973_v1 = vld [vmem:[%s5299_s9 + $0x370] sm:$0xff] }
 0x1fd   : > { %2200 = vperm.xlu1 %4589, %v842_v39   ;;  %2195 = vperm.xlu0 %4588, %v841_v35   ;;  %v6475_v39 = vadd.f32 %v6201_v42, %v1566_v47  ;;  %v846_v35 = vadd.f32 %v5819_v56, %v717_v55  ;;  %v2477_v42 = vmax.f32 %v2476_v13, %v6466_v58 }
 0x1fe   : > { %9268 = vst [vmem:[#allocation117_spill] sm:$0xff] %v6482_v12  ;;  %v845_v47 = vadd.f32 %v5819_v56, %v716_v61  ;;  %v4972_v61 = vld [vmem:[%s5299_s9 + $0x378] sm:$0xff]  ;;  %v720_v7 = vmul.f32 %v4973_v1, %v5804_v33  ;;  %v4975_v1 = vld [vmem:[%s5299_s9 + $0x380] sm:$0xff] }
 0x1ff   : > { %9267 = vst [vmem:[#allocation116_spill] sm:$0xff] %v6475_v39  ;;  %v2461_v23 = vmax.f32 %v2460_v32, %v6475_v39  ;;  %v1579_v32 = vmul.f32 %v6335_v37, %v5631_v6  ;;  %v721_v2 = vmul.f32 %v4972_v61, %v5804_v33  ;;  %v4988_v39 = vld [vmem:[%s5299_s9 + $0x3e8] sm:$0xff] }
 0x200   : > { %v6477_v4 = vpop.permute.xlu1 %1890  ;;  %v6479_v53 = vpop.permute.xlu0 %1885  ;;  %v849_v61 = vadd.f32 %v5819_v56, %v720_v7  ;;  %v1570_v7 = vmul.f32 %v6242_v10, %v5579_v15 }
 0x201   : > { %2210 = vperm.xlu1 %4589, %v844_v51   ;;  %2205 = vperm.xlu0 %4588, %v843_v62   ;;  %v6497_v51 = vadd.f32 %v6287_v50, %v1578_v8  ;;  %v2462_v13 = vmax.f32 %v2461_v23, %v6482_v12  ;;  %v848_v62 = vadd.f32 %v5819_v56, %v719_v20 }
 0x202   : > { %v6510_v6 = vadd.f32 %v6307_v43, %v1579_v32  ;;  %v847_v8 = vadd.f32 %v5819_v56, %v718_v3  ;;  %v1569_v23 = vmul.f32 %v6242_v10, %v5581_v16  ;;  %v850_v3 = vadd.f32 %v5819_v56, %v721_v2  ;;  %v4974_v32 = vld [vmem:[%s5299_s9 + $0x388] sm:$0xff] }
 0x203   : > { %9269 = vst [vmem:[#allocation118_spill] sm:$0xff] %v6497_v51  ;;  %v2478_v50 = vmax.f32 %v2477_v42, %v6497_v51  ;;  %v723_v16 = vmul.f32 %v4974_v32, %v5804_v33  ;;  %v4984_v51 = vld [vmem:[%s5299_s9 + $0x3c0] sm:$0xff] }
 0x204   : > { %v6499_v55 = vpop.permute.xlu1 %1900  ;;  %v6501_v26 = vpop.permute.xlu0 %1895  ;;  %9270 = vst [vmem:[#allocation119_spill] sm:$0xff] %v6510_v6  ;;  %v6526_v42 = vadd.f32 %v6223_v44, %v1569_v23  ;;  %v722_v44 = vmul.f32 %v4975_v1, %v5804_v33 }
 0x205   : > { %2220 = vperm.xlu1 %4589, %v846_v35   ;;  %2215 = vperm.xlu0 %4588, %v845_v47   ;;  %v6519_v35 = vadd.f32 %v6211_v49, %v1568_v57  ;;  %v1580_v49 = vmul.f32 %v6335_v37, %v5629_v5  ;;  %v2479_v57 = vmax.f32 %v2478_v50, %v6510_v6  ;;  %v4976_v50 = vld [vmem:[%s5299_s9 + $0x398] sm:$0xff]  ;;  %v4977_v6 = vld [vmem:[%s5299_s9 + $0x390] sm:$0xff] }
 0x206   : > { %9272 = vst [vmem:[#allocation121_spill] sm:$0xff] %v6526_v42 }
 0x207   : > { %9271 = vst [vmem:[#allocation120_spill] sm:$0xff] %v6519_v35  ;;  %v2463_v47 = vmax.f32 %v2462_v13, %v6519_v35  ;;  %v1581_v13 = vmul.f32 %v6335_v37, %v5641_v18  ;;  %v6544_v2 = vadd.f32 %v6305_v28, %v1580_v49  ;;  %v852_v18 = vadd.f32 %v5819_v56, %v723_v16 }
 0x208   : > { %v6521_v20 = vpop.permute.xlu1 %1910  ;;  %v6523_v43 = vpop.permute.xlu0 %1905  ;;  %v851_v49 = vadd.f32 %v5819_v56, %v722_v44 }
 0x209   : > { %2230 = vperm.xlu1 %4589, %v848_v62   ;;  %2225 = vperm.xlu0 %4588, %v847_v8   ;;  %v6541_v62 = vld [vmem:[%s6235_s20 + $0x2] ss:$0 sm:$0xff]  ;;  %9273 = vst [vmem:[#allocation122_spill] sm:$0xff] %v6544_v2  ;;  %v725_v8 = vmul.f32 %v4976_v50, %v5804_v33  ;;  %v2464_v32 = vmax.f32 %v2463_v47, %v6526_v42  ;;  %v9275_v47 = vld [vmem:[#allocation107_spill] sm:$0xff] }
 0x20a   : > { %v6557_v1 = vadd.f32 %v6321_v34, %v1581_v13  ;;  %v2480_v28 = vmax.f32 %v2479_v57, %v6544_v2  ;;  %v724_v50 = vmul.f32 %v4977_v6, %v5804_v33  ;;  %v1588_v15 = vmul.f32 %v6541_v62, %v5669_v59  ;;  %v4978_v13 = vld [vmem:[%s5299_s9 + $0x3a8] sm:$0xff] }
 0x20b   : > { %v1587_v10 = vmul.f32 %v6541_v62, %v5671_v60  ;;  %v6570_v34 = vadd.f32 %v9275_v47, %v1570_v7  ;;  %v854_v6 = vadd.f32 %v5819_v56, %v725_v8  ;;  %v727_v7 = vmul.f32 %v4978_v13, %v5804_v33  ;;  %v9280_v47 = vld [vmem:[#allocation8_spill] sm:$0xff] }
 0x20c   : > { %v6546_v23 = vpop.permute.xlu1 %1920  ;;  %v6548_v5 = vpop.permute.xlu0 %1915  ;;  %9274 = vst [vmem:[#allocation123_spill] sm:$0xff] %v6557_v1  ;;  %v6581_v59 = vadd.f32 %v6389_v46, %v1588_v15  ;;  %v2481_v2 = vmax.f32 %v2480_v28, %v6557_v1  ;;  %v853_v8 = vadd.f32 %v5819_v56, %v724_v50 }
 0x20d   : > { %2240 = vperm.xlu1 %4589, %v850_v3   ;;  %2235 = vperm.xlu0 %4588, %v849_v61   ;;  %9276 = vst [vmem:[#allocation107_spill] sm:$0xff] %v6570_v34  ;;  %v9277_v3 = vld [vmem:[#allocation14_spill] sm:$0xff]  ;;  %v2465_v44 = vmax.f32 %v2464_v32, %v6570_v34  ;;  %v6584_v60 = vadd.f32 %v6391_v17, %v1587_v10  ;;  %v6619_v34 = vstv %s6563_s24 }
 0x20e   : > { %v1589_v16 = vmul.f32 %v6541_v62, %v9277_v3  ;;  %9278 = vst [vmem:[#allocation14_spill] sm:$0xff] %v6581_v59  ;;  %v1582_v3 = vmul.f32 %v6335_v37, %v9280_v47  ;;  %v4979_v32 = vld [vmem:[%s5299_s9 + $0x3a0] sm:$0xff] }
 0x20f   : > { %9279 = vst [vmem:[#allocation124_spill] sm:$0xff] %v6584_v60  ;;  %v726_v46 = vmul.f32 %v4979_v32, %v5804_v33  ;;  %v2493_v50 = vmax.f32 %v6584_v60, %v6581_v59 }
 0x210   : > { %v6574_v57 = vpop.permute.xlu1 %1930  ;;  %v6576_v61 = vpop.permute.xlu0 %1925  ;;  %v6595_v17 = vadd.f32 %v6413_v45, %v1589_v16  ;;  %v6600_v10 = vadd.f32 %v6319_v52, %v1582_v3  ;;  %v856_v45 = vadd.f32 %v5819_v56, %v727_v7  ;;  %v4980_v16 = vld [vmem:[%s5299_s9 + $0x3b8] sm:$0xff] }
 0x211   : > { %2250 = vperm.xlu1 %4589, %v852_v18   ;;  %2245 = vperm.xlu0 %4588, %v851_v49   ;;  %v9282_v18 = vld [vmem:[#allocation10_spill] sm:$0xff]  ;;  %v2466_v49 = vrot.slane %v2465_v44, 4  ;;  %v729_v47 = vmul.f32 %v4980_v16, %v5804_v33  ;;  %v855_v3 = vadd.f32 %v5819_v56, %v726_v46  ;;  %v4982_v16 = vld [vmem:[%s5299_s9 + $0x10] sm:$0xff] }
 0x212   : > { %9281 = vst [vmem:[#allocation8_spill] sm:$0xff] %v6595_v17  ;;  %v1583_v15 = vmul.f32 %v6335_v37, %v9282_v18  ;;  %9283 = vst [vmem:[#allocation10_spill] sm:$0xff] %v6600_v10  ;;  %v2482_v52 = vmax.f32 %v2481_v2, %v6600_v10  ;;  %v4981_v18 = vld [vmem:[%s5299_s9 + $0x3b0] sm:$0xff]  ;;  %v2494_v60 = vmax.f32 %v2493_v50, %v6595_v17 }
 0x213   : > { %v728_v1 = vmul.f32 %v4981_v18, %v5804_v33  ;;  %v9286_v2 = vld [vmem:[#allocation16_spill] sm:$0xff]  ;;  %v2467_v18 = vmax.f32 %v2465_v44, %v2466_v49  ;;  %v858_v50 = vadd.f32 %v5819_v56, %v729_v47  ;;  %v730_v44 = vmul.f32 %v4984_v51, %v5804_v33 }
 0x214   : > { %v6602_v13 = vpop.permute.xlu1 %1940  ;;  %v6604_v28 = vpop.permute.xlu0 %1935  ;;  %v6612_v32 = vadd.f32 %v6342_v38, %v1583_v15  ;;  %v6626_v38 = vmul.f32 %v4982_v16, %v6619_v34  ;;  %v9290_v16 = vld [vmem:[#allocation9_spill] sm:$0xff] }
 0x215   : > { %2260 = vperm.xlu1 %4589, %v854_v6   ;;  %2255 = vperm.xlu0 %4588, %v853_v8   ;;  %v9285_v6 = vld [vmem:[#allocation13_spill] sm:$0xff]  ;;  %v1591_v8 = vmul.f32 %v6541_v62, %v9286_v2  ;;  %v1584_v59 = vmul.f32 %v6335_v37, %v9290_v16  ;;  %v857_v2 = vadd.f32 %v5819_v56, %v728_v1  ;;  %v9294_v1 = vld [vmem:[#allocation15_spill] sm:$0xff] }
 0x216   : > { %9284 = vst [vmem:[#allocation125_spill] sm:$0xff] %v6612_v32  ;;  %v1590_v7 = vmul.f32 %v6541_v62, %v9285_v6  ;;  %v4983_v6 = vld [vmem:[%s5299_s9 + $0x3c8] sm:$0xff]  ;;  %v2483_v35 = vmax.f32 %v2482_v52, %v6612_v32  ;;  %v9293_v52 = vld [vmem:[#allocation12_spill] sm:$0xff]  ;;  %v1592_v51 = vmul.f32 %v6541_v62, %v9294_v1  ;;  %v9295_v16 = vld [vmem:[#allocation17_spill] sm:$0xff] }
 0x217   : > { %v731_v17 = vmul.f32 %v4983_v6, %v5804_v33  ;;  %v6662_v32 = vmul.f32 %v6541_v62, %v9295_v16 }
 0x218   : > { %v6630_v46 = vpop.permute.xlu1 %1950  ;;  %v6632_v15 = vpop.permute.xlu0 %1945  ;;  %v6635_v10 = vadd.f32 %v6411_v36, %v1590_v7  ;;  %v4985_v36 = vld [vmem:[%s5299_s9] sm:$0xff]  ;;  %v6653_v7 = vadd.f32 %v6435_v22, %v1591_v8 }
 0x219   : > { %9287 = vst [vmem:[#allocation13_spill] sm:$0xff] %v6630_v46  ;;  %9288 = vst [vmem:[#allocation16_spill] sm:$0xff] %v6632_v15  ;;  %2270 = vperm.xlu1 %4589, %v856_v45   ;;  %2265 = vperm.xlu0 %4588, %v855_v3   ;;  %v6648_v49 = vmul.f32 %v4985_v36, %v6619_v34  ;;  %v9291_v45 = vld [vmem:[#allocation11_spill] sm:$0xff]  ;;  %v1585_v3 = vmul.f32 %v6335_v37, %v9293_v52  ;;  %v9299_v8 = vld [vmem:[#allocation18_spill] sm:$0xff] }
 0x21a   : > { %9289 = vst [vmem:[#allocation126_spill] sm:$0xff] %v6635_v10  ;;  %v1586_v47 = vmul.f32 %v6335_v37, %v9291_v45  ;;  %9292 = vst [vmem:[#allocation9_spill] sm:$0xff] %v6653_v7  ;;  %v2495_v6 = vmax.f32 %v2494_v60, %v6635_v10  ;;  %v6665_v36 = vadd.f32 %v6340_v14, %v1584_v59  ;;  %v2468_v10 = vrot.slane %v2467_v18, 2  ;;  %v4986_v52 = vld [vmem:[%s5299_s9 + $0x3d8] sm:$0xff]  ;;  %v9311_v15 = vld [vmem:[#allocation26_spill] sm:$0xff] }
 0x21b   : > { %v1593_v60 = vmul.f32 %v6541_v62, %v9299_v8  ;;  %v860_v37 = vadd.f32 %v5819_v56, %v731_v17  ;;  %v733_v1 = vmul.f32 %v4986_v52, %v5804_v33  ;;  %v6677_v16 = vadd.f32 %v6368_v31, %v1585_v3  ;;  %v9301_v8 = vld [vmem:[#allocation19_spill] sm:$0xff]  ;;  %v9302_v17 = vld [vmem:[#allocation20_spill] sm:$0xff]  ;;  %v9303_v52 = vld [vmem:[#allocation21_spill] sm:$0xff] }
 0x21c   : > { %9296 = vst [vmem:[#allocation11_spill] sm:$0xff] %v6665_v36  ;;  %v6667_v45 = vpop.permute.xlu1 %1960  ;;  %v6669_v22 = vpop.permute.xlu0 %1955  ;;  %v2484_v14 = vmax.f32 %v2483_v35, %v6665_v36  ;;  %v859_v59 = vadd.f32 %v5819_v56, %v730_v44  ;;  %v6689_v46 = vmul.f32 %v6541_v62, %v9302_v17  ;;  %v6693_v31 = vmul.f32 %v6541_v62, %v9303_v52  ;;  %v9305_v3 = vld [vmem:[#allocation23_spill] sm:$0xff]  ;;  %v9307_v17 = vld [vmem:[#allocation25_spill] sm:$0xff]  ;;  %v4523_v52 = vld [vmem:[%s6235_s20 + $0x3] ss:$0 sm:$0xff] }
 0x21d   : > { %9297 = vst [vmem:[#allocation12_spill] sm:$0xff] %v6667_v45  ;;  %9298 = vst [vmem:[#allocation15_spill] sm:$0xff] %v6669_v22  ;;  %2280 = vperm.xlu1 %4589, %v858_v50   ;;  %2275 = vperm.xlu0 %4588, %v857_v2   ;;  %v4987_v45 = vld [vmem:[%s5299_s9 + $0x3d0] sm:$0xff]  ;;  %v6685_v50 = vmul.f32 %v6541_v62, %v9301_v8  ;;  %v2496_v35 = vmax.f32 %v2495_v6, %v6653_v7  ;;  %v9304_v2 = vld [vmem:[#allocation22_spill] sm:$0xff] }
 0x21e   : > { %9300 = vst [vmem:[#allocation17_spill] sm:$0xff] %v6677_v16  ;;  %v732_v22 = vmul.f32 %v4987_v45, %v5804_v33  ;;  %v6698_v44 = vmul.f32 %v6541_v62, %v9304_v2  ;;  %v6702_v45 = vmul.f32 %v6541_v62, %v9305_v3  ;;  %v9306_v8 = vld [vmem:[#allocation24_spill] sm:$0xff]  ;;  %v6710_v12 = vmul.f32 %v6541_v62, %v9307_v17 }
 0x21f   : > { %v6706_v36 = vmul.f32 %v6541_v62, %v9306_v8  ;;  %v2469_v2 = vmax.f32 %v2467_v18, %v2468_v10  ;;  %v6718_v7 = vadd.f32 %v6433_v54, %v1592_v51  ;;  %v862_v3 = vadd.f32 %v5819_v56, %v733_v1  ;;  %v9312_v54 = vld [vmem:[#allocation27_spill] sm:$0xff]  ;;  %v9313_v51 = vld [vmem:[#allocation28_spill] sm:$0xff] }
 0x220   : > { %v6713_v58 = vpop.permute.xlu1 %1970  ;;  %v6715_v6 = vpop.permute.xlu0 %1965  ;;  %v735_v8 = vmul.f32 %v4988_v39, %v5804_v33  ;;  %v6725_v42 = vmul.f32 %v6541_v62, %v9311_v15  ;;  %v2485_v17 = vmax.f32 %v2484_v14, %v6677_v16  ;;  %v6734_v18 = vmul.f32 %v4523_v52, %v9312_v54 }
 0x221   : > { %9308 = vst [vmem:[#allocation18_spill] sm:$0xff] %v6713_v58  ;;  %9309 = vst [vmem:[#allocation19_spill] sm:$0xff] %v6715_v6  ;;  %2290 = vperm.xlu1 %4589, %v860_v37   ;;  %2285 = vperm.xlu0 %4588, %v859_v59   ;;  %v861_v58 = vadd.f32 %v5819_v56, %v732_v22  ;;  %v4989_v6 = vld [vmem:[%s5299_s9 + $0x3e0] sm:$0xff]  ;;  %v6737_v39 = vmul.f32 %v4523_v52, %v9313_v51  ;;  %v9315_v37 = vld [vmem:[#allocation29_spill] sm:$0xff] }
 0x222   : > { %9310 = vst [vmem:[#allocation20_spill] sm:$0xff] %v6718_v7  ;;  %v734_v10 = vmul.f32 %v4989_v6, %v5804_v33  ;;  %v6740_v62 = vadd.f32 %v6457_v29, %v1593_v60  ;;  %v2497_v15 = vmax.f32 %v2496_v35, %v6718_v7  ;;  %v6744_v1 = vmul.f32 %v4523_v52, %v9315_v37  ;;  %v9316_v22 = vld [vmem:[#allocation30_spill] sm:$0xff]  ;;  %v9317_v59 = vld [vmem:[#allocation31_spill] sm:$0xff]  ;;  %v9322_v29 = vld [vmem:[#allocation32_spill] sm:$0xff] }
 0x223   : > { %v6747_v14 = vmul.f32 %v4523_v52, %v9316_v22  ;;  %v6750_v6 = vmul.f32 %v4523_v52, %v9317_v59  ;;  %v6753_v54 = vadd.f32 %v6366_v25, %v1586_v47  ;;  %v6760_v60 = vmul.f32 %v4523_v52, %v9322_v29  ;;  %v4990_v7 = vld [vmem:[%s5299_s9 + $0x3f8] sm:$0xff] }
 0x224   : > { %9314 = vst [vmem:[#allocation21_spill] sm:$0xff] %v6740_v62  ;;  %v6755_v51 = vpop.permute.xlu1 %1980  ;;  %v6757_v16 = vpop.permute.xlu0 %1975  ;;  %v2470_v35 = vrot.slane %v2469_v2, 1  ;;  %v864_v37 = vadd.f32 %v5819_v56, %v735_v8  ;;  %v737_v22 = vmul.f32 %v4990_v7, %v5804_v33  ;;  %v9324_v59 = vld [vmem:[#allocation33_spill] sm:$0xff]  ;;  %v863_v47 = vadd.f32 %v5819_v56, %v734_v10  ;;  %v9327_v8 = vld [vmem:[#allocation35_spill] sm:$0xff] }
 0x225   : > { %9318 = vst [vmem:[#allocation22_spill] sm:$0xff] %v6750_v6  ;;  %9319 = vst [vmem:[#allocation23_spill] sm:$0xff] %v6753_v54  ;;  %2300 = vperm.xlu1 %4589, %v862_v3   ;;  %v6766_v6 = vmul.f32 %v4523_v52, %v9324_v59  ;;  %v2486_v25 = vmax.f32 %v2485_v17, %v6753_v54  ;;  %2295 = vperm.xlu0 %4588, %v861_v58   ;;  %v9332_v58 = vld [vmem:[#allocation38_spill] sm:$0xff]  ;;  %v9333_v54 = vld [vmem:[#allocation39_spill] sm:$0xff] }
 0x226   : > { %9320 = vst [vmem:[#allocation24_spill] sm:$0xff] %v6755_v51  ;;  %9321 = vst [vmem:[#allocation25_spill] sm:$0xff] %v6757_v16  ;;  %v4991_v51 = vld [vmem:[%s5299_s9 + $0x3f0] sm:$0xff]  ;;  %v9326_v16 = vld [vmem:[#allocation34_spill] sm:$0xff]  ;;  %v6779_v7 = vmul.f32 %v4523_v52, %v9329_v9  ;;  %v2498_v59 = vmax.f32 %v2497_v15, %v6740_v62  ;;  %v6786_v10 = vmul.f32 %v4523_v52, %v9332_v58 }
 0x227   : > { %9323 = vst [vmem:[#allocation26_spill] sm:$0xff] %v6760_v60  ;;  %9325 = vst [vmem:[#allocation27_spill] sm:$0xff] %v6766_v6  ;;  %v736_v29 = vmul.f32 %v4991_v51, %v5804_v33  ;;  %v6773_v3 = vmul.f32 %v4523_v52, %v9326_v16  ;;  %v6776_v60 = vmul.f32 %v4523_v52, %v9327_v8  ;;  %v9331_v6 = vld [vmem:[#allocation37_spill] sm:$0xff]  ;;  %v9335_v16 = vld [vmem:[#allocation40_spill] sm:$0xff] }
 0x228   : > { %9330 = vst [vmem:[#allocation29_spill] sm:$0xff] %v6779_v7  ;;  %v6783_v17 = vmul.f32 %v4523_v52, %v9331_v6  ;;  %v6789_v33 = vmul.f32 %v4523_v52, %v9333_v54  ;;  %v6792_v51 = vmul.f32 %v4523_v52, %v9335_v16  ;;  %v4524_v8 = vld [vmem:[%s6235_s20 + $0x4] ss:$0 sm:$0xff]  ;;  %v6797_v9 = vpop.permute.xlu0 %1985  ;;  %v6799_v7 = vmax.f32 %v2469_v2, %v2470_v35  ;;  %v4992_v58 = vld [vmem:[%s5299_s9 + $0x8] sm:$0xff]  ;;  %v9340_v62 = vld [vmem:[#allocation41_spill] sm:$0xff] }
 0x229   : > { %9328 = vst [vmem:[#allocation28_spill] sm:$0xff] %v6776_v60  ;;  %v6795_v60 = vpop.permute.xlu1 %1990  ;;  %9338 = vst [vmem:[#allocation33_spill] sm:$0xff] %v6797_v9  ;;  %v6803_v15 = vadd.f32 %v6455_v41, %v6662_v32  ;;  %2310 = vperm.xlu1 %4589, %v864_v37   ;;  %v866_v6 = vadd.f32 %v5819_v56, %v737_v22  ;;  %v3005_v54 = vmul.f32 %v4992_v58, %v6619_v34  ;;  %v9342_v35 = vld [vmem:[#allocation42_spill] sm:$0xff]  ;;  %v9344_v41 = vld [vmem:[#allocation43_spill] sm:$0xff] }
 0x22a   : > { %9334 = vst [vmem:[#allocation30_spill] sm:$0xff] %v6789_v33  ;;  %9336 = vst [vmem:[#allocation31_spill] sm:$0xff] %v6792_v51  ;;  %v6809_v16 = vmul.f32 %v4523_v52, %v9340_v62  ;;  %v2487_v33 = vrot.slane %v2486_v25, 4  ;;  %2305 = vperm.xlu0 %4588, %v863_v47   ;;  %v6813_v2 = vstv %s6731_s25  ;;  %v6816_v9 = vmul.f32 %v4523_v52, %v9342_v35  ;;  %v9346_v22 = vld [vmem:[#allocation44_spill] sm:$0xff]  ;;  %v9347_v47 = vld [vmem:[#allocation45_spill] sm:$0xff] }
 0x22b   : > { %9337 = vst [vmem:[#allocation32_spill] sm:$0xff] %v6795_v60  ;;  %9339 = vst [vmem:[#allocation34_spill] sm:$0xff] %v6803_v15  ;;  %v865_v60 = vadd.f32 %v5819_v56, %v736_v29  ;;  %v6819_v32 = vmul.f32 %v4524_v8, %v9344_v41  ;;  %v6823_v37 = vadd.f32 %v6479_v53, %v6689_v46  ;;  %v9349_v56 = vld [vmem:[#allocation46_spill] sm:$0xff]  ;;  %v9350_v52 = vld [vmem:[#allocation47_spill] sm:$0xff] }
 0x22c   : > { %9341 = vst [vmem:[#allocation35_spill] sm:$0xff] %v6809_v16  ;;  %9343 = vst [vmem:[#allocation36_spill] sm:$0xff] %v6816_v9  ;;  %v2499_v62 = vmax.f32 %v2498_v59, %v6803_v15  ;;  %v6827_v58 = vmul.f32 %v4524_v8, %v9346_v22  ;;  %v6830_v16 = vmul.f32 %v4524_v8, %v9347_v47  ;;  %v6840_v9 = vpop.permute.xlu0 %1995  ;;  %v9354_v53 = vld [vmem:[#allocation48_spill] sm:$0xff]  ;;  %v4993_v22 = vld [vmem:[%s5299_s9 + $0x18] sm:$0xff] }
 0x22d   : > { %9345 = vst [vmem:[#allocation37_spill] sm:$0xff] %v6823_v37  ;;  %v6833_v29 = vmul.f32 %v4524_v8, %v9349_v56  ;;  %v6836_v35 = vmul.f32 %v4524_v8, %v9350_v52  ;;  %v6838_v41 = vpop.permute.xlu1 %2000  ;;  %9353 = vst [vmem:[#allocation41_spill] sm:$0xff] %v6840_v9  ;;  %v6843_v46 = vmul.f32 %v4524_v8, %v9354_v53  ;;  %2320 = vperm.xlu1 %4589, %v866_v6   ;;  %v9356_v15 = vld [vmem:[#allocation108_spill] sm:$0xff]  ;;  %v9357_v51 = vld [vmem:[#allocation49_spill] sm:$0xff] }
 0x22e   : > { %9348 = vst [vmem:[#allocation38_spill] sm:$0xff] %v6830_v16  ;;  %9352 = vst [vmem:[#allocation40_spill] sm:$0xff] %v6838_v41  ;;  %v3134_v59 = vadd.f32 %v6813_v2, %v3005_v54  ;;  %v3007_v47 = vmul.f32 %v4993_v22, %v6619_v34  ;;  %v2620_v56 = vsub.f32 %v9356_v15, %v6799_v7  ;;  %2315 = vperm.xlu0 %4588, %v865_v60   ;;  %v9359_v53 = vld [vmem:[#allocation109_spill] sm:$0xff]  ;;  %v9360_v54 = vld [vmem:[#allocation50_spill] sm:$0xff] }
 0x22f   : > { %9351 = vst [vmem:[#allocation39_spill] sm:$0xff] %v6836_v35  ;;  %9355 = vst [vmem:[#allocation42_spill] sm:$0xff] %v6843_v46  ;;  %v6851_v52 = vmul.f32 %v4524_v8, %v9357_v51  ;;  %v2488_v35 = vmax.f32 %v2486_v25, %v2487_v33  ;;  %v3133_v41 = vadd.f32 %v6813_v2, %v6648_v49  ;;  %v9362_v22 = vld [vmem:[#allocation51_spill] sm:$0xff]  ;;  %v9364_v15 = vld [vmem:[#allocation52_spill] sm:$0xff] }
 0x230   : > { %v2619_v6 = vsub.f32 %v9359_v53, %v6799_v7  ;;  %v6858_v9 = vmul.f32 %v4524_v8, %v9360_v54  ;;  %v6861_v46 = vmul.f32 %v4524_v8, %v9362_v22  ;;  %v6864_v16 = vmul.f32 %v4524_v8, %v9364_v15  ;;  %v9366_v25 = vld [vmem:[#allocation53_spill] sm:$0xff]  ;;  %v9368_v33 = vld [vmem:[#allocation54_spill] sm:$0xff]  ;;  %v9372_v54 = vld [vmem:[#allocation56_spill] sm:$0xff] }
 0x231   : > { %9358 = vst [vmem:[#allocation43_spill] sm:$0xff] %v6851_v52  ;;  %v2500_v51 = vmax.f32 %v2499_v62, %v6823_v37  ;;  %v6868_v60 = vmul.f32 %v4524_v8, %v9366_v25  ;;  %v6871_v49 = vmul.f32 %v4524_v8, %v9368_v33  ;;  %v9370_v52 = vld [vmem:[#allocation55_spill] sm:$0xff]  ;;  %v6879_v22 = vpop.permute.xlu1 %2010  ;;  %v6884_v15 = vld [vmem:[%s6235_s20 + $0x5] ss:$0 sm:$0xff]  ;;  %v6888_v62 = vadd.f32 %v6477_v4, %v6685_v50  ;;  %v9375_v37 = vld [vmem:[#allocation57_spill] sm:$0xff] }
 0x232   : > { %9361 = vst [vmem:[#allocation44_spill] sm:$0xff] %v6858_v9  ;;  %9363 = vst [vmem:[#allocation45_spill] sm:$0xff] %v6861_v46  ;;  %v6874_v53 = vmul.f32 %v4524_v8, %v9370_v52  ;;  %v6877_v9 = vmul.f32 %v4524_v8, %v9372_v54  ;;  %v6881_v46 = vpop.permute.xlu0 %2005  ;;  %3268 = vperm.xlu1 %4589, %v3134_v59   ;;  %v3136_v25 = vadd.f32 %v6813_v2, %v3007_v47  ;;  %v4994_v33 = vld [vmem:[%s5299_s9 + $0x28] sm:$0xff]  ;;  %v9377_v50 = vld [vmem:[#allocation58_spill] sm:$0xff] }
 0x233   : > { %9365 = vst [vmem:[#allocation46_spill] sm:$0xff] %v6864_v16  ;;  %9367 = vst [vmem:[#allocation47_spill] sm:$0xff] %v6868_v60  ;;  %v3009_v52 = vmul.f32 %v4994_v33, %v6619_v34  ;;  %v2489_v60 = vrot.slane %v2488_v35, 2  ;;  %3263 = vperm.xlu0 %4588, %v3133_v41   ;;  %v3135_v54 = vadd.f32 %v6813_v2, %v6626_v38  ;;  %v2747_v16 = vmul.f32 1.442695, %v2619_v6  ;;  %v9382_v33 = vld [vmem:[#allocation60_spill] sm:$0xff] }
 0x234   : > { %9369 = vst [vmem:[#allocation48_spill] sm:$0xff] %v6871_v49  ;;  %9371 = vst [vmem:[#allocation108_spill] sm:$0xff] %v6874_v53  ;;  %v2749_v53 = vmul.f32 1.442695, %v2620_v56  ;;  %v6898_v4 = vmul.f32 %v4524_v8, %v9375_v37  ;;  %v6901_v59 = vmul.f32 %v4524_v8, %v9377_v50  ;;  %v6905_v47 = vadd.f32 %v6501_v26, %v6698_v44  ;;  %v9380_v56 = vld [vmem:[#allocation59_spill] sm:$0xff]  ;;  %v9384_v37 = vld [vmem:[#allocation61_spill] sm:$0xff] }
 0x235   : > { %9373 = vst [vmem:[#allocation49_spill] sm:$0xff] %v6877_v9  ;;  %9374 = vst [vmem:[#allocation109_spill] sm:$0xff] %v6888_v62  ;;  %v4995_v9 = vld [vmem:[%s5299_s9 + $0x20] sm:$0xff]  ;;  %v2501_v41 = vmax.f32 %v2500_v51, %v6888_v62  ;;  %v6910_v38 = vmul.f32 %v6884_v15, %v9380_v56  ;;  %v6918_v6 = vmul.f32 %v6884_v15, %v9384_v37  ;;  %v6920_v8 = vpop.permute.xlu1 %2020  ;;  %v9417_v62 = vld [vmem:[#allocation75_spill] sm:$0xff] }
 0x236   : > { %v3008_v49 = vmul.f32 %v4995_v9, %v6619_v34  ;;  %9376 = vst [vmem:[#allocation50_spill] sm:$0xff] %v6898_v4  ;;  %9378 = vst [vmem:[#allocation51_spill] sm:$0xff] %v6901_v59  ;;  %v6914_v9 = vmul.f32 %v6884_v15, %v9382_v33  ;;  %v6922_v50 = vpop.permute.xlu0 %2015  ;;  %v9386_v26 = vld [vmem:[#allocation110_spill] sm:$0xff]  ;;  %3278 = vperm.xlu1 %4589, %v3136_v25   ;;  %v3138_v56 = vadd.f32 %v6813_v2, %v3009_v52  ;;  %v4996_v33 = vld [vmem:[%s5299_s9 + $0x38] sm:$0xff] }
 0x237   : > { %9379 = vst [vmem:[#allocation52_spill] sm:$0xff] %v6905_v47  ;;  %9381 = vst [vmem:[#allocation53_spill] sm:$0xff] %v6910_v38  ;;  %v2621_v44 = vsub.f32 %v9386_v26, %v6799_v7  ;;  %v9387_v51 = vld [vmem:[#allocation62_spill] sm:$0xff]  ;;  %v3011_v59 = vmul.f32 %v4996_v33, %v6619_v34  ;;  %4590 = vpow2.f32 %v2749_v53  ;;  %v2490_v37 = vmax.f32 %v2488_v35, %v2489_v60  ;;  %v9389_v26 = vld [vmem:[#allocation63_spill] sm:$0xff] }
 0x238   : > { %9383 = vst [vmem:[#allocation54_spill] sm:$0xff] %v6914_v9  ;;  %9385 = vst [vmem:[#allocation55_spill] sm:$0xff] %v6918_v6  ;;  %v6928_v4 = vmul.f32 %v6884_v15, %v9387_v51  ;;  %3273 = vperm.xlu0 %4588, %v3135_v54   ;;  %v3137_v6 = vadd.f32 %v6813_v2, %v3008_v49  ;;  %v4997_v9 = vld [vmem:[%s5299_s9 + $0x30] sm:$0xff]  ;;  %4592 = vpow2.f32 %v2747_v16  ;;  %v9395_v60 = vld [vmem:[#allocation66_spill] sm:$0xff] }
 0x239   : > { %v3010_v38 = vmul.f32 %v4997_v9, %v6619_v34  ;;  %v6938_v51 = vmul.f32 %v6884_v15, %v9389_v26  ;;  %v9391_v25 = vld [vmem:[#allocation64_spill] sm:$0xff]  ;;  %v2502_v35 = vmax.f32 %v2501_v41, %v6905_v47  ;;  %v6951_v49 = vmul.f32 %v6884_v15, %v9395_v60  ;;  %v9397_v54 = vld [vmem:[#allocation67_spill] sm:$0xff]  ;;  %v6957_v9 = vpop.permute.xlu1 %2030  ;;  %v9405_v47 = vld [vmem:[#allocation70_spill] sm:$0xff] }
 0x23a   : > { %9388 = vst [vmem:[#allocation56_spill] sm:$0xff] %v6928_v4  ;;  %v6942_v52 = vmul.f32 %v6884_v15, %v9391_v25  ;;  %v9393_v4 = vld [vmem:[#allocation65_spill] sm:$0xff]  ;;  %v6955_v16 = vmul.f32 %v6884_v15, %v9397_v54  ;;  %v6959_v33 = vpop.permute.xlu0 %2025  ;;  %v9399_v26 = vld [vmem:[#allocation111_spill] sm:$0xff]  ;;  %v6969_v60 = vadd.f32 %v6499_v55, %v6693_v31  ;;  %3288 = vperm.xlu1 %4589, %v3138_v56   ;;  %v6990_v56 = vld [vmem:[%s6235_s20 + $0x6] ss:$0 sm:$0xff] }
 0x23b   : > { %9390 = vst [vmem:[#allocation57_spill] sm:$0xff] %v6938_v51  ;;  %v6946_v53 = vmul.f32 %v6884_v15, %v9393_v4  ;;  %9396 = vst [vmem:[#allocation60_spill] sm:$0xff] %v6951_v49  ;;  %v2622_v25 = vsub.f32 %v9399_v26, %v6799_v7  ;;  %v2751_v4 = vmul.f32 1.442695, %v2621_v44  ;;  %v3140_v54 = vadd.f32 %v6813_v2, %v3011_v59  ;;  %v9403_v51 = vld [vmem:[#allocation69_spill] sm:$0xff]  ;;  %v9407_v31 = vld [vmem:[#allocation71_spill] sm:$0xff] }
 0x23c   : > { %9392 = vst [vmem:[#allocation58_spill] sm:$0xff] %v6942_v52  ;;  %9398 = vst [vmem:[#allocation61_spill] sm:$0xff] %v6955_v16  ;;  %v4998_v16 = vld [vmem:[%s5299_s9 + $0x48] sm:$0xff]  ;;  %v6976_v52 = vmul.f32 %v6884_v15, %v9403_v51  ;;  %v2491_v26 = vrot.slane %v2490_v37, 1  ;;  %3283 = vperm.xlu0 %4588, %v3137_v6   ;;  %v3139_v44 = vadd.f32 %v6813_v2, %v3010_v38  ;;  %v9410_v6 = vld [vmem:[#allocation72_spill] sm:$0xff] }
 0x23d   : > { %9394 = vst [vmem:[#allocation59_spill] sm:$0xff] %v6946_v53  ;;  %v9400_v53 = vld [vmem:[#allocation68_spill] sm:$0xff]  ;;  %9402 = vst [vmem:[#allocation62_spill] sm:$0xff] %v6969_v60  ;;  %v3013_v49 = vmul.f32 %v4998_v16, %v6619_v34  ;;  %v6983_v55 = vmul.f32 %v6884_v15, %v9405_v47  ;;  %v6987_v59 = vmul.f32 %v6884_v15, %v9407_v31  ;;  %4594 = vpow2.f32 %v2751_v4 }
 0x23e   : > { %v6965_v41 = vmul.f32 %v6884_v15, %v9400_v53  ;;  %9404 = vst [vmem:[#allocation63_spill] sm:$0xff] %v6976_v52  ;;  %v4999_v53 = vld [vmem:[%s5299_s9 + $0x40] sm:$0xff]  ;;  %v6994_v51 = vadd.f32 %v6523_v43, %v6706_v36  ;;  %v2503_v38 = vmax.f32 %v2502_v35, %v6969_v60  ;;  %v6999_v16 = vmul.f32 %v6884_v15, %v9410_v6  ;;  %v7003_v47 = vpop.permute.xlu0 %2035  ;;  %v9412_v31 = vld [vmem:[#allocation112_spill] sm:$0xff] }
 0x23f   : > { %9406 = vst [vmem:[#allocation64_spill] sm:$0xff] %v6983_v55  ;;  %9408 = vst [vmem:[#allocation65_spill] sm:$0xff] %v6987_v59  ;;  %v2753_v52 = vmul.f32 1.442695, %v2622_v25  ;;  %v2623_v59 = vsub.f32 %v9412_v31, %v6799_v7  ;;  %v9413_v55 = vld [vmem:[#allocation73_spill] sm:$0xff]  ;;  %v9415_v36 = vld [vmem:[#allocation74_spill] sm:$0xff]  ;;  %3298 = vperm.xlu1 %4589, %v3140_v54   ;;  %v3142_v6 = vadd.f32 %v6813_v2, %v3013_v49 }
 0x240   : > { %9401 = vst [vmem:[#allocation110_spill] sm:$0xff] %v6965_v41  ;;  %v3012_v41 = vmul.f32 %v4999_v53, %v6619_v34  ;;  %9409 = vst [vmem:[#allocation66_spill] sm:$0xff] %v6994_v51  ;;  %v7001_v53 = vpop.permute.xlu1 %2040  ;;  %v7009_v43 = vmul.f32 %v6884_v15, %v9413_v55  ;;  %v7013_v35 = vmul.f32 %v6884_v15, %v9415_v36  ;;  %3293 = vperm.xlu0 %4588, %v3139_v44   ;;  %v5001_v31 = vld [vmem:[%s5299_s9 + $0x50] sm:$0xff]  ;;  %v9427_v44 = vld [vmem:[#allocation79_spill] sm:$0xff] }
 0x241   : > { %9411 = vst [vmem:[#allocation67_spill] sm:$0xff] %v6999_v16  ;;  %v5000_v16 = vld [vmem:[%s5299_s9 + $0x58] sm:$0xff]  ;;  %v7020_v25 = vmul.f32 %v6990_v56, %v9417_v62  ;;  %v7022_v4 = vmax.f32 %v2490_v37, %v2491_v26  ;;  %v7027_v15 = vpop.eup %4590  ;;  %v9420_v54 = vld [vmem:[#allocation76_spill] sm:$0xff]  ;;  %v9424_v62 = vld [vmem:[#allocation78_spill] sm:$0xff]  ;;  %4596 = vpow2.f32 %v2753_v52 }
 0x242   : > { %9414 = vst [vmem:[#allocation111_spill] sm:$0xff] %v7009_v43  ;;  %9416 = vst [vmem:[#allocation68_spill] sm:$0xff] %v7013_v35  ;;  %v3015_v60 = vmul.f32 %v5000_v16, %v6619_v34  ;;  %v3141_v55 = vadd.f32 %v6813_v2, %v3012_v41  ;;  %v3014_v43 = vmul.f32 %v5001_v31, %v6619_v34  ;;  %v9422_v16 = vld [vmem:[#allocation77_spill] sm:$0xff]  ;;  %v7042_v26 = vpop.eup %4592 }
 0x243   : > { %9418 = vst [vmem:[#allocation69_spill] sm:$0xff] %v7020_v25  ;;  %9419 = vst [vmem:[#allocation70_spill] sm:$0xff] %v7027_v15  ;;  %v7031_v49 = vmul.f32 %v6990_v56, %v9420_v54  ;;  %v7035_v36 = vmul.f32 %v6990_v56, %v9422_v16  ;;  %v7039_v37 = vmul.f32 %v6990_v56, %v9424_v62  ;;  %v7050_v54 = vpop.permute.xlu0 %2045  ;;  %v9429_v62 = vld [vmem:[#allocation80_spill] sm:$0xff]  ;;  %3308 = vperm.xlu1 %4589, %v3142_v6   ;;  %v9432_v35 = vld [vmem:[#allocation81_spill] sm:$0xff] }
 0x244   : > { %v2504_v41 = vmax.f32 %v2503_v38, %v6994_v51  ;;  %9426 = vst [vmem:[#allocation73_spill] sm:$0xff] %v7042_v26  ;;  %v7046_v31 = vmul.f32 %v6990_v56, %v9427_v44  ;;  %v7048_v25 = vpop.permute.xlu1 %2050  ;;  %v2624_v16 = vsub.f32 %v6338_v19, %v6799_v7  ;;  %v7060_v38 = vadd.f32 %v6521_v20, %v6702_v45  ;;  %v9444_v51 = vld [vmem:[#allocation86_spill] sm:$0xff] }
 0x245   : > { %9421 = vst [vmem:[#allocation71_spill] sm:$0xff] %v7031_v49  ;;  %9423 = vst [vmem:[#allocation72_spill] sm:$0xff] %v7035_v36  ;;  %v2755_v36 = vmul.f32 1.442695, %v2623_v59  ;;  %v3144_v44 = vadd.f32 %v6813_v2, %v3015_v60  ;;  %v7067_v52 = vmul.f32 %v6990_v56, %v9432_v35  ;;  %3303 = vperm.xlu0 %4588, %v3141_v55   ;;  %v5003_v59 = vld [vmem:[%s5299_s9 + $0x60] sm:$0xff] }
 0x246   : > { %9425 = vst [vmem:[#allocation112_spill] sm:$0xff] %v7039_v37  ;;  %9428 = vst [vmem:[#allocation74_spill] sm:$0xff] %v7046_v31  ;;  %v7056_v37 = vmul.f32 %v6990_v56, %v9429_v62  ;;  %v5002_v31 = vld [vmem:[%s5299_s9 + $0x68] sm:$0xff]  ;;  %v3143_v19 = vadd.f32 %v6813_v2, %v3014_v43  ;;  %v3016_v62 = vmul.f32 %v5003_v59, %v6619_v34  ;;  %v9434_v43 = vld [vmem:[#allocation82_spill] sm:$0xff]  ;;  %v2757_v59 = vmul.f32 1.442695, %v2624_v16 }
 0x247   : > { %9431 = vst [vmem:[#allocation76_spill] sm:$0xff] %v7060_v38  ;;  %v3017_v49 = vmul.f32 %v5002_v31, %v6619_v34  ;;  %9433 = vst [vmem:[#allocation77_spill] sm:$0xff] %v7067_v52  ;;  %v2636_v20 = vsub.f32 %v6361_v63, %v7022_v4  ;;  %v7076_v45 = vadd.f32 %v6548_v5, %v6725_v42  ;;  %v7089_v63 = vpop.permute.xlu0 %2055  ;;  %4598 = vpow2.f32 %v2755_v36  ;;  %v9436_v42 = vld [vmem:[#allocation113_spill] sm:$0xff]  ;;  %v7104_v16 = vpop.eup %4594 }
 0x248   : > { %9430 = vst [vmem:[#allocation75_spill] sm:$0xff] %v7056_v37  ;;  %v2505_v60 = vmax.f32 %v2504_v41, %v7060_v38  ;;  %v4197_v35 = vadd.f32 %v7042_v26, %v7027_v15  ;;  %v2635_v6 = vsub.f32 %v6364_v30, %v7022_v4  ;;  %v7085_v55 = vmul.f32 %v6990_v56, %v9434_v43  ;;  %v7087_v31 = vpop.permute.xlu1 %2060  ;;  %v9437_v41 = vld [vmem:[#allocation83_spill] sm:$0xff]  ;;  %v9439_v30 = vld [vmem:[#allocation84_spill] sm:$0xff]  ;;  %v9442_v36 = vld [vmem:[#allocation85_spill] sm:$0xff] }
 0x249   : > { %v2625_v5 = vsub.f32 %v9436_v42, %v6799_v7  ;;  %v7095_v52 = vmul.f32 %v6990_v56, %v9437_v41  ;;  %v7099_v37 = vmul.f32 %v6990_v56, %v9439_v30  ;;  %3318 = vperm.xlu1 %4589, %v3144_v44   ;;  %v3146_v43 = vadd.f32 %v6813_v2, %v3017_v49  ;;  %v5005_v41 = vld [vmem:[%s5299_s9 + $0x70] sm:$0xff] }
 0x24a   : > { %9435 = vst [vmem:[#allocation78_spill] sm:$0xff] %v7085_v55  ;;  %v5004_v55 = vld [vmem:[%s5299_s9 + $0x78] sm:$0xff]  ;;  %9441 = vst [vmem:[#allocation81_spill] sm:$0xff] %v7104_v16  ;;  %v7108_v15 = vmul.f32 %v6990_v56, %v9442_v36  ;;  %3313 = vperm.xlu0 %4588, %v3143_v19   ;;  %v3145_v42 = vadd.f32 %v6813_v2, %v3016_v62  ;;  %v2781_v30 = vmul.f32 1.442695, %v2636_v20  ;;  %4600 = vpow2.f32 %v2757_v59 }
 0x24b   : > { %9438 = vst [vmem:[#allocation79_spill] sm:$0xff] %v7095_v52  ;;  %9440 = vst [vmem:[#allocation80_spill] sm:$0xff] %v7099_v37  ;;  %v3019_v26 = vmul.f32 %v5004_v55, %v6619_v34  ;;  %v3018_v52 = vmul.f32 %v5005_v41, %v6619_v34  ;;  %v2506_v44 = vmax.f32 %v2505_v60, %v7076_v45  ;;  %v5006_v37 = vld [vmem:[%s5299_s9 + $0x88] sm:$0xff]  ;;  %v2779_v38 = vmul.f32 1.442695, %v2635_v6  ;;  %v7123_v62 = vpop.permute.xlu0 %2065  ;;  %v7138_v59 = vpop.eup %4596 }
 0x24c   : > { %9443 = vst [vmem:[#allocation82_spill] sm:$0xff] %v7108_v15  ;;  %v3021_v49 = vmul.f32 %v5006_v37, %v6619_v34  ;;  %v4198_v55 = vadd.f32 %v7104_v16, %v4197_v35  ;;  %v7119_v36 = vmul.f32 %v6990_v56, %v9444_v51  ;;  %v7121_v19 = vpop.permute.xlu1 %2070  ;;  %v2626_v20 = vsub.f32 %v6385_v11, %v6799_v7  ;;  %v9446_v41 = vld [vmem:[#allocation87_spill] sm:$0xff]  ;;  %v9449_v15 = vld [vmem:[#allocation88_spill] sm:$0xff] }
 0x24d   : > { %v2759_v60 = vmul.f32 1.442695, %v2625_v5  ;;  %v7129_v37 = vmul.f32 %v6990_v56, %v9446_v41  ;;  %v7133_v35 = vadd.f32 %v6546_v23, %v6710_v12  ;;  %3328 = vperm.xlu1 %4589, %v3146_v43   ;;  %v3148_v51 = vadd.f32 %v6813_v2, %v3019_v26  ;;  %9448 = vst [vmem:[#allocation84_spill] sm:$0xff] %v7138_v59  ;;  %v5007_v41 = vld [vmem:[%s5299_s9 + $0x80] sm:$0xff]  ;;  %v9468_v16 = vld [vmem:[#allocation16_spill] sm:$0xff] }
 0x24e   : > { %9445 = vst [vmem:[#allocation113_spill] sm:$0xff] %v7119_v36  ;;  %v2637_v6 = vsub.f32 %v6377_v0, %v7022_v4  ;;  %v7142_v11 = vmul.f32 %v6990_v56, %v9449_v15  ;;  %3323 = vperm.xlu0 %4588, %v3145_v42   ;;  %v3147_v5 = vadd.f32 %v6813_v2, %v3018_v52  ;;  %4602 = vpow2.f32 %v2781_v30  ;;  %v5008_v15 = vld [vmem:[%s5299_s9 + $0x98] sm:$0xff]  ;;  %v9457_v36 = vld [vmem:[#allocation90_spill] sm:$0xff] }
 0x24f   : > { %9447 = vst [vmem:[#allocation83_spill] sm:$0xff] %v7129_v37  ;;  %v3020_v12 = vmul.f32 %v5007_v41, %v6619_v34  ;;  %v2507_v23 = vmax.f32 %v2506_v44, %v7133_v35  ;;  %v3150_v26 = vadd.f32 %v6813_v2, %v3021_v49  ;;  %v4199_v43 = vadd.f32 %v7138_v59, %v4198_v55  ;;  %v7152_v37 = vpop.permute.xlu0 %2075 }
 0x250   : > { %9450 = vst [vmem:[#allocation85_spill] sm:$0xff] %v7142_v11  ;;  %4604 = vpow2.f32 %v2779_v38  ;;  %v7150_v0 = vpop.permute.xlu1 %2080  ;;  %v3023_v52 = vmul.f32 %v5008_v15, %v6619_v34  ;;  %v2761_v42 = vmul.f32 1.442695, %v2626_v20  ;;  %v2627_v30 = vsub.f32 %v6394_v21, %v6799_v7  ;;  %v5010_v15 = vld [vmem:[%s5299_s9 + $0xa8] sm:$0xff] }
 0x251   : > { %4606 = vpow2.f32 %v2759_v60  ;;  %v7160_v44 = vadd.f32 %v6574_v57, %v6734_v18  ;;  %v7164_v38 = vadd.f32 %v6576_v61, %v6737_v39  ;;  %3338 = vperm.xlu1 %4589, %v3148_v51   ;;  %v2638_v49 = vsub.f32 %v6409_v40, %v7022_v4  ;;  %v7168_v20 = vpop.eup %4598  ;;  %v9453_v60 = vld [vmem:[#allocation89_spill] sm:$0xff]  ;;  %v5009_v57 = vld [vmem:[%s5299_s9 + $0x90] sm:$0xff]  ;;  %v7180_v39 = vld [vmem:[%s6235_s20 + $0x7] ss:$0 sm:$0xff] }
 0x252   : > { %v2783_v55 = vmul.f32 1.442695, %v2637_v6  ;;  %9452 = vst [vmem:[#allocation87_spill] sm:$0xff] %v7168_v20  ;;  %v7172_v41 = vmul.f32 %v6990_v56, %v9453_v60  ;;  %3333 = vperm.xlu0 %4588, %v3147_v5   ;;  %v3149_v21 = vadd.f32 %v6813_v2, %v3020_v12  ;;  %v3022_v18 = vmul.f32 %v5009_v57, %v6619_v34  ;;  %v5011_v6 = vld [vmem:[%s5299_s9 + $0xa0] sm:$0xff] }
 0x253   : > { %9451 = vst [vmem:[#allocation86_spill] sm:$0xff] %v7164_v38  ;;  %v3025_v61 = vmul.f32 %v5010_v15, %v6619_v34  ;;  %v2508_v51 = vrot.slane %v2507_v23, 4  ;;  %v7184_v40 = vadd.f32 %v6604_v28, %v6747_v14  ;;  %v3024_v60 = vmul.f32 %v5011_v6, %v6619_v34  ;;  %v7191_v12 = vpop.permute.xlu0 %2085 }
 0x254   : > { %9454 = vst [vmem:[#allocation88_spill] sm:$0xff] %v7172_v41  ;;  %v4200_v5 = vadd.f32 %v7168_v20, %v4199_v43  ;;  %v7189_v41 = vpop.permute.xlu1 %2090  ;;  %v3152_v57 = vadd.f32 %v6813_v2, %v3023_v52  ;;  %4608 = vpow2.f32 %v2761_v42  ;;  %v2628_v15 = vsub.f32 %v6431_v27, %v6799_v7  ;;  %v7200_v6 = vpop.eup %4600  ;;  %v9459_v42 = vld [vmem:[#allocation91_spill] sm:$0xff] }
 0x255   : > { %9455 = vst [vmem:[#allocation89_spill] sm:$0xff] %v7184_v40  ;;  %v2763_v11 = vmul.f32 1.442695, %v2627_v30  ;;  %v2514_v28 = vmax.f32 %v7164_v38, %v7160_v44  ;;  %3348 = vperm.xlu1 %4589, %v3150_v26   ;;  %v2785_v14 = vmul.f32 1.442695, %v2638_v49  ;;  %4610 = vpow2.f32 %v2783_v55  ;;  %9456 = vst [vmem:[#allocation127_spill] sm:$0xff] %v7200_v6 }
 0x256   : > { %v2639_v43 = vsub.f32 %v6422_v48, %v7022_v4  ;;  %v7204_v52 = vmul.f32 %v6990_v56, %v9457_v36  ;;  %v7208_v27 = vmul.f32 %v7180_v39, %v9459_v42  ;;  %3343 = vperm.xlu0 %4588, %v3149_v21   ;;  %v3151_v30 = vadd.f32 %v6813_v2, %v3022_v18  ;;  %v5012_v42 = vld [vmem:[%s5299_s9 + $0xb8] sm:$0xff] }
 0x257   : > { %v3154_v26 = vadd.f32 %v6813_v2, %v3025_v61  ;;  %v2509_v49 = vmax.f32 %v2507_v23, %v2508_v51  ;;  %v2515_v55 = vmax.f32 %v2514_v28, %v7184_v40  ;;  %v3153_v48 = vadd.f32 %v6813_v2, %v3024_v60  ;;  %v7219_v36 = vpop.permute.xlu0 %2095  ;;  %v9464_v60 = vld [vmem:[#allocation114_spill] sm:$0xff] }
 0x258   : > { %9458 = vst [vmem:[#allocation90_spill] sm:$0xff] %v7204_v52  ;;  %9460 = vst [vmem:[#allocation91_spill] sm:$0xff] %v7208_v27  ;;  %v4201_v20 = vadd.f32 %v7200_v6, %v4200_v5  ;;  %v7215_v59 = vpop.eup %4602  ;;  %v7217_v56 = vpop.permute.xlu1 %2100  ;;  %v3027_v21 = vmul.f32 %v5012_v42, %v6619_v34  ;;  %v2765_v18 = vmul.f32 1.442695, %v2628_v15  ;;  %4612 = vpow2.f32 %v2763_v11  ;;  %v9466_v15 = vld [vmem:[#allocation121_spill] sm:$0xff]  ;;  %v5013_v42 = vld [vmem:[%s5299_s9 + $0xb0] sm:$0xff] }
 0x259   : > { %9461 = vst [vmem:[#allocation128_spill] sm:$0xff] %v7215_v59  ;;  %v2629_v23 = vsub.f32 %v6438_v24, %v6799_v7  ;;  %v7229_v51 = vadd.f32 %v6602_v13, %v6744_v1  ;;  %3358 = vperm.xlu1 %4589, %v3152_v57   ;;  %4614 = vpow2.f32 %v2785_v14  ;;  %v2640_v5 = vsub.f32 %v9464_v60, %v7022_v4  ;;  %v5014_v27 = vld [vmem:[%s5299_s9 + $0xc8] sm:$0xff]  ;;  %v5015_v13 = vld [vmem:[%s5299_s9 + $0xc0] sm:$0xff] }
 0x25a   : > { %v7225_v61 = vpop.eup %4604  ;;  %v2787_v28 = vmul.f32 1.442695, %v2639_v43  ;;  %v2633_v11 = vsub.f32 %v9466_v15, %v6799_v7  ;;  %3353 = vperm.xlu0 %4588, %v3151_v30   ;;  %v3026_v24 = vmul.f32 %v5013_v42, %v6619_v34  ;;  %v3029_v6 = vmul.f32 %v5014_v27, %v6619_v34  ;;  %v9467_v14 = vld [vmem:[#allocation26_spill] sm:$0xff]  ;;  %v9471_v30 = vld [vmem:[#allocation116_spill] sm:$0xff] }
 0x25b   : > { %9462 = vst [vmem:[#allocation129_spill] sm:$0xff] %v7225_v61  ;;  %9463 = vst [vmem:[#allocation130_spill] sm:$0xff] %v7229_v51  ;;  %v7233_v52 = vpop.eup %4606  ;;  %v3028_v1 = vmul.f32 %v5015_v13, %v6619_v34  ;;  %v2510_v57 = vrot.slane %v2509_v49, 2  ;;  %v7245_v60 = vadd.f32 %v9468_v16, %v9467_v14  ;;  %v2516_v43 = vmax.f32 %v2515_v55, %v7229_v51  ;;  %v7255_v13 = vpop.permute.xlu0 %2105  ;;  %v9513_v51 = vld [vmem:[#allocation18_spill] sm:$0xff] }
 0x25c   : > { %9465 = vst [vmem:[#allocation114_spill] sm:$0xff] %v7233_v52  ;;  %v4202_v40 = vadd.f32 %v7233_v52, %v4201_v20  ;;  %v7249_v15 = vpop.permute.xlu1 %2110  ;;  %4616 = vpow2.f32 %v2765_v18  ;;  %v2630_v42 = vsub.f32 %v9471_v30, %v6799_v7  ;;  %v2767_v38 = vmul.f32 1.442695, %v2629_v23  ;;  %9472 = vst [vmem:[#allocation16_spill] sm:$0xff] %v7255_v13  ;;  %v9473_v20 = vld [vmem:[#allocation115_spill] sm:$0xff] }
 0x25d   : > { %9469 = vst [vmem:[#allocation121_spill] sm:$0xff] %v7245_v60  ;;  %9470 = vst [vmem:[#allocation26_spill] sm:$0xff] %v7249_v15  ;;  %v4218_v27 = vadd.f32 %v7225_v61, %v7215_v59  ;;  %3368 = vperm.xlu1 %4589, %v3154_v26   ;;  %v3156_v16 = vadd.f32 %v6813_v2, %v3027_v21  ;;  %v2789_v14 = vmul.f32 1.442695, %v2640_v5  ;;  %4618 = vpow2.f32 %v2787_v28  ;;  %v5016_v5 = vld [vmem:[%s5299_s9 + $0xd8] sm:$0xff] }
 0x25e   : > { %v2641_v55 = vsub.f32 %v9473_v20, %v7022_v4  ;;  %v7260_v52 = vpop.eup %4608  ;;  %v2775_v18 = vmul.f32 1.442695, %v2633_v11  ;;  %3363 = vperm.xlu0 %4588, %v3153_v48   ;;  %v3155_v23 = vadd.f32 %v6813_v2, %v3026_v24  ;;  %v3158_v30 = vadd.f32 %v6813_v2, %v3029_v6  ;;  %v9477_v6 = vld [vmem:[#allocation117_spill] sm:$0xff] }
 0x25f   : > { %9474 = vst [vmem:[#allocation116_spill] sm:$0xff] %v7260_v52  ;;  %v3157_v61 = vadd.f32 %v6813_v2, %v3028_v1  ;;  %v7265_v59 = vpop.eup %4610  ;;  %v2511_v26 = vmax.f32 %v2509_v49, %v2510_v57  ;;  %v2517_v21 = vmax.f32 %v2516_v43, %v7245_v60  ;;  %v3031_v28 = vmul.f32 %v5016_v5, %v6619_v34  ;;  %v9478_v49 = vld [vmem:[#allocation22_spill] sm:$0xff]  ;;  %v9479_v1 = vld [vmem:[#allocation13_spill] sm:$0xff]  ;;  %v7280_v43 = vpop.permute.xlu0 %2115 }
 0x260   : > { %9475 = vst [vmem:[#allocation115_spill] sm:$0xff] %v7265_v59  ;;  %v4203_v20 = vadd.f32 %v7260_v52, %v4202_v40  ;;  %v7271_v15 = vpop.permute.xlu1 %2120  ;;  %v2769_v48 = vmul.f32 1.442695, %v2630_v42  ;;  %4620 = vpow2.f32 %v2767_v38  ;;  %v2631_v11 = vsub.f32 %v9477_v6, %v6799_v7  ;;  %9481 = vst [vmem:[#allocation22_spill] sm:$0xff] %v7280_v43  ;;  %v9482_v40 = vld [vmem:[#allocation118_spill] sm:$0xff]  ;;  %v5017_v38 = vld [vmem:[%s5299_s9 + $0xd0] sm:$0xff] }
 0x261   : > { %9476 = vst [vmem:[#allocation131_spill] sm:$0xff] %v7271_v15  ;;  %v4219_v24 = vadd.f32 %v7265_v59, %v4218_v27  ;;  %v7278_v57 = vadd.f32 %v9479_v1, %v9478_v49  ;;  %3378 = vperm.xlu1 %4589, %v3156_v16   ;;  %4622 = vpow2.f32 %v2789_v14  ;;  %v2642_v5 = vsub.f32 %v9482_v40, %v7022_v4  ;;  %v5018_v27 = vld [vmem:[%s5299_s9 + $0xe8] sm:$0xff]  ;;  %v5019_v49 = vld [vmem:[%s5299_s9 + $0xe0] sm:$0xff] }
 0x262   : > { %v2791_v52 = vmul.f32 1.442695, %v2641_v55  ;;  %v7284_v42 = vpop.eup %4612  ;;  %4624 = vpow2.f32 %v2775_v18  ;;  %3373 = vperm.xlu0 %4588, %v3155_v23   ;;  %v3030_v6 = vmul.f32 %v5017_v38, %v6619_v34  ;;  %v3033_v59 = vmul.f32 %v5018_v27, %v6619_v34  ;;  %v9485_v14 = vld [vmem:[#allocation15_spill] sm:$0xff]  ;;  %v9488_v38 = vld [vmem:[#allocation120_spill] sm:$0xff] }
 0x263   : > { %9480 = vst [vmem:[#allocation117_spill] sm:$0xff] %v7278_v57  ;;  %9483 = vst [vmem:[#allocation13_spill] sm:$0xff] %v7284_v42  ;;  %v3032_v1 = vmul.f32 %v5019_v49, %v6619_v34  ;;  %v7292_v15 = vpop.eup %4614  ;;  %v2512_v16 = vrot.slane %v2511_v26, 1  ;;  %v7296_v40 = vadd.f32 %v9485_v14, %v6773_v3  ;;  %v2518_v55 = vmax.f32 %v2517_v21, %v7278_v57  ;;  %v7305_v43 = vpop.permute.xlu0 %2125  ;;  %v9490_v21 = vld [vmem:[#allocation119_spill] sm:$0xff]  ;;  %v9506_v57 = vld [vmem:[#allocation124_spill] sm:$0xff] }
 0x264   : > { %9484 = vst [vmem:[#allocation118_spill] sm:$0xff] %v7292_v15  ;;  %v4204_v18 = vadd.f32 %v7284_v42, %v4203_v20  ;;  %v7300_v23 = vpop.permute.xlu1 %2130  ;;  %4626 = vpow2.f32 %v2769_v48  ;;  %v2632_v27 = vsub.f32 %v9488_v38, %v6799_v7  ;;  %v2771_v60 = vmul.f32 1.442695, %v2631_v11  ;;  %9489 = vst [vmem:[#allocation120_spill] sm:$0xff] %v7305_v43  ;;  %v5020_v38 = vld [vmem:[%s5299_s9 + $0xf8] sm:$0xff] }
 0x265   : > { %9486 = vst [vmem:[#allocation15_spill] sm:$0xff] %v7296_v40  ;;  %9487 = vst [vmem:[#allocation132_spill] sm:$0xff] %v7300_v23  ;;  %v4220_v49 = vadd.f32 %v7292_v15, %v4219_v24  ;;  %3388 = vperm.xlu1 %4589, %v3158_v30   ;;  %v3160_v3 = vadd.f32 %v6813_v2, %v3031_v28  ;;  %v2793_v14 = vmul.f32 1.442695, %v2642_v5  ;;  %4628 = vpow2.f32 %v2791_v52  ;;  %v5021_v5 = vld [vmem:[%s5299_s9 + $0xf0] sm:$0xff] }
 0x266   : > { %v2643_v20 = vsub.f32 %v9490_v21, %v7022_v4  ;;  %v7310_v42 = vpop.eup %4616  ;;  %3383 = vperm.xlu0 %4588, %v3157_v61   ;;  %v3159_v48 = vadd.f32 %v6813_v2, %v3030_v6  ;;  %v3162_v11 = vadd.f32 %v6813_v2, %v3033_v59  ;;  %v3161_v24 = vadd.f32 %v6813_v2, %v3032_v1 }
 0x267   : > { %9491 = vst [vmem:[#allocation119_spill] sm:$0xff] %v7310_v42  ;;  %v3035_v30 = vmul.f32 %v5020_v38, %v6619_v34  ;;  %v7317_v15 = vpop.eup %4618  ;;  %v7319_v28 = vmax.f32 %v2511_v26, %v2512_v16  ;;  %v2519_v52 = vmax.f32 %v2518_v55, %v7296_v40  ;;  %v3034_v21 = vmul.f32 %v5021_v5, %v6619_v34  ;;  %v9494_v38 = vld [vmem:[#allocation122_spill] sm:$0xff]  ;;  %v9495_v26 = vld [vmem:[#allocation27_spill] sm:$0xff]  ;;  %v9496_v16 = vld [vmem:[#allocation12_spill] sm:$0xff]  ;;  %v7334_v55 = vpop.permute.xlu0 %2135 }
 0x268   : > { %9492 = vst [vmem:[#allocation133_spill] sm:$0xff] %v7317_v15  ;;  %v4205_v61 = vadd.f32 %v7310_v42, %v4204_v18  ;;  %v7325_v6 = vpop.permute.xlu1 %2140  ;;  %v2773_v59 = vmul.f32 1.442695, %v2632_v27  ;;  %4630 = vpow2.f32 %v2771_v60  ;;  %v4221_v1 = vadd.f32 %v7317_v15, %v4220_v49  ;;  %9498 = vst [vmem:[#allocation27_spill] sm:$0xff] %v7334_v55  ;;  %v5022_v5 = vld [vmem:[%s5299_s9 + $0x108] sm:$0xff]  ;;  %v5023_v49 = vld [vmem:[%s5299_s9 + $0x100] sm:$0xff] }
 0x269   : > { %9493 = vst [vmem:[#allocation134_spill] sm:$0xff] %v7325_v6  ;;  %v2644_v23 = vsub.f32 %v9494_v38, %v7022_v4  ;;  %v7332_v43 = vadd.f32 %v9496_v16, %v9495_v26  ;;  %3398 = vperm.xlu1 %4589, %v3160_v3   ;;  %v3037_v18 = vmul.f32 %v5022_v5, %v6619_v34  ;;  %4632 = vpow2.f32 %v2793_v14  ;;  %v5024_v15 = vld [vmem:[%s5299_s9 + $0x118] sm:$0xff]  ;;  %v9500_v16 = vld [vmem:[#allocation107_spill] sm:$0xff] }
 0x26a   : > { %v2795_v6 = vmul.f32 1.442695, %v2643_v20  ;;  %v7338_v27 = vpop.eup %4620  ;;  %3393 = vperm.xlu0 %4588, %v3159_v48   ;;  %v3164_v60 = vadd.f32 %v6813_v2, %v3035_v30  ;;  %v3036_v38 = vmul.f32 %v5023_v49, %v6619_v34  ;;  %v3039_v26 = vmul.f32 %v5024_v15, %v6619_v34  ;;  %v9502_v55 = vld [vmem:[#allocation29_spill] sm:$0xff]  ;;  %v9503_v5 = vld [vmem:[#allocation19_spill] sm:$0xff]  ;;  %v9504_v30 = vld [vmem:[#allocation14_spill] sm:$0xff] }
 0x26b   : > { %9497 = vst [vmem:[#allocation122_spill] sm:$0xff] %v7332_v43  ;;  %9499 = vst [vmem:[#allocation12_spill] sm:$0xff] %v7338_v27  ;;  %v2634_v42 = vsub.f32 %v9500_v16, %v6799_v7  ;;  %v7347_v3 = vpop.eup %4622  ;;  %v7351_v14 = vadd.f32 %v9503_v5, %v9502_v55  ;;  %v2520_v20 = vmax.f32 %v2519_v52, %v7332_v43  ;;  %4634 = vpow2.f32 %v2773_v59  ;;  %v7364_v5 = vpop.permute.xlu0 %2145  ;;  %v9512_v43 = vld [vmem:[#allocation28_spill] sm:$0xff] }
 0x26c   : > { %9501 = vst [vmem:[#allocation107_spill] sm:$0xff] %v7347_v3  ;;  %v4206_v48 = vadd.f32 %v7338_v27, %v4205_v61  ;;  %v2652_v40 = vsub.f32 %v9504_v30, %v7319_v28  ;;  %v7357_v49 = vpop.eup %4624  ;;  %v7359_v15 = vpop.permute.xlu1 %2150  ;;  %v4222_v7 = vadd.f32 %v7347_v3, %v4221_v1  ;;  %v2797_v16 = vmul.f32 1.442695, %v2644_v23  ;;  %9507 = vst [vmem:[#allocation19_spill] sm:$0xff] %v7364_v5  ;;  %v9508_v30 = vld [vmem:[#allocation123_spill] sm:$0xff] }
 0x26d   : > { %9505 = vst [vmem:[#allocation29_spill] sm:$0xff] %v7359_v15  ;;  %v2651_v55 = vsub.f32 %v9506_v57, %v7319_v28  ;;  %3408 = vperm.xlu1 %4589, %v3162_v11   ;;  %v3163_v52 = vadd.f32 %v6813_v2, %v3034_v21  ;;  %v3166_v61 = vadd.f32 %v6813_v2, %v3037_v18  ;;  %4636 = vpow2.f32 %v2795_v6  ;;  %v5025_v57 = vld [vmem:[%s5299_s9 + $0x110] sm:$0xff]  ;;  %v5026_v6 = vld [vmem:[%s5299_s9 + $0x128] sm:$0xff] }
 0x26e   : > { %v2645_v27 = vsub.f32 %v9508_v30, %v7022_v4  ;;  %v7370_v15 = vpop.eup %4626  ;;  %3403 = vperm.xlu0 %4588, %v3161_v24   ;;  %v3165_v23 = vadd.f32 %v6813_v2, %v3036_v38  ;;  %v7374_v59 = vadd.f32 %v6813_v2, %v3039_v26  ;;  %v3038_v1 = vmul.f32 %v5025_v57, %v6619_v34  ;;  %v9511_v26 = vld [vmem:[#allocation10_spill] sm:$0xff] }
 0x26f   : > { %v2777_v11 = vmul.f32 1.442695, %v2634_v42  ;;  %v7378_v3 = vpop.eup %4628  ;;  %v2521_v21 = vmax.f32 %v2520_v20, %v7351_v14  ;;  %v3041_v18 = vmul.f32 %v5026_v6, %v6619_v34  ;;  %v4207_v30 = vadd.f32 %v7370_v15, %v4206_v48  ;;  %v7401_v48 = vpop.permute.xlu0 %2155  ;;  %v5027_v6 = vld [vmem:[%s5299_s9 + $0x120] sm:$0xff] }
 0x270   : > { %9509 = vst [vmem:[#allocation14_spill] sm:$0xff] %v7378_v3  ;;  %v2813_v24 = vmul.f32 1.442695, %v2652_v40  ;;  %v7384_v5 = vpop.permute.xlu1 %2160  ;;  %v4223_v38 = vadd.f32 %v7378_v3, %v4222_v7  ;;  %4638 = vpow2.f32 %v2797_v16  ;;  %v2646_v57 = vsub.f32 %v9511_v26, %v7022_v4  ;;  %9514 = vst [vmem:[#allocation123_spill] sm:$0xff] %v7401_v48  ;;  %v5030_v3 = vld [vmem:[%s5299_s9 + $0x148] sm:$0xff] }
 0x271   : > { %9510 = vst [vmem:[#allocation124_spill] sm:$0xff] %v7384_v5  ;;  %v2811_v42 = vmul.f32 1.442695, %v2651_v55  ;;  %v7391_v13 = vadd.f32 %v9513_v51, %v9512_v43  ;;  %v7395_v20 = vadd.f32 %v6879_v22, %v6819_v32  ;;  %v7399_v40 = vadd.f32 %v6881_v46, %v6827_v58  ;;  %3418 = vperm.xlu1 %4589, %v3164_v60   ;;  %v9515_v32 = vld [vmem:[#allocation8_spill] sm:$0xff]  ;;  %v9517_v58 = vld [vmem:[#allocation25_spill] sm:$0xff] }
 0x272   : > { %v2799_v7 = vmul.f32 1.442695, %v2645_v27  ;;  %v7403_v16 = vpop.eup %4630  ;;  %3413 = vperm.xlu0 %4588, %v3163_v52   ;;  %v3167_v55 = vadd.f32 %v6813_v2, %v3038_v1  ;;  %v3040_v51 = vmul.f32 %v5027_v6, %v6619_v34  ;;  %4640 = vpow2.f32 %v2777_v11  ;;  %v9522_v6 = vld [vmem:[#allocation126_spill] sm:$0xff] }
 0x273   : > { %v2653_v22 = vsub.f32 %v9515_v32, %v7319_v28  ;;  %v7410_v43 = vpop.eup %4632  ;;  %v7414_v46 = vadd.f32 %v9517_v58, %v6786_v10  ;;  %v2522_v27 = vmax.f32 %v2521_v21, %v7391_v13  ;;  %v7419_v60 = vadd.f32 %v6922_v50, %v6833_v29  ;;  %v7428_v21 = vpop.permute.xlu0 %2165  ;;  %v9521_v50 = vld [vmem:[#allocation125_spill] sm:$0xff] }
 0x274   : > { %9516 = vst [vmem:[#allocation10_spill] sm:$0xff] %v7410_v43  ;;  %4642 = vpow2.f32 %v2813_v24  ;;  %v7421_v52 = vpop.permute.xlu1 %2170  ;;  %v3170_v1 = vadd.f32 %v6813_v2, %v3041_v18  ;;  %v4208_v11 = vadd.f32 %v7403_v16, %v4207_v30  ;;  %v4224_v26 = vadd.f32 %v7410_v43, %v4223_v38  ;;  %9520 = vst [vmem:[#allocation8_spill] sm:$0xff] %v7428_v21  ;;  %v5028_v38 = vld [vmem:[%s5299_s9 + $0x138] sm:$0xff]  ;;  %v5031_v21 = vld [vmem:[%s5299_s9 + $0x140] sm:$0xff] }
 0x275   : > { %9518 = vst [vmem:[#allocation28_spill] sm:$0xff] %v7419_v60  ;;  %9519 = vst [vmem:[#allocation18_spill] sm:$0xff] %v7421_v52  ;;  %4644 = vpow2.f32 %v2811_v42  ;;  %v2535_v10 = vmax.f32 %v7399_v40, %v7395_v20  ;;  %3428 = vperm.xlu1 %4589, %v3166_v61   ;;  %v2801_v29 = vmul.f32 1.442695, %v2646_v57  ;;  %v2647_v24 = vsub.f32 %v9521_v50, %v7022_v4  ;;  %v7432_v18 = vpop.eup %4634  ;;  %v5029_v50 = vld [vmem:[%s5299_s9 + $0x130] sm:$0xff]  ;;  %v9525_v52 = vld [vmem:[#allocation11_spill] sm:$0xff] }
 0x276   : > { %4646 = vpow2.f32 %v2799_v7  ;;  %3423 = vperm.xlu0 %4588, %v3165_v23   ;;  %v3169_v30 = vadd.f32 %v6813_v2, %v3040_v51  ;;  %v3043_v42 = vmul.f32 %v5028_v38, %v6619_v34  ;;  %v2654_v32 = vsub.f32 %v9522_v6, %v7319_v28 }
 0x277   : > { %v2815_v58 = vmul.f32 1.442695, %v2653_v22  ;;  %v7439_v61 = vpop.eup %4636  ;;  %v2523_v57 = vmax.f32 %v2522_v27, %v7414_v46  ;;  %v2536_v7 = vmax.f32 %v2535_v10, %v7419_v60  ;;  %v3042_v43 = vmul.f32 %v5029_v50, %v6619_v34  ;;  %v9526_v10 = vld [vmem:[#allocation24_spill] sm:$0xff]  ;;  %v9527_v50 = vld [vmem:[#allocation38_spill] sm:$0xff] }
 0x278   : > { %9523 = vst [vmem:[#allocation25_spill] sm:$0xff] %v7439_v61  ;;  %v3045_v23 = vmul.f32 %v5030_v3, %v6619_v34  ;;  %v7447_v51 = vpop.permute.xlu1 %2180  ;;  %v3044_v38 = vmul.f32 %v5031_v21, %v6619_v34  ;;  %v4209_v6 = vadd.f32 %v7432_v18, %v4208_v11  ;;  %v4225_v22 = vadd.f32 %v7439_v61, %v4224_v26  ;;  %v7463_v3 = vpop.permute.xlu0 %2175  ;;  %v9530_v26 = vld [vmem:[#allocation17_spill] sm:$0xff] }
 0x279   : > { %9524 = vst [vmem:[#allocation125_spill] sm:$0xff] %v7447_v51  ;;  %v2648_v27 = vsub.f32 %v9525_v52, %v7022_v4  ;;  %v7457_v5 = vadd.f32 %v9526_v10, %v6783_v17  ;;  %v7461_v48 = vadd.f32 %v6920_v8, %v9527_v50  ;;  %9528 = vst [vmem:[#allocation126_spill] sm:$0xff] %v7463_v3  ;;  %3438 = vperm.xlu1 %4589, %v7374_v59   ;;  %v9531_v17 = vld [vmem:[#allocation9_spill] sm:$0xff]  ;;  %v9532_v51 = vld [vmem:[#allocation31_spill] sm:$0xff] }
 0x27a   : > { %4648 = vpow2.f32 %v2801_v29  ;;  %v2803_v21 = vmul.f32 1.442695, %v2647_v24  ;;  %v7466_v11 = vpop.eup %4638  ;;  %v2649_v61 = vsub.f32 %v9530_v26, %v7022_v4  ;;  %3433 = vperm.xlu0 %4588, %v3167_v55   ;;  %v2817_v52 = vmul.f32 1.442695, %v2654_v32  ;;  %v9533_v8 = vld [vmem:[#allocation33_spill] sm:$0xff]  ;;  %v9534_v59 = vld [vmem:[#allocation42_spill] sm:$0xff] }
 0x27b   : > { %9529 = vst [vmem:[#allocation11_spill] sm:$0xff] %v7466_v11  ;;  %4650 = vpow2.f32 %v2815_v58  ;;  %v2655_v10 = vsub.f32 %v9531_v17, %v7319_v28  ;;  %v7474_v50 = vadd.f32 %v9533_v8, %v9532_v51  ;;  %v2524_v3 = vmax.f32 %v2523_v57, %v7457_v5  ;;  %v9536_v55 = vld [vmem:[#allocation92_spill] sm:$0xff] }
 0x27c   : > { %v7479_v29 = vadd.f32 %v6959_v33, %v9534_v59  ;;  %v2537_v24 = vmax.f32 %v2536_v7, %v7461_v48  ;;  %v7482_v60 = vpop.eup %4640  ;;  %v7486_v32 = vmul.f32 %v7180_v39, %v9536_v55  ;;  %v7488_v58 = vpop.permute.xlu1 %2190  ;;  %v4210_v26 = vadd.f32 %v7357_v49, %v4209_v6 }
 0x27d   : > { %9538 = vst [vmem:[#allocation17_spill] sm:$0xff] %v7488_v58  ;;  %v4226_v51 = vadd.f32 %v7466_v11, %v4225_v22  ;;  %v2805_v17 = vmul.f32 1.442695, %v2648_v27  ;;  %v7494_v8 = vpop.permute.xlu0 %2185  ;;  %3448 = vperm.xlu1 %4589, %v3170_v1   ;;  %v3172_v33 = vadd.f32 %v6813_v2, %v3043_v42  ;;  %v3171_v7 = vadd.f32 %v6813_v2, %v3042_v43  ;;  %v9542_v22 = vld [vmem:[#allocation20_spill] sm:$0xff] }
 0x27e   : > { %9535 = vst [vmem:[#allocation24_spill] sm:$0xff] %v7479_v29  ;;  %9537 = vst [vmem:[#allocation38_spill] sm:$0xff] %v7486_v32  ;;  %v7492_v57 = vpop.eup %4642  ;;  %v3174_v59 = vadd.f32 %v6813_v2, %v3045_v23  ;;  %4652 = vpow2.f32 %v2803_v21  ;;  %3443 = vperm.xlu0 %4588, %v3169_v30   ;;  %v3173_v6 = vadd.f32 %v6813_v2, %v3044_v38  ;;  %v2819_v32 = vmul.f32 1.442695, %v2655_v10  ;;  %v5032_v23 = vld [vmem:[%s5299_s9 + $0x158] sm:$0xff]  ;;  %v5033_v30 = vld [vmem:[%s5299_s9 + $0x150] sm:$0xff] }
 0x27f   : > { %9539 = vst [vmem:[#allocation9_spill] sm:$0xff] %v7492_v57  ;;  %9540 = vst [vmem:[#allocation31_spill] sm:$0xff] %v7494_v8  ;;  %v7499_v55 = vpop.eup %4644  ;;  %4654 = vpow2.f32 %v2817_v52  ;;  %v2656_v27 = vsub.f32 %v9542_v22, %v7319_v28  ;;  %v2807_v1 = vmul.f32 1.442695, %v2649_v61  ;;  %v2525_v42 = vmax.f32 %v2524_v3, %v7474_v50  ;;  %v9545_v22 = vld [vmem:[#allocation30_spill] sm:$0xff]  ;;  %v9546_v61 = vld [vmem:[#allocation32_spill] sm:$0xff] }
 0x280   : > { %9541 = vst [vmem:[#allocation33_spill] sm:$0xff] %v7499_v55  ;;  %v7504_v8 = vpop.eup %4646  ;;  %v2538_v43 = vmax.f32 %v2537_v24, %v7479_v29  ;;  %v3047_v21 = vmul.f32 %v5032_v23, %v6619_v34  ;;  %v7510_v58 = vpop.permute.xlu1 %2200  ;;  %v3046_v38 = vmul.f32 %v5033_v30, %v6619_v34  ;;  %v4211_v52 = vadd.f32 %v7482_v60, %v4210_v26  ;;  %v9547_v3 = vld [vmem:[#allocation39_spill] sm:$0xff] }
 0x281   : > { %9543 = vst [vmem:[#allocation42_spill] sm:$0xff] %v7504_v8  ;;  %9544 = vst [vmem:[#allocation92_spill] sm:$0xff] %v7510_v58  ;;  %v4227_v10 = vadd.f32 %v7504_v8, %v4226_v51  ;;  %4656 = vpow2.f32 %v2805_v17  ;;  %v7518_v11 = vadd.f32 %v9546_v61, %v9545_v22  ;;  %v7522_v24 = vadd.f32 %v6957_v9, %v9547_v3  ;;  %v7524_v29 = vpop.permute.xlu0 %2195  ;;  %v9550_v23 = vld [vmem:[#allocation23_spill] sm:$0xff]  ;;  %v9551_v22 = vld [vmem:[#allocation21_spill] sm:$0xff] }
 0x282   : > { %9549 = vst [vmem:[#allocation30_spill] sm:$0xff] %v7524_v29  ;;  %3458 = vperm.xlu1 %4589, %v3172_v33   ;;  %v2650_v58 = vsub.f32 %v9550_v23, %v7022_v4  ;;  %v4239_v26 = vadd.f32 %v7499_v55, %v7492_v57  ;;  %3453 = vperm.xlu0 %4588, %v3171_v7   ;;  %v5034_v51 = vld [vmem:[%s5299_s9 + $0x168] sm:$0xff]  ;;  %v2821_v30 = vmul.f32 1.442695, %v2656_v27  ;;  %4658 = vpow2.f32 %v2819_v32  ;;  %v9552_v3 = vld [vmem:[#allocation36_spill] sm:$0xff]  ;;  %v9553_v33 = vld [vmem:[#allocation41_spill] sm:$0xff] }
 0x283   : > { %9548 = vst [vmem:[#allocation20_spill] sm:$0xff] %v7522_v24  ;;  %v3049_v17 = vmul.f32 %v5034_v51, %v6619_v34  ;;  %v2657_v9 = vsub.f32 %v9551_v22, %v7319_v28  ;;  %v7538_v29 = vadd.f32 %v9553_v33, %v9552_v3  ;;  %v2526_v4 = vmax.f32 %v2525_v42, %v7518_v11  ;;  %v9554_v23 = vld [vmem:[#allocation44_spill] sm:$0xff]  ;;  %v9556_v32 = vld [vmem:[#allocation93_spill] sm:$0xff]  ;;  %v5035_v57 = vld [vmem:[%s5299_s9 + $0x160] sm:$0xff] }
 0x284   : > { %v7534_v61 = vpop.eup %4648  ;;  %v7543_v55 = vadd.f32 %v7003_v47, %v9554_v23  ;;  %v2539_v7 = vmax.f32 %v2538_v43, %v7522_v24  ;;  %v7550_v27 = vmul.f32 %v7180_v39, %v9556_v32  ;;  %v7552_v22 = vpop.permute.xlu1 %2210  ;;  %v3048_v3 = vmul.f32 %v5035_v57, %v6619_v34 }
 0x285   : > { %v7546_v51 = vpop.eup %4650  ;;  %9558 = vst [vmem:[#allocation23_spill] sm:$0xff] %v7552_v22  ;;  %v4212_v33 = vrot.slane %v4211_v52, 4  ;;  %v4228_v42 = vadd.f32 %v7534_v61, %v4227_v10  ;;  %4660 = vpow2.f32 %v2807_v1  ;;  %v7557_v8 = vpop.permute.xlu0 %2205  ;;  %v3176_v47 = vadd.f32 %v6813_v2, %v3047_v21  ;;  %v9560_v22 = vld [vmem:[#allocation34_spill] sm:$0xff] }
 0x286   : > { %9555 = vst [vmem:[#allocation32_spill] sm:$0xff] %v7546_v51  ;;  %9557 = vst [vmem:[#allocation39_spill] sm:$0xff] %v7550_v27  ;;  %3468 = vperm.xlu1 %4589, %v3174_v59   ;;  %v2809_v43 = vmul.f32 1.442695, %v2650_v58  ;;  %v4240_v23 = vadd.f32 %v7546_v51, %v4239_v26  ;;  %3463 = vperm.xlu0 %4588, %v3173_v6   ;;  %v3175_v32 = vadd.f32 %v6813_v2, %v3046_v38  ;;  %v9562_v1 = vld [vmem:[#allocation94_spill] sm:$0xff]  ;;  %v9567_v51 = vld [vmem:[#allocation40_spill] sm:$0xff] }
 0x287   : > { %9559 = vst [vmem:[#allocation21_spill] sm:$0xff] %v7557_v8  ;;  %4662 = vpow2.f32 %v2821_v30  ;;  %v2658_v57 = vsub.f32 %v9560_v22, %v7319_v28  ;;  %v2823_v27 = vmul.f32 1.442695, %v2657_v9  ;;  %v7568_v10 = vmul.f32 %v7180_v39, %v9562_v1  ;;  %v5036_v30 = vld [vmem:[%s5299_s9 + $0x178] sm:$0xff]  ;;  %v9566_v8 = vld [vmem:[#allocation35_spill] sm:$0xff] }
 0x288   : > { %v7564_v24 = vpop.eup %4652  ;;  %v2527_v59 = vmax.f32 %v2526_v4, %v7538_v29  ;;  %v2540_v58 = vmax.f32 %v2539_v7, %v7543_v55  ;;  %v3178_v21 = vadd.f32 %v6813_v2, %v3049_v17  ;;  %v7575_v38 = vpop.permute.xlu1 %2220  ;;  %v3177_v26 = vadd.f32 %v6813_v2, %v3048_v3  ;;  %v9568_v7 = vld [vmem:[#allocation43_spill] sm:$0xff] }
 0x289   : > { %9561 = vst [vmem:[#allocation36_spill] sm:$0xff] %v7564_v24  ;;  %9563 = vst [vmem:[#allocation41_spill] sm:$0xff] %v7568_v10  ;;  %v7573_v6 = vpop.eup %4654  ;;  %v3051_v9 = vmul.f32 %v5036_v30, %v6619_v34  ;;  %v4213_v22 = vadd.f32 %v4212_v33, %v4211_v52  ;;  %v4229_v1 = vadd.f32 %v7564_v24, %v4228_v42  ;;  %v7589_v10 = vpop.permute.xlu0 %2215  ;;  %4664 = vpow2.f32 %v2809_v43  ;;  %v5037_v52 = vld [vmem:[%s5299_s9 + $0x170] sm:$0xff]  ;;  %v9574_v43 = vld [vmem:[#allocation46_spill] sm:$0xff] }
 0x28a   : > { %9564 = vst [vmem:[#allocation44_spill] sm:$0xff] %v7573_v6  ;;  %9565 = vst [vmem:[#allocation93_spill] sm:$0xff] %v7575_v38  ;;  %v7583_v4 = vadd.f32 %v9567_v51, %v9566_v8  ;;  %v7587_v17 = vadd.f32 %v7001_v53, %v9568_v7  ;;  %3478 = vperm.xlu1 %4589, %v3176_v47   ;;  %v4241_v3 = vadd.f32 %v7573_v6, %v4240_v23  ;;  %v9571_v8 = vld [vmem:[#allocation37_spill] sm:$0xff]  ;;  %v9572_v53 = vld [vmem:[#allocation95_spill] sm:$0xff] }
 0x28b   : > { %9569 = vst [vmem:[#allocation34_spill] sm:$0xff] %v7589_v10  ;;  %v7592_v38 = vpop.eup %4656  ;;  %3473 = vperm.xlu0 %4588, %v3175_v32   ;;  %v3050_v33 = vmul.f32 %v5037_v52, %v6619_v34  ;;  %v2825_v42 = vmul.f32 1.442695, %v2658_v57  ;;  %4666 = vpow2.f32 %v2823_v27  ;;  %v2659_v51 = vsub.f32 %v9571_v8, %v7319_v28  ;;  %v9576_v57 = vld [vmem:[#allocation96_spill] sm:$0xff]  ;;  %v5038_v8 = vld [vmem:[%s5299_s9 + $0x188] sm:$0xff]  ;;  %v5039_v6 = vld [vmem:[%s5299_s9 + $0x180] sm:$0xff] }
 0x28c   : > { %9570 = vst [vmem:[#allocation94_spill] sm:$0xff] %v7592_v38  ;;  %v7600_v30 = vmul.f32 %v7180_v39, %v9572_v53  ;;  %v2528_v47 = vmax.f32 %v2527_v59, %v7583_v4  ;;  %v7605_v23 = vadd.f32 %v7050_v54, %v9574_v43  ;;  %v2541_v32 = vmax.f32 %v2540_v58, %v7587_v17  ;;  %v7608_v7 = vpop.eup %4658  ;;  %v7614_v52 = vpop.permute.xlu1 %2230  ;;  %v5040_v24 = vld [vmem:[%s5299_s9 + $0x198] sm:$0xff] }
 0x28d   : > { %9575 = vst [vmem:[#allocation40_spill] sm:$0xff] %v7608_v7  ;;  %v7612_v27 = vmul.f32 %v7180_v39, %v9576_v57  ;;  %9578 = vst [vmem:[#allocation37_spill] sm:$0xff] %v7614_v52  ;;  %v3053_v53 = vmul.f32 %v5038_v8, %v6619_v34  ;;  %v4214_v10 = vrot.slane %v4213_v22, 2  ;;  %v4230_v59 = vadd.f32 %v7592_v38, %v4229_v1  ;;  %v7623_v43 = vpop.permute.xlu0 %2225  ;;  %v9582_v1 = vld [vmem:[#allocation109_spill] sm:$0xff] }
 0x28e   : > { %9573 = vst [vmem:[#allocation35_spill] sm:$0xff] %v7600_v30  ;;  %v9579_v30 = vld [vmem:[#allocation97_spill] sm:$0xff]  ;;  %9581 = vst [vmem:[#allocation46_spill] sm:$0xff] %v7623_v43  ;;  %3488 = vperm.xlu1 %4589, %v3178_v21   ;;  %v3180_v58 = vadd.f32 %v6813_v2, %v3051_v9  ;;  %v3052_v57 = vmul.f32 %v5039_v6, %v6619_v34  ;;  %v4242_v52 = vadd.f32 %v7608_v7, %v4241_v3  ;;  %v9584_v43 = vld [vmem:[#allocation98_spill] sm:$0xff] }
 0x28f   : > { %9577 = vst [vmem:[#allocation43_spill] sm:$0xff] %v7612_v27  ;;  %v7621_v54 = vmul.f32 %v7180_v39, %v9579_v30  ;;  %3483 = vperm.xlu0 %4588, %v3177_v26   ;;  %v3179_v8 = vadd.f32 %v6813_v2, %v3050_v33  ;;  %4668 = vpow2.f32 %v2825_v42  ;;  %v2660_v27 = vsub.f32 %v9582_v1, %v7319_v28  ;;  %v7632_v30 = vpop.eup %4660  ;;  %v9586_v9 = vld [vmem:[#allocation99_spill] sm:$0xff]  ;;  %v9589_v42 = vld [vmem:[#allocation100_spill] sm:$0xff]  ;;  %v9592_v7 = vld [vmem:[#allocation45_spill] sm:$0xff] }
 0x290   : > { %v2827_v38 = vmul.f32 1.442695, %v2659_v51  ;;  %9583 = vst [vmem:[#allocation96_spill] sm:$0xff] %v7632_v30  ;;  %v7636_v21 = vmul.f32 %v7180_v39, %v9584_v43  ;;  %v7640_v6 = vmul.f32 %v7180_v39, %v9586_v9  ;;  %v2529_v3 = vrot.slane %v2528_v47, 4  ;;  %v7649_v1 = vpop.permute.xlu1 %2240 }
 0x291   : > { %9580 = vst [vmem:[#allocation95_spill] sm:$0xff] %v7621_v54  ;;  %v2542_v26 = vmax.f32 %v2541_v32, %v7605_v23  ;;  %v7643_v33 = vpop.eup %4662  ;;  %v7647_v51 = vmul.f32 %v7180_v39, %v9589_v42  ;;  %9591 = vst [vmem:[#allocation100_spill] sm:$0xff] %v7649_v1  ;;  %v3182_v54 = vadd.f32 %v6813_v2, %v3053_v53  ;;  %v2829_v53 = vmul.f32 1.442695, %v2660_v27 }
 0x292   : > { %9585 = vst [vmem:[#allocation97_spill] sm:$0xff] %v7636_v21  ;;  %9587 = vst [vmem:[#allocation109_spill] sm:$0xff] %v7640_v6  ;;  %v4215_v43 = vadd.f32 %v4214_v10, %v4213_v22  ;;  %v4231_v21 = vadd.f32 %v7632_v30, %v4230_v59  ;;  %v7655_v9 = vadd.f32 %v7048_v25, %v9592_v7  ;;  %v7657_v6 = vpop.permute.xlu0 %2235  ;;  %3498 = vperm.xlu1 %4589, %v3180_v58   ;;  %v5041_v10 = vld [vmem:[%s5299_s9 + $0x190] sm:$0xff] }
 0x293   : > { %9588 = vst [vmem:[#allocation98_spill] sm:$0xff] %v7643_v33  ;;  %9590 = vst [vmem:[#allocation99_spill] sm:$0xff] %v7647_v51  ;;  %v3181_v32 = vadd.f32 %v6813_v2, %v3052_v57  ;;  %v3055_v42 = vmul.f32 %v5040_v24, %v6619_v34  ;;  %v4243_v1 = vadd.f32 %v7643_v33, %v4242_v52  ;;  %3493 = vperm.xlu0 %4588, %v3179_v8   ;;  %v9594_v25 = vld [vmem:[#allocation52_spill] sm:$0xff]  ;;  %v7667_v59 = vpop.eup %4664  ;;  %v5042_v52 = vld [vmem:[%s5299_s9 + $0x1a8] sm:$0xff] }
 0x294   : > { %9593 = vst [vmem:[#allocation45_spill] sm:$0xff] %v7657_v6  ;;  %v3054_v22 = vmul.f32 %v5041_v10, %v6619_v34  ;;  %4670 = vpow2.f32 %v2827_v38  ;;  %v2661_v7 = vsub.f32 %v9594_v25, %v7319_v28  ;;  %9595 = vst [vmem:[#allocation52_spill] sm:$0xff] %v7667_v59  ;;  %v2530_v58 = vmax.f32 %v2528_v47, %v2529_v3  ;;  %v9596_v6 = vld [vmem:[#allocation48_spill] sm:$0xff]  ;;  %v9599_v10 = vld [vmem:[#allocation101_spill] sm:$0xff]  ;;  %v7682_v27 = vpop.permute.xlu1 %2250 }
 0x295   : > { %v7671_v57 = vadd.f32 %v7089_v63, %v9596_v6  ;;  %v2543_v24 = vmax.f32 %v2542_v26, %v7655_v9  ;;  %v3057_v8 = vmul.f32 %v5042_v52, %v6619_v34  ;;  %v7676_v51 = vpop.eup %4666  ;;  %v7680_v38 = vmul.f32 %v7180_v39, %v9599_v10  ;;  %9601 = vst [vmem:[#allocation136_spill] sm:$0xff] %v7682_v27  ;;  %v5043_v25 = vld [vmem:[%s5299_s9 + $0x1a0] sm:$0xff]  ;;  %v9604_v33 = vld [vmem:[#allocation103_spill] sm:$0xff]  ;;  %v9608_v27 = vld [vmem:[#allocation104_spill] sm:$0xff] }
 0x296   : > { %9598 = vst [vmem:[#allocation135_spill] sm:$0xff] %v7676_v51  ;;  %v3056_v47 = vmul.f32 %v5043_v25, %v6619_v34  ;;  %v4216_v3 = vrot.slane %v4215_v43, 1  ;;  %v4232_v63 = vadd.f32 %v7667_v59, %v4231_v21  ;;  %v9602_v6 = vld [vmem:[#allocation102_spill] sm:$0xff]  ;;  %v7693_v52 = vmul.f32 %v7180_v39, %v9604_v33  ;;  %v7695_v30 = vpop.permute.xlu0 %2245  ;;  %3508 = vperm.xlu1 %4589, %v3182_v54   ;;  %v5046_v59 = vld [vmem:[%s5299_s9 + $0x1c8] sm:$0xff] }
 0x297   : > { %9597 = vst [vmem:[#allocation48_spill] sm:$0xff] %v7671_v57  ;;  %9600 = vst [vmem:[#allocation101_spill] sm:$0xff] %v7680_v38  ;;  %v7689_v26 = vmul.f32 %v7180_v39, %v9602_v6  ;;  %v3184_v10 = vadd.f32 %v6813_v2, %v3055_v42  ;;  %v4244_v38 = vadd.f32 %v7676_v51, %v4243_v1  ;;  %3503 = vperm.xlu0 %4588, %v3181_v32   ;;  %v9607_v21 = vld [vmem:[#allocation62_spill] sm:$0xff] }
 0x298   : > { %9605 = vst [vmem:[#allocation103_spill] sm:$0xff] %v7693_v52  ;;  %9606 = vst [vmem:[#allocation137_spill] sm:$0xff] %v7695_v30  ;;  %v3183_v25 = vadd.f32 %v6813_v2, %v3054_v22  ;;  %4672 = vpow2.f32 %v2829_v53  ;;  %v2662_v6 = vsub.f32 %v9607_v21, %v7319_v28  ;;  %v7704_v33 = vmul.f32 %v7180_v39, %v9608_v27  ;;  %v7710_v32 = vpop.permute.xlu1 %2260  ;;  %v5044_v53 = vld [vmem:[%s5299_s9 + $0x1b8] sm:$0xff]  ;;  %v9612_v27 = vld [vmem:[#allocation47_spill] sm:$0xff] }
 0x299   : > { %9603 = vst [vmem:[#allocation102_spill] sm:$0xff] %v7689_v26  ;;  %v2831_v26 = vmul.f32 1.442695, %v2661_v7  ;;  %v2531_v52 = vrot.slane %v2530_v58, 2  ;;  %v2544_v54 = vmax.f32 %v2543_v24, %v7671_v57  ;;  %v3186_v42 = vadd.f32 %v6813_v2, %v3057_v8  ;;  %v7708_v1 = vpop.eup %4668  ;;  %9611 = vst [vmem:[#allocation138_spill] sm:$0xff] %v7710_v32  ;;  %v5045_v24 = vld [vmem:[%s5299_s9 + $0x1b0] sm:$0xff] }
 0x29a   : > { %9609 = vst [vmem:[#allocation62_spill] sm:$0xff] %v7704_v33  ;;  %9610 = vst [vmem:[#allocation104_spill] sm:$0xff] %v7708_v1  ;;  %v3185_v22 = vadd.f32 %v6813_v2, %v3056_v47  ;;  %v3059_v7 = vmul.f32 %v5044_v53, %v6619_v34  ;;  %v4217_v21 = vadd.f32 %v4216_v3, %v4215_v43  ;;  %v4233_v51 = vrot.slane %v4232_v63, 4  ;;  %v7719_v30 = vpop.permute.xlu0 %2255  ;;  %v5047_v57 = vld [vmem:[%s5299_s9 + $0x1c0] sm:$0xff] }
 0x29b   : > { %v7717_v33 = vadd.f32 %v7087_v31, %v9612_v27  ;;  %9613 = vst [vmem:[#allocation47_spill] sm:$0xff] %v7719_v30  ;;  %3518 = vperm.xlu1 %4589, %v3184_v10   ;;  %v3058_v8 = vmul.f32 %v5045_v24, %v6619_v34  ;;  %v3061_v32 = vmul.f32 %v5046_v59, %v6619_v34  ;;  %v2833_v3 = vmul.f32 1.442695, %v2662_v6  ;;  %v9614_v31 = vld [vmem:[#allocation66_spill] sm:$0xff]  ;;  %v9615_v30 = vld [vmem:[#allocation49_spill] sm:$0xff] }
 0x29c   : > { %v4245_v47 = vadd.f32 %v7708_v1, %v4244_v38  ;;  %3513 = vperm.xlu0 %4588, %v3183_v25   ;;  %v3060_v43 = vmul.f32 %v5047_v57, %v6619_v34  ;;  %4674 = vpow2.f32 %v2831_v26  ;;  %v2663_v53 = vsub.f32 %v9614_v31, %v7319_v28  ;;  %v9618_v25 = vld [vmem:[#allocation105_spill] sm:$0xff]  ;;  %v9620_v26 = vld [vmem:[#allocation106_spill] sm:$0xff]  ;;  %v7747_v31 = vpop.permute.xlu1 %2270 }
 0x29d   : > { %v2665_v10 = vsub.f32 %v7076_v45, %v7319_v28  ;;  %v2532_v27 = vmax.f32 %v2530_v58, %v2531_v52  ;;  %v7734_v24 = vadd.f32 %v7123_v62, %v9615_v30  ;;  %v2545_v59 = vmax.f32 %v2544_v54, %v7717_v33  ;;  %9622 = vst [vmem:[#allocation139_spill] sm:$0xff] %v7747_v31  ;;  %v5053_v31 = vld [vmem:[%s5299_s9 + $0x1f0] sm:$0xff] }
 0x29e   : > { %v7737_v38 = vpop.eup %4670  ;;  %v7741_v57 = vmul.f32 %v7180_v39, %v9618_v25  ;;  %v7745_v6 = vmul.f32 %v7180_v39, %v9620_v26  ;;  %4676 = vrcp.f32 %v4217_v21  ;;  %v4234_v45 = vadd.f32 %v4233_v51, %v4232_v63  ;;  %v7749_v58 = vpop.permute.xlu0 %2265  ;;  %v9624_v51 = vld [vmem:[#allocation76_spill] sm:$0xff] }
 0x29f   : > { %9616 = vst [vmem:[#allocation66_spill] sm:$0xff] %v7734_v24  ;;  %9617 = vst [vmem:[#allocation49_spill] sm:$0xff] %v7737_v38  ;;  %3528 = vperm.xlu1 %4589, %v3186_v42   ;;  %v3188_v62 = vadd.f32 %v6813_v2, %v3059_v7  ;;  %v3187_v30 = vadd.f32 %v6813_v2, %v3058_v8  ;;  %v3190_v52 = vadd.f32 %v6813_v2, %v3061_v32  ;;  %v5048_v8 = vld [vmem:[%s5299_s9 + $0x1d8] sm:$0xff] }
 0x2a0   : > { %9619 = vst [vmem:[#allocation105_spill] sm:$0xff] %v7741_v57  ;;  %9621 = vst [vmem:[#allocation106_spill] sm:$0xff] %v7745_v6  ;;  %v4246_v54 = vadd.f32 %v7737_v38, %v4245_v47  ;;  %3523 = vperm.xlu0 %4588, %v3185_v22   ;;  %v3189_v39 = vadd.f32 %v6813_v2, %v3060_v43  ;;  %4678 = vpow2.f32 %v2833_v3  ;;  %v2835_v21 = vmul.f32 1.442695, %v2663_v53  ;;  %v7763_v22 = vpop.permute.xlu1 %2280  ;;  %v5049_v47 = vld [vmem:[%s5299_s9 + $0x1d0] sm:$0xff]  ;;  %v5050_v3 = vld [vmem:[%s5299_s9 + $0x1e8] sm:$0xff] }
 0x2a1   : > { %9623 = vst [vmem:[#allocation140_spill] sm:$0xff] %v7749_v58  ;;  %v2664_v63 = vsub.f32 %v9624_v51, %v7319_v28  ;;  %v2839_v42 = vmul.f32 1.442695, %v2665_v10  ;;  %v2533_v25 = vrot.slane %v2532_v27, 1  ;;  %v2546_v7 = vmax.f32 %v2545_v59, %v7734_v24  ;;  %9626 = vst [vmem:[#allocation141_spill] sm:$0xff] %v7763_v22  ;;  %v5051_v53 = vld [vmem:[%s5299_s9 + $0x1e0] sm:$0xff] }
 0x2a2   : > { %v3063_v32 = vmul.f32 %v5048_v8, %v6619_v34  ;;  %v7761_v26 = vpop.eup %4672  ;;  %v3062_v43 = vmul.f32 %v5049_v47, %v6619_v34  ;;  %v3065_v51 = vmul.f32 %v5050_v3, %v6619_v34  ;;  %v3064_v10 = vmul.f32 %v5051_v53, %v6619_v34  ;;  %v9627_v6 = vld [vmem:[#allocation108_spill] sm:$0xff]  ;;  %v7775_v38 = vpop.permute.xlu0 %2275  ;;  %v5052_v8 = vld [vmem:[%s5299_s9 + $0x1f8] sm:$0xff]  ;;  %v9632_v53 = vld [vmem:[#allocation54_spill] sm:$0xff] }
 0x2a3   : > { %9625 = vst [vmem:[#allocation76_spill] sm:$0xff] %v7761_v26  ;;  %v4235_v57 = vrot.slane %v4234_v45, 2  ;;  %v7773_v59 = vadd.f32 %v7121_v19, %v9627_v6  ;;  %9629 = vst [vmem:[#allocation142_spill] sm:$0xff] %v7775_v38  ;;  %3538 = vperm.xlu1 %4589, %v3188_v62   ;;  %v3067_v22 = vmul.f32 %v5052_v8, %v6619_v34  ;;  %v9630_v3 = vld [vmem:[#allocation53_spill] sm:$0xff]  ;;  %v2837_v19 = vmul.f32 1.442695, %v2664_v63 }
 0x2a4   : > { %v3066_v47 = vmul.f32 %v5053_v31, %v6619_v34  ;;  %v4247_v1 = vadd.f32 %v7761_v26, %v4246_v54  ;;  %v7784_v58 = vadd.f32 %v7189_v41, %v9630_v3  ;;  %v7788_v24 = vadd.f32 %v7191_v12, %v9632_v53  ;;  %3533 = vperm.xlu0 %4588, %v3187_v30   ;;  %v9634_v62 = vld [vmem:[#allocation51_spill] sm:$0xff]  ;;  %v9636_v41 = vld [vmem:[#allocation56_spill] sm:$0xff]  ;;  %v7803_v12 = vpop.permute.xlu1 %2290  ;;  %v9677_v38 = vld [vmem:[#allocation81_spill] sm:$0xff] }
 0x2a5   : > { %9628 = vst [vmem:[#allocation108_spill] sm:$0xff] %v7773_v59  ;;  %4680 = vpow2.f32 %v2835_v21  ;;  %v7790_v6 = vmax.f32 %v2532_v27, %v2533_v25  ;;  %v7794_v8 = vadd.f32 %v7152_v37, %v9634_v62  ;;  %v2547_v31 = vmax.f32 %v2546_v7, %v7773_v59  ;;  %9638 = vst [vmem:[#allocation143_spill] sm:$0xff] %v7803_v12 }
 0x2a6   : > { %9631 = vst [vmem:[#allocation53_spill] sm:$0xff] %v7784_v58  ;;  %9633 = vst [vmem:[#allocation54_spill] sm:$0xff] %v7788_v24  ;;  %4682 = vpow2.f32 %v2839_v42  ;;  %v7797_v54 = vpop.eup %4674  ;;  %v7801_v3 = vadd.f32 %v7219_v36, %v9636_v41  ;;  %v3192_v30 = vadd.f32 %v6813_v2, %v3063_v32  ;;  %v3191_v63 = vadd.f32 %v6813_v2, %v3062_v43  ;;  %v7807_v21 = vpop.permute.xlu0 %2285 }
 0x2a7   : > { %9635 = vst [vmem:[#allocation51_spill] sm:$0xff] %v7797_v54  ;;  %v4236_v27 = vadd.f32 %v4235_v57, %v4234_v45  ;;  %9639 = vst [vmem:[#allocation144_spill] sm:$0xff] %v7807_v21  ;;  %3548 = vperm.xlu1 %4589, %v3190_v52   ;;  %v3194_v37 = vadd.f32 %v6813_v2, %v3065_v51  ;;  %v3193_v42 = vadd.f32 %v6813_v2, %v3064_v10  ;;  %v5055_v51 = vld [vmem:[%s5299_s9 + $0x200] sm:$0xff] }
 0x2a8   : > { %9637 = vst [vmem:[#allocation56_spill] sm:$0xff] %v7801_v3  ;;  %v7812_v25 = vadd.f32 %v6813_v2, %v3067_v22  ;;  %v4248_v36 = vadd.f32 %v7797_v54, %v4247_v1  ;;  %v7815_v7 = vpop.eup %4676  ;;  %v2556_v32 = vmax.f32 %v7788_v24, %v7784_v58  ;;  %3543 = vperm.xlu0 %4588, %v3189_v39   ;;  %4684 = vpow2.f32 %v2837_v19  ;;  %v5054_v22 = vld [vmem:[%s5299_s9 + $0x208] sm:$0xff]  ;;  %v7834_v53 = vpop.permute.xlu1 %2300 }
 0x2a9   : > { %v7820_v57 = vadd.f32 %v6813_v2, %v3066_v47  ;;  %v2666_v45 = vsub.f32 %v7133_v35, %v7319_v28  ;;  %v2681_v52 = vsub.f32 %v7538_v29, %v7790_v6  ;;  %v2548_v1 = vmax.f32 %v2547_v31, %v7794_v8  ;;  %9641 = vst [vmem:[#allocation146_spill] sm:$0xff] %v7834_v53  ;;  %v5056_v35 = vld [vmem:[%s5299_s9 + $0x218] sm:$0xff]  ;;  %v5057_v29 = vld [vmem:[%s5299_s9 + $0x210] sm:$0xff]  ;;  %v9642_v31 = vld [vmem:[#allocation50_spill] sm:$0xff] }
 0x2aa   : > { %v3069_v43 = vmul.f32 %v5054_v22, %v6619_v34  ;;  %v3068_v10 = vmul.f32 %v5055_v51, %v6619_v34  ;;  %v7831_v39 = vpop.eup %4678  ;;  %v2557_v47 = vmax.f32 %v2556_v32, %v7801_v3  ;;  %v3071_v28 = vmul.f32 %v5056_v35, %v6619_v34  ;;  %v7844_v22 = vpop.permute.xlu0 %2295  ;;  %v5058_v51 = vld [vmem:[%s5299_s9 + $0x228] sm:$0xff] }
 0x2ab   : > { %9640 = vst [vmem:[#allocation145_spill] sm:$0xff] %v7831_v39  ;;  %v3070_v19 = vmul.f32 %v5057_v29, %v6619_v34  ;;  %v4237_v62 = vrot.slane %v4236_v27, 1  ;;  %v7842_v41 = vadd.f32 %v7150_v0, %v9642_v31  ;;  %9644 = vst [vmem:[#allocation147_spill] sm:$0xff] %v7844_v22  ;;  %3558 = vperm.xlu1 %4589, %v3192_v30   ;;  %v9645_v35 = vld [vmem:[#allocation55_spill] sm:$0xff]  ;;  %v5059_v29 = vld [vmem:[%s5299_s9 + $0x220] sm:$0xff] }
 0x2ac   : > { %v3073_v32 = vmul.f32 %v5058_v51, %v6619_v34  ;;  %v4249_v12 = vadd.f32 %v7831_v39, %v4248_v36  ;;  %v2668_v53 = vsub.f32 %v7160_v44, %v7790_v6  ;;  %v7853_v3 = vadd.f32 %v7217_v56, %v9645_v35  ;;  %3553 = vperm.xlu0 %4588, %v3191_v63   ;;  %v9647_v22 = vld [vmem:[#allocation86_spill] sm:$0xff]  ;;  %v9650_v63 = vld [vmem:[#allocation16_spill] sm:$0xff]  ;;  %v5066_v54 = vld [vmem:[%s5299_s9 + $0x268] sm:$0xff] }
 0x2ad   : > { %9643 = vst [vmem:[#allocation50_spill] sm:$0xff] %v7842_v41  ;;  %v3072_v0 = vmul.f32 %v5059_v29, %v6619_v34  ;;  %v2841_v31 = vmul.f32 1.442695, %v2666_v45  ;;  %v2667_v30 = vsub.f32 %v9647_v22, %v7790_v6  ;;  %v2871_v21 = vmul.f32 1.442695, %v2681_v52  ;;  %v9649_v56 = vld [vmem:[#allocation58_spill] sm:$0xff]  ;;  %v7871_v29 = vpop.permute.xlu1 %2310 }
 0x2ae   : > { %9646 = vst [vmem:[#allocation55_spill] sm:$0xff] %v7853_v3  ;;  %v2549_v51 = vmax.f32 %v2548_v1, %v7842_v41  ;;  %v3198_v36 = vadd.f32 %v6813_v2, %v3069_v43  ;;  %v7862_v39 = vadd.f32 %v6813_v2, %v3068_v10  ;;  %v7868_v35 = vadd.f32 %v9650_v63, %v9649_v56  ;;  %v7878_v10 = vpop.permute.xlu0 %2305 }
 0x2af   : > { %v7864_v44 = vpop.eup %4680  ;;  %v2558_v45 = vmax.f32 %v2557_v47, %v7853_v3  ;;  %9652 = vst [vmem:[#allocation16_spill] sm:$0xff] %v7871_v29  ;;  %v7874_v52 = vadd.f32 %v6813_v2, %v3071_v28  ;;  %v4238_v1 = vadd.f32 %v4237_v62, %v4236_v27  ;;  %9654 = vst [vmem:[#allocation149_spill] sm:$0xff] %v7878_v10  ;;  %3568 = vperm.xlu1 %4589, %v3194_v37   ;;  %v5060_v28 = vld [vmem:[%s5299_s9 + $0x238] sm:$0xff]  ;;  %v5062_v10 = vld [vmem:[%s5299_s9 + $0x248] sm:$0xff] }
 0x2b0   : > { %9648 = vst [vmem:[#allocation86_spill] sm:$0xff] %v7864_v44  ;;  %9651 = vst [vmem:[#allocation58_spill] sm:$0xff] %v7868_v35  ;;  %v7876_v43 = vpop.eup %4682  ;;  %v7881_v22 = vadd.f32 %v6813_v2, %v3070_v19  ;;  %v7884_v56 = vadd.f32 %v6813_v2, %v3073_v32  ;;  %v4250_v47 = vadd.f32 %v7864_v44, %v4249_v12  ;;  %v2845_v63 = vmul.f32 1.442695, %v2668_v53  ;;  %v5061_v19 = vld [vmem:[%s5299_s9 + $0x230] sm:$0xff]  ;;  %v5063_v3 = vld [vmem:[%s5299_s9 + $0x240] sm:$0xff] }
 0x2b1   : > { %9653 = vst [vmem:[#allocation148_spill] sm:$0xff] %v7876_v43  ;;  %3563 = vperm.xlu0 %4588, %v3193_v42   ;;  %v7888_v27 = vadd.f32 %v6813_v2, %v3072_v0  ;;  %v3075_v62 = vmul.f32 %v5060_v28, %v6619_v34  ;;  %4686 = vpow2.f32 %v2841_v31  ;;  %v2843_v29 = vmul.f32 1.442695, %v2667_v30  ;;  %v7899_v0 = vpop.permute.xlu1 %2320 }
 0x2b2   : > { %4688 = vpow2.f32 %v2871_v21  ;;  %v2550_v37 = vrot.slane %v2549_v51, 4  ;;  %v3074_v32 = vmul.f32 %v5061_v19, %v6619_v34  ;;  %v3077_v12 = vmul.f32 %v5062_v10, %v6619_v34  ;;  %v7896_v53 = vpop.eup %4684  ;;  %9656 = vst [vmem:[#allocation151_spill] sm:$0xff] %v7899_v0  ;;  %v9657_v21 = vld [vmem:[#allocation89_spill] sm:$0xff]  ;;  %v7905_v28 = vpop.permute.xlu0 %2315 }
 0x2b3   : > { %9655 = vst [vmem:[#allocation150_spill] sm:$0xff] %v7896_v53  ;;  %v2559_v42 = vmax.f32 %v2558_v45, %v7868_v35  ;;  %v3076_v31 = vmul.f32 %v5063_v3, %v6619_v34  ;;  %4690 = vrcp.f32 %v4238_v1  ;;  %v2669_v30 = vsub.f32 %v9657_v21, %v7790_v6  ;;  %9658 = vst [vmem:[#allocation89_spill] sm:$0xff] %v7905_v28  ;;  %v5064_v19 = vld [vmem:[%s5299_s9 + $0x258] sm:$0xff]  ;;  %v9659_v45 = vld [vmem:[#allocation130_spill] sm:$0xff] }
 0x2b4   : > { %3578 = vperm.xlu1 %4589, %v7812_v25   ;;  %v3079_v10 = vmul.f32 %v5064_v19, %v6619_v34  ;;  %v4251_v44 = vadd.f32 %v7896_v53, %v4250_v47  ;;  %4692 = vpow2.f32 %v2845_v63  ;;  %v2670_v0 = vsub.f32 %v9659_v45, %v7790_v6  ;;  %v9660_v35 = vld [vmem:[#allocation57_spill] sm:$0xff]  ;;  %v9661_v3 = vld [vmem:[#allocation26_spill] sm:$0xff]  ;;  %v5065_v25 = vld [vmem:[%s5299_s9 + $0x250] sm:$0xff] }
 0x2b5   : > { %v7915_v1 = vadd.f32 %v9661_v3, %v9660_v35  ;;  %3573 = vperm.xlu0 %4588, %v7820_v57   ;;  %v7919_v21 = vadd.f32 %v6813_v2, %v3075_v62  ;;  %v3078_v28 = vmul.f32 %v5065_v25, %v6619_v34  ;;  %4694 = vpow2.f32 %v2843_v29  ;;  %v9663_v45 = vld [vmem:[#allocation117_spill] sm:$0xff]  ;;  %v9664_v3 = vld [vmem:[#allocation60_spill] sm:$0xff]  ;;  %v9665_v53 = vld [vmem:[#allocation22_spill] sm:$0xff]  ;;  %v3269_v24 = vpop.permute.xlu1 %3268 }
 0x2b6   : > { %v2551_v19 = vmax.f32 %v2549_v51, %v2550_v37  ;;  %v7924_v47 = vadd.f32 %v6813_v2, %v3074_v32  ;;  %v7927_v63 = vadd.f32 %v6813_v2, %v3077_v12  ;;  %v2672_v35 = vsub.f32 %v9663_v45, %v7790_v6  ;;  %v3264_v37 = vpop.permute.xlu0 %3263  ;;  %v9667_v45 = vld [vmem:[#allocation70_spill] sm:$0xff] }
 0x2b7   : > { %9662 = vst [vmem:[#allocation130_spill] sm:$0xff] %v7915_v1  ;;  %v7933_v57 = vadd.f32 %v9665_v53, %v9664_v3  ;;  %v2560_v62 = vmax.f32 %v2559_v42, %v7915_v1  ;;  %v3081_v29 = vmul.f32 %v5066_v54, %v6619_v34  ;;  %v2847_v51 = vmul.f32 1.442695, %v2669_v30  ;;  %v9668_v42 = vld [vmem:[#allocation73_spill] sm:$0xff] }
 0x2b8   : > { %3588 = vperm.xlu1 %4589, %v3198_v36   ;;  %v7939_v32 = vadd.f32 %v6813_v2, %v3076_v31  ;;  %v7942_v12 = vadd.f32 %v6813_v2, %v3079_v10  ;;  %v4252_v25 = vadd.f32 %v7876_v43, %v4251_v44  ;;  %v2849_v53 = vmul.f32 1.442695, %v2670_v0  ;;  %v9669_v36 = vld [vmem:[#allocation121_spill] sm:$0xff]  ;;  %v9670_v10 = vld [vmem:[#allocation122_spill] sm:$0xff]  ;;  %v9671_v44 = vld [vmem:[#allocation15_spill] sm:$0xff] }
 0x2b9   : > { %9666 = vst [vmem:[#allocation57_spill] sm:$0xff] %v7933_v57  ;;  %v3902_v3 = vmul.f32 %v9667_v45, %v3269_v24  ;;  %v3901_v1 = vmul.f32 %v9668_v42, %v3264_v37  ;;  %3583 = vperm.xlu0 %4588, %v7862_v39   ;;  %v7949_v54 = vadd.f32 %v6813_v2, %v3078_v28  ;;  %v2552_v30 = vrot.slane %v2551_v19, 2  ;;  %v3279_v37 = vpop.permute.xlu1 %3278  ;;  %v5067_v28 = vld [vmem:[%s5299_s9 + $0x260] sm:$0xff] }
 0x2ba   : > { %v2671_v31 = vsub.f32 %v9669_v36, %v7790_v6  ;;  %v2853_v26 = vmul.f32 1.442695, %v2672_v35  ;;  %v2674_v58 = vsub.f32 %v9670_v10, %v7790_v6  ;;  %v2673_v0 = vsub.f32 %v9671_v44, %v7790_v6  ;;  %v3274_v42 = vpop.permute.xlu0 %3273  ;;  %v9675_v44 = vld [vmem:[#allocation59_spill] sm:$0xff] }
 0x2bb   : > { %v7957_v43 = vpop.eup %4686  ;;  %v2561_v24 = vmax.f32 %v2560_v62, %v7933_v57  ;;  %v7961_v39 = vadd.f32 %v6813_v2, %v3081_v29  ;;  %v7965_v45 = vmul.f32 %v5067_v28, %v6619_v34  ;;  %4696 = vpow2.f32 %v2847_v51  ;;  %v9676_v28 = vld [vmem:[#allocation131_spill] sm:$0xff] }
 0x2bc   : > { %9672 = vst [vmem:[#allocation26_spill] sm:$0xff] %v7957_v43  ;;  %v7967_v35 = vpop.eup %4688  ;;  %3598 = vperm.xlu1 %4589, %v7874_v52   ;;  %v4253_v36 = vadd.f32 %v7957_v43, %v4252_v25  ;;  %4698 = vpow2.f32 %v2849_v53  ;;  %v2676_v62 = vsub.f32 %v7391_v13, %v7790_v6  ;;  %v2675_v29 = vsub.f32 %v7351_v14, %v7790_v6  ;;  %v9678_v14 = vld [vmem:[#allocation110_spill] sm:$0xff] }
 0x2bd   : > { %9673 = vst [vmem:[#allocation117_spill] sm:$0xff] %v7967_v35  ;;  %v7975_v10 = vpop.eup %4690  ;;  %v7979_v57 = vadd.f32 %v9676_v28, %v9675_v44  ;;  %v4029_v51 = vadd.f32 %v3902_v3, %v3901_v1  ;;  %v3903_v41 = vmul.f32 %v9677_v38, %v3274_v42  ;;  %3593 = vperm.xlu0 %4588, %v7881_v22   ;;  %v2851_v52 = vmul.f32 1.442695, %v2671_v31  ;;  %v9680_v1 = vld [vmem:[#allocation84_spill] sm:$0xff]  ;;  %v3289_v42 = vpop.permute.xlu1 %3288 }
 0x2be   : > { %9674 = vst [vmem:[#allocation60_spill] sm:$0xff] %v7975_v10  ;;  %v7983_v25 = vpop.eup %4692  ;;  %v2553_v53 = vmax.f32 %v2551_v19, %v2552_v30  ;;  %4700 = vpow2.f32 %v2853_v26  ;;  %v2857_v13 = vmul.f32 1.442695, %v2674_v58  ;;  %v2855_v43 = vmul.f32 1.442695, %v2673_v0  ;;  %v9679_v10 = vld [vmem:[#allocation120_spill] sm:$0xff]  ;;  %v3284_v22 = vpop.permute.xlu0 %3283 }
 0x2bf   : > { %v7985_v35 = vpop.eup %4694  ;;  %v7989_v59 = vadd.f32 %v9679_v10, %v9678_v14  ;;  %v2562_v44 = vmax.f32 %v2561_v24, %v7979_v57  ;;  %v3904_v3 = vmul.f32 %v9680_v1, %v3279_v37  ;;  %v4030_v38 = vadd.f32 %v4029_v51, %v3903_v41  ;;  %v9681_v30 = vld [vmem:[#allocation87_spill] sm:$0xff]  ;;  %v9683_v1 = vld [vmem:[#allocation61_spill] sm:$0xff] }
 0x2c0   : > { %3608 = vperm.xlu1 %4589, %v7884_v56   ;;  %v4254_v31 = vrot.slane %v4253_v36, 4  ;;  %v2861_v19 = vmul.f32 1.442695, %v2676_v62  ;;  %v2859_v26 = vmul.f32 1.442695, %v2675_v29  ;;  %v2678_v58 = vsub.f32 %v7457_v5, %v7790_v6  ;;  %v9682_v62 = vld [vmem:[#allocation127_spill] sm:$0xff] }
 0x2c1   : > { %v3905_v0 = vmul.f32 %v9681_v30, %v3284_v22  ;;  %v4031_v28 = vadd.f32 %v4030_v38, %v3904_v3  ;;  %3603 = vperm.xlu0 %4588, %v7888_v27   ;;  %4702 = vpow2.f32 %v2851_v52  ;;  %v2677_v41 = vsub.f32 %v7414_v46, %v7790_v6  ;;  %v3299_v27 = vpop.permute.xlu1 %3298 }
 0x2c2   : > { %v2554_v24 = vrot.slane %v2553_v53, 1  ;;  %v4260_v56 = vadd.f32 %v7985_v35, %v7983_v25  ;;  %4704 = vpow2.f32 %v2857_v13  ;;  %v2680_v37 = vsub.f32 %v7518_v11, %v7790_v6  ;;  %v3294_v51 = vpop.permute.xlu0 %3293  ;;  %v9684_v11 = vld [vmem:[#allocation132_spill] sm:$0xff] }
 0x2c3   : > { %v2563_v5 = vmax.f32 %v2562_v44, %v7989_v59  ;;  %v3906_v29 = vmul.f32 %v9682_v62, %v3289_v42  ;;  %v4032_v10 = vadd.f32 %v4031_v28, %v3905_v0  ;;  %4706 = vpow2.f32 %v2855_v43  ;;  %v9685_v44 = vld [vmem:[#allocation114_spill] sm:$0xff]  ;;  %v9689_v28 = vld [vmem:[#allocation116_spill] sm:$0xff] }
 0x2c4   : > { %3618 = vperm.xlu1 %4589, %v7919_v21   ;;  %v4255_v52 = vadd.f32 %v4254_v31, %v4253_v36  ;;  %4708 = vpow2.f32 %v2861_v19  ;;  %v2865_v46 = vmul.f32 1.442695, %v2678_v58  ;;  %v2679_v14 = vsub.f32 %v7474_v50, %v7790_v6  ;;  %v9686_v19 = vld [vmem:[#allocation64_spill] sm:$0xff]  ;;  %v9687_v58 = vld [vmem:[#allocation27_spill] sm:$0xff] }
 0x2c5   : > { %v8011_v13 = vpop.eup %4696  ;;  %v8015_v3 = vadd.f32 %v9684_v11, %v9683_v1  ;;  %v3907_v38 = vmul.f32 %v9685_v44, %v3294_v51  ;;  %v4033_v42 = vadd.f32 %v4032_v10, %v3906_v29  ;;  %3613 = vperm.xlu0 %4588, %v7924_v47   ;;  %v2863_v43 = vmul.f32 1.442695, %v2677_v41  ;;  %v3309_v62 = vpop.permute.xlu1 %3308 }
 0x2c6   : > { %v8019_v22 = vpop.eup %4698  ;;  %v8021_v21 = vmax.f32 %v2553_v53, %v2554_v24  ;;  %v4261_v36 = vadd.f32 %v8011_v13, %v4260_v56  ;;  %v2869_v31 = vmul.f32 1.442695, %v2680_v37  ;;  %v2682_v50 = vsub.f32 %v7583_v4, %v7790_v6  ;;  %v3304_v53 = vpop.permute.xlu0 %3303  ;;  %v9690_v56 = vld [vmem:[#allocation13_spill] sm:$0xff] }
 0x2c7   : > { %v8028_v30 = vadd.f32 %v9687_v58, %v9686_v19  ;;  %v2564_v0 = vmax.f32 %v2563_v5, %v8015_v3  ;;  %v3908_v47 = vmul.f32 %v9689_v28, %v3299_v27  ;;  %v4034_v41 = vadd.f32 %v4033_v42, %v3907_v38  ;;  %v9693_v19 = vld [vmem:[#allocation134_spill] sm:$0xff] }
 0x2c8   : > { %v8032_v29 = vpop.eup %4700  ;;  %3628 = vperm.xlu1 %4589, %v7927_v63   ;;  %v3209_v24 = vadd.f32 %v6813_v2, %v7965_v45  ;;  %v4256_v4 = vrot.slane %v4255_v52, 2  ;;  %4710 = vpow2.f32 %v2859_v26  ;;  %v2867_v6 = vmul.f32 1.442695, %v2679_v14  ;;  %v9691_v14 = vld [vmem:[#allocation119_spill] sm:$0xff] }
 0x2c9   : > { %9688 = vst [vmem:[#allocation22_spill] sm:$0xff] %v8028_v30  ;;  %v3909_v37 = vmul.f32 %v9690_v56, %v3304_v53  ;;  %v4035_v10 = vadd.f32 %v4034_v41, %v3908_v47  ;;  %3623 = vperm.xlu0 %4588, %v7939_v32   ;;  %v8040_v5 = vstv %s7998_s26  ;;  %4712 = vpow2.f32 %v2865_v46  ;;  %v3319_v32 = vpop.permute.xlu1 %3318  ;;  %v9696_v53 = vld [vmem:[#allocation67_spill] sm:$0xff] }
 0x2ca   : > { %v2697_v27 = vsub.f32 %v7794_v8, %v8021_v21  ;;  %v4262_v63 = vadd.f32 %v8019_v22, %v4261_v36  ;;  %4714 = vpow2.f32 %v2863_v43  ;;  %v2873_v51 = vmul.f32 1.442695, %v2682_v50  ;;  %v3314_v46 = vpop.permute.xlu0 %3313  ;;  %v5068_v8 = vld [vmem:[%s5299_s9 + $0x278] sm:$0xff]  ;;  %v9692_v50 = vld [vmem:[#allocation63_spill] sm:$0xff] }
 0x2cb   : > { %v8045_v45 = vpop.eup %4702  ;;  %v2565_v26 = vmax.f32 %v2564_v0, %v8028_v30  ;;  %v3910_v1 = vmul.f32 %v9691_v14, %v3309_v62  ;;  %v4036_v11 = vadd.f32 %v4035_v10, %v3909_v37  ;;  %4716 = vpow2.f32 %v2869_v31  ;;  %v9695_v31 = vld [vmem:[#allocation12_spill] sm:$0xff] }
 0x2cc   : > { %v8049_v44 = vpop.eup %4704  ;;  %3638 = vperm.xlu1 %4589, %v7942_v12   ;;  %v3083_v38 = vmul.f32 %v5068_v8, %v6619_v34  ;;  %v4257_v42 = vadd.f32 %v4256_v4, %v4255_v52  ;;  %4718 = vpow2.f32 %v2867_v6  ;;  %v2684_v43 = vsub.f32 %v7395_v20, %v8021_v21  ;;  %v5069_v12 = vld [vmem:[%s5299_s9 + $0x270] sm:$0xff]  ;;  %v9697_v4 = vld [vmem:[#allocation19_spill] sm:$0xff]  ;;  %v5071_v8 = vld [vmem:[%s5299_s9 + $0x280] sm:$0xff] }
 0x2cd   : > { %v8056_v36 = vpop.eup %4706  ;;  %v8060_v58 = vadd.f32 %v9693_v19, %v9692_v50  ;;  %v3911_v0 = vmul.f32 %v9695_v31, %v3314_v46  ;;  %v4037_v28 = vadd.f32 %v4036_v11, %v3910_v1  ;;  %3633 = vperm.xlu0 %4588, %v7949_v54   ;;  %v3082_v47 = vmul.f32 %v5069_v12, %v6619_v34  ;;  %v3329_v10 = vpop.permute.xlu1 %3328 }
 0x2ce   : > { %v8066_v52 = vpop.eup %4708  ;;  %v2903_v41 = vmul.f32 1.442695, %v2697_v27  ;;  %v4263_v20 = vadd.f32 %v8045_v45, %v4262_v63  ;;  %4720 = vpow2.f32 %v2873_v51  ;;  %v2683_v62 = vsub.f32 %v7399_v40, %v8021_v21  ;;  %v3324_v14 = vpop.permute.xlu0 %3323  ;;  %v5070_v63 = vld [vmem:[%s5299_s9 + $0x288] sm:$0xff] }
 0x2cf   : > { %9694 = vst [vmem:[#allocation70_spill] sm:$0xff] %v8060_v58  ;;  %v8073_v6 = vadd.f32 %v9697_v4, %v9696_v53  ;;  %v2566_v54 = vmax.f32 %v2565_v26, %v8060_v58  ;;  %v3912_v56 = vmul.f32 %v7370_v15, %v3319_v32  ;;  %v4038_v37 = vadd.f32 %v4037_v28, %v3911_v0  ;;  %v9699_v0 = vld [vmem:[#allocation28_spill] sm:$0xff]  ;;  %v5082_v58 = vld [vmem:[%s5299_s9 + $0x2e8] sm:$0xff] }
 0x2d0   : > { %3648 = vperm.xlu1 %4589, %v7961_v39   ;;  %v3212_v27 = vadd.f32 %v6813_v2, %v3083_v38  ;;  %v3085_v51 = vmul.f32 %v5070_v63, %v6619_v34  ;;  %v4258_v40 = vrot.slane %v4257_v42, 1  ;;  %v2877_v1 = vmul.f32 1.442695, %v2684_v43 }
 0x2d1   : > { %9698 = vst [vmem:[#allocation73_spill] sm:$0xff] %v8073_v6  ;;  %v3913_v11 = vmul.f32 %v7403_v16, %v3324_v14  ;;  %v4039_v46 = vadd.f32 %v4038_v37, %v3912_v56  ;;  %3643 = vperm.xlu0 %4588, %v3209_v24   ;;  %v3211_v26 = vadd.f32 %v6813_v2, %v3082_v47  ;;  %4722 = vpow2.f32 %v2903_v41  ;;  %v3339_v31 = vpop.permute.xlu1 %3338  ;;  %v9701_v56 = vld [vmem:[#allocation29_spill] sm:$0xff] }
 0x2d2   : > { %v3084_v15 = vmul.f32 %v5071_v8, %v6619_v34  ;;  %v8085_v32 = vpop.eup %4710  ;;  %v4264_v39 = vadd.f32 %v8032_v29, %v4263_v20  ;;  %v8088_v38 = vmul.f32 1.442695, %v2683_v62  ;;  %v2686_v43 = vsub.f32 %v7461_v48, %v8021_v21  ;;  %v3334_v47 = vpop.permute.xlu0 %3333  ;;  %v5072_v48 = vld [vmem:[%s5299_s9 + $0x298] sm:$0xff]  ;;  %v5073_v62 = vld [vmem:[%s5299_s9 + $0x290] sm:$0xff] }
 0x2d3   : > { %v8092_v16 = vpop.eup %4712  ;;  %v2567_v24 = vmax.f32 %v2566_v54, %v8073_v6  ;;  %v3914_v50 = vmul.f32 %v7432_v18, %v3329_v10  ;;  %v4040_v19 = vadd.f32 %v4039_v46, %v3913_v11  ;;  %v3214_v41 = vadd.f32 %v6813_v2, %v3085_v51  ;;  %v9700_v54 = vld [vmem:[#allocation65_spill] sm:$0xff]  ;;  %v5074_v51 = vld [vmem:[%s5299_s9 + $0x2a8] sm:$0xff]  ;;  %v5075_v46 = vld [vmem:[%s5299_s9 + $0x2a0] sm:$0xff] }
 0x2d4   : > { %v8098_v12 = vpop.eup %4714  ;;  %3658 = vperm.xlu1 %4589, %v3212_v27   ;;  %v3087_v20 = vmul.f32 %v5072_v48, %v6619_v34  ;;  %v3086_v18 = vmul.f32 %v5073_v62, %v6619_v34  ;;  %v4259_v53 = vadd.f32 %v4258_v40, %v4257_v42  ;;  %v8109_v37 = vadd.f32 %v9701_v56, %v9700_v54  ;;  %v5076_v40 = vld [vmem:[%s5299_s9 + $0x2b8] sm:$0xff] }
 0x2d5   : > { %v8105_v4 = vpop.eup %4716  ;;  %v3915_v10 = vmul.f32 %v7357_v49, %v3334_v47  ;;  %v4041_v14 = vadd.f32 %v4040_v19, %v3914_v50  ;;  %3653 = vperm.xlu0 %4588, %v3211_v26   ;;  %v3213_v27 = vadd.f32 %v6813_v2, %v3084_v15  ;;  %v3089_v11 = vmul.f32 %v5074_v51, %v6619_v34  ;;  %v9703_v49 = vld [vmem:[#allocation68_spill] sm:$0xff]  ;;  %v9704_v50 = vld [vmem:[#allocation123_spill] sm:$0xff]  ;;  %v3349_v62 = vpop.permute.xlu1 %3348 }
 0x2d6   : > { %9702 = vst [vmem:[#allocation121_spill] sm:$0xff] %v8109_v37  ;;  %v8113_v63 = vpop.eup %4718  ;;  %v3088_v42 = vmul.f32 %v5075_v46, %v6619_v34  ;;  %v3091_v8 = vmul.f32 %v5076_v40, %v6619_v34  ;;  %v4265_v48 = vadd.f32 %v8056_v36, %v4264_v39  ;;  %v8124_v26 = vadd.f32 %v9704_v50, %v9703_v49  ;;  %v3344_v56 = vpop.permute.xlu0 %3343  ;;  %v5077_v46 = vld [vmem:[%s5299_s9 + $0x2b0] sm:$0xff]  ;;  %v5078_v40 = vld [vmem:[%s5299_s9 + $0x2c8] sm:$0xff] }
 0x2d7   : > { %v2568_v15 = vmax.f32 %v2567_v24, %v8109_v37  ;;  %v3916_v19 = vmul.f32 %v7482_v60, %v3339_v31  ;;  %v4042_v47 = vadd.f32 %v4041_v14, %v3915_v10  ;;  %v3216_v51 = vadd.f32 %v6813_v2, %v3087_v20  ;;  %v9707_v50 = vld [vmem:[#allocation128_spill] sm:$0xff]  ;;  %v9708_v31 = vld [vmem:[#allocation129_spill] sm:$0xff] }
 0x2d8   : > { %9705 = vst [vmem:[#allocation122_spill] sm:$0xff] %v8124_v26  ;;  %v8128_v54 = vpop.eup %4720  ;;  %3668 = vperm.xlu1 %4589, %v3214_v41   ;;  %v3090_v39 = vmul.f32 %v5077_v46, %v6619_v34  ;;  %v3093_v49 = vmul.f32 %v5078_v40, %v6619_v34  ;;  %4724 = vpow2.f32 %v2877_v1  ;;  %v3918_v60 = vmul.f32 %v9707_v50, %v3349_v62  ;;  %v5079_v41 = vld [vmem:[%s5299_s9 + $0x2c0] sm:$0xff]  ;;  %v5080_v37 = vld [vmem:[%s5299_s9 + $0x2d8] sm:$0xff] }
 0x2d9   : > { %9706 = vst [vmem:[#allocation15_spill] sm:$0xff] %v8128_v54  ;;  %v4043_v24 = vadd.f32 %v4042_v47, %v3916_v19  ;;  %v3917_v10 = vmul.f32 %v9708_v31, %v3344_v56  ;;  %3663 = vperm.xlu0 %4588, %v3213_v27   ;;  %v3215_v14 = vadd.f32 %v6813_v2, %v3086_v18  ;;  %v2881_v6 = vmul.f32 1.442695, %v2686_v43  ;;  %v3359_v47 = vpop.permute.xlu1 %3358  ;;  %v9711_v56 = vld [vmem:[#allocation124_spill] sm:$0xff] }
 0x2da   : > { %v3218_v28 = vadd.f32 %v6813_v2, %v3089_v11  ;;  %v3092_v20 = vmul.f32 %v5079_v41, %v6619_v34  ;;  %v3095_v46 = vmul.f32 %v5080_v37, %v6619_v34  ;;  %v2569_v1 = vmax.f32 %v2568_v15, %v8124_v26  ;;  %v9710_v11 = vld [vmem:[#allocation111_spill] sm:$0xff]  ;;  %v3354_v50 = vpop.permute.xlu0 %3353  ;;  %v5081_v15 = vld [vmem:[%s5299_s9 + $0x2d0] sm:$0xff] }
 0x2db   : > { %v4044_v19 = vrot.slane %v4043_v24, 4  ;;  %v3217_v62 = vadd.f32 %v6813_v2, %v3088_v42  ;;  %v3220_v27 = vadd.f32 %v6813_v2, %v3091_v8  ;;  %v8146_v18 = vpop.eup %4722  ;;  %v8150_v40 = vadd.f32 %v9711_v56, %v9710_v11  ;;  %v9713_v26 = vld [vmem:[#allocation115_spill] sm:$0xff] }
 0x2dc   : > { %9709 = vst [vmem:[#allocation59_spill] sm:$0xff] %v8146_v18  ;;  %3678 = vperm.xlu1 %4589, %v3216_v51   ;;  %v3219_v37 = vadd.f32 %v6813_v2, %v3090_v39  ;;  %v8154_v43 = vadd.f32 %v6813_v2, %v3093_v49  ;;  %v3094_v31 = vmul.f32 %v5081_v15, %v6619_v34  ;;  %4726 = vrcp.f32 %v4259_v53 }
 0x2dd   : > { %9712 = vst [vmem:[#allocation131_spill] sm:$0xff] %v8150_v40  ;;  %v4045_v41 = vadd.f32 %v4044_v19, %v4043_v24  ;;  %v4050_v42 = vadd.f32 %v3918_v60, %v3917_v10  ;;  %v3919_v8 = vmul.f32 %v9713_v26, %v3354_v50  ;;  %3673 = vperm.xlu0 %4588, %v3215_v14   ;;  %v9714_v60 = vld [vmem:[#allocation118_spill] sm:$0xff]  ;;  %v3369_v19 = vpop.permute.xlu1 %3368  ;;  %4728 = vpow2.f32 %v8088_v38 }
 0x2de   : > { %v3097_v11 = vmul.f32 %v5082_v58, %v6619_v34  ;;  %v8162_v56 = vadd.f32 %v6813_v2, %v3092_v20  ;;  %v8165_v51 = vadd.f32 %v6813_v2, %v3095_v46  ;;  %v4266_v39 = vadd.f32 %v8049_v44, %v4265_v48  ;;  %v3364_v14 = vpop.permute.xlu0 %3363  ;;  %v5083_v20 = vld [vmem:[%s5299_s9 + $0x2e0] sm:$0xff]  ;;  %v9716_v46 = vld [vmem:[#allocation69_spill] sm:$0xff] }
 0x2df   : > { %v2570_v49 = vmax.f32 %v2569_v1, %v8150_v40  ;;  %v4046_v24 = vrot.slane %v4045_v41, 2  ;;  %v3920_v10 = vmul.f32 %v9714_v60, %v3359_v47  ;;  %v4051_v26 = vadd.f32 %v4050_v42, %v3919_v8  ;;  %v9717_v1 = vld [vmem:[#allocation18_spill] sm:$0xff]  ;;  %v9719_v42 = vld [vmem:[#allocation133_spill] sm:$0xff]  ;;  %v9721_v60 = vld [vmem:[#allocation71_spill] sm:$0xff] }
 0x2e0   : > { %3688 = vperm.xlu1 %4589, %v3218_v28   ;;  %v8171_v58 = vadd.f32 %v6813_v2, %v3094_v31  ;;  %v3096_v50 = vmul.f32 %v5083_v20, %v6619_v34  ;;  %v9715_v53 = vsub.f32 %v9699_v0, %v8021_v21  ;;  %v8181_v47 = vadd.f32 %v9717_v1, %v9716_v46  ;;  %v9722_v20 = vld [vmem:[#allocation8_spill] sm:$0xff]  ;;  %v9725_v1 = vld [vmem:[#allocation107_spill] sm:$0xff] }
 0x2e1   : > { %v4047_v15 = vadd.f32 %v4046_v24, %v4045_v41  ;;  %v3921_v28 = vmul.f32 %v9719_v42, %v3364_v14  ;;  %v4052_v8 = vadd.f32 %v4051_v26, %v3920_v10  ;;  %3683 = vperm.xlu0 %4588, %v3217_v62   ;;  %v8188_v40 = vadd.f32 %v9722_v20, %v9721_v60  ;;  %v9724_v0 = vld [vmem:[#allocation20_spill] sm:$0xff]  ;;  %v3379_v14 = vpop.permute.xlu1 %3378  ;;  %v9727_v60 = vld [vmem:[#allocation14_spill] sm:$0xff] }
 0x2e2   : > { %v2879_v48 = vmul.f32 1.442695, %v9715_v53  ;;  %9718 = vst [vmem:[#allocation81_spill] sm:$0xff] %v8181_v47  ;;  %v8184_v31 = vpop.eup %4724  ;;  %v4267_v38 = vadd.f32 %v8085_v32, %v4266_v39  ;;  %4730 = vpow2.f32 %v2881_v6  ;;  %v2688_v53 = vsub.f32 %v9724_v0, %v8021_v21  ;;  %v3374_v62 = vpop.permute.xlu0 %3373  ;;  %v9726_v6 = vld [vmem:[#allocation24_spill] sm:$0xff]  ;;  %v9728_v0 = vld [vmem:[#allocation10_spill] sm:$0xff] }
 0x2e3   : > { %9720 = vst [vmem:[#allocation110_spill] sm:$0xff] %v8184_v31  ;;  %9723 = vst [vmem:[#allocation120_spill] sm:$0xff] %v8188_v40  ;;  %v2571_v18 = vrot.slane %v2570_v49, 4  ;;  %v4048_v46 = vrot.slane %v4047_v15, 1  ;;  %v3922_v41 = vmul.f32 %v9725_v1, %v3369_v19  ;;  %v4053_v24 = vadd.f32 %v4052_v8, %v3921_v28 }
 0x2e4   : > { %3698 = vperm.xlu1 %4589, %v3220_v27   ;;  %v8196_v10 = vadd.f32 %v6813_v2, %v3097_v11  ;;  %v8199_v26 = vadd.f32 %v6813_v2, %v3096_v50  ;;  %4732 = vpow2.f32 %v2879_v48  ;;  %v2687_v39 = vsub.f32 %v9726_v6, %v8021_v21 }
 0x2e5   : > { %v4049_v42 = vadd.f32 %v4048_v46, %v4047_v15  ;;  %v3923_v20 = vmul.f32 %v9727_v60, %v3374_v62  ;;  %v4054_v19 = vadd.f32 %v4053_v24, %v3922_v41  ;;  %3693 = vperm.xlu0 %4588, %v3219_v37   ;;  %v2690_v28 = vsub.f32 %v7587_v17, %v8021_v21  ;;  %v3389_v1 = vpop.permute.xlu1 %3388  ;;  %v9729_v41 = vld [vmem:[#allocation72_spill] sm:$0xff]  ;;  %v9730_v24 = vld [vmem:[#allocation125_spill] sm:$0xff] }
 0x2e6   : > { %v2577_v27 = vmax.f32 %v8188_v40, %v8181_v47  ;;  %v4268_v11 = vadd.f32 %v8066_v52, %v4267_v38  ;;  %v2885_v8 = vmul.f32 1.442695, %v2688_v53  ;;  %v2689_v50 = vsub.f32 %v7543_v55, %v8021_v21  ;;  %v8217_v17 = vpop.eup %4726  ;;  %v9732_v38 = vld [vmem:[#allocation112_spill] sm:$0xff]  ;;  %v9733_v53 = vld [vmem:[#allocation126_spill] sm:$0xff]  ;;  %v3384_v55 = vpop.permute.xlu0 %3383  ;;  %v9763_v47 = vld [vmem:[#allocation33_spill] sm:$0xff] }
 0x2e7   : > { %v2572_v48 = vmax.f32 %v2570_v49, %v2571_v18  ;;  %v4366_v15 = vmul.f32 %v7815_v7, %v4049_v42  ;;  %v3924_v37 = vmul.f32 %v9728_v0, %v3379_v14  ;;  %v4055_v46 = vadd.f32 %v4054_v19, %v3923_v20  ;;  %v9735_v14 = vld [vmem:[#allocation25_spill] sm:$0xff]  ;;  %v8233_v19 = vpop.eup %4728 }
 0x2e8   : > { %v8221_v62 = vadd.f32 %v9730_v24, %v9729_v41  ;;  %v8225_v6 = vadd.f32 %v9733_v53, %v9732_v38  ;;  %3708 = vperm.xlu1 %4589, %v8154_v43   ;;  %v2883_v18 = vmul.f32 1.442695, %v2687_v39  ;;  %v2692_v7 = vsub.f32 %v7655_v9, %v8021_v21  ;;  %9736 = vst [vmem:[#allocation127_spill] sm:$0xff] %v8233_v19 }
 0x2e9   : > { %v4382_v49 = vadd.f32 %v8040_v5, %v4366_v15  ;;  %v3925_v42 = vmul.f32 %v9735_v14, %v3384_v55  ;;  %v4056_v60 = vadd.f32 %v4055_v46, %v3924_v37  ;;  %3703 = vperm.xlu0 %4588, %v8162_v56   ;;  %v2889_v20 = vmul.f32 1.442695, %v2690_v28  ;;  %v9737_v15 = vld [vmem:[#allocation11_spill] sm:$0xff]  ;;  %v3399_v46 = vpop.permute.xlu1 %3398  ;;  %v5085_v55 = vld [vmem:[%s5299_s9 + $0x2f0] sm:$0xff]  ;;  %v9742_v14 = vld [vmem:[#allocation17_spill] sm:$0xff] }
 0x2ea   : > { %9731 = vst [vmem:[#allocation84_spill] sm:$0xff] %v8221_v62  ;;  %9734 = vst [vmem:[#allocation87_spill] sm:$0xff] %v8225_v6  ;;  %v4269_v0 = vadd.f32 %v8098_v12, %v4268_v11  ;;  %4734 = vpow2.f32 %v2885_v8  ;;  %v2887_v43 = vmul.f32 1.442695, %v2689_v50  ;;  %v2691_v39 = vsub.f32 %v7605_v23, %v8021_v21  ;;  %v3394_v38 = vpop.permute.xlu0 %3393  ;;  %v5084_v11 = vld [vmem:[%s5299_s9 + $0x2f8] sm:$0xff]  ;;  %v9739_v23 = vld [vmem:[#allocation42_spill] sm:$0xff] }
 0x2eb   : > { %v2573_v9 = vrot.slane %v2572_v48, 2  ;;  %v4390_v41 = vand.u32 2147483647, %v4382_v49  ;;  %v3926_v24 = vmul.f32 %v9737_v15, %v3389_v1  ;;  %v4057_v37 = vadd.f32 %v4056_v60, %v3925_v42  ;;  %v9741_v49 = vld [vmem:[#allocation74_spill] sm:$0xff] }
 0x2ec   : > { %v8239_v56 = vpop.eup %4730  ;;  %v2578_v28 = vmax.f32 %v2577_v27, %v8225_v6  ;;  %3718 = vperm.xlu1 %4589, %v8165_v51   ;;  %v3099_v8 = vmul.f32 %v5084_v11, %v6619_v34  ;;  %4736 = vpow2.f32 %v2883_v18  ;;  %v2893_v50 = vmul.f32 1.442695, %v2692_v7  ;;  %v5091_v6 = vld [vmem:[%s5299_s9 + $0x388] sm:$0xff] }
 0x2ed   : > { %9738 = vst [vmem:[#allocation61_spill] sm:$0xff] %v8239_v56  ;;  %4398 = vst [vmem:[%s8246_s29] sm:$0x1] %v4390_v41  ;;  %v3927_v1 = vmul.f32 %v9739_v23, %v3394_v38  ;;  %v4058_v53 = vadd.f32 %v4057_v37, %v3926_v24  ;;  %3713 = vperm.xlu0 %4588, %v8171_v58   ;;  %v3098_v27 = vmul.f32 %v5085_v55, %v6619_v34  ;;  %v9744_v24 = vld [vmem:[#allocation75_spill] sm:$0xff] }
 0x2ee   : > { %4738 = vpow2.f32 %v2889_v20  ;;  %v8253_v51 = vpop.eup %4732  ;;  %v8257_v18 = vadd.f32 %v9742_v14, %v9741_v49  ;;  %v4270_v7 = vadd.f32 %v8092_v16, %v4269_v0  ;;  %v2694_v42 = vsub.f32 %v7717_v33, %v8021_v21  ;;  %v3409_v20 = vpop.permute.xlu1 %3408  ;;  %v9745_v37 = vld [vmem:[#allocation31_spill] sm:$0xff] }
 0x2ef   : > { %9740 = vst [vmem:[#allocation132_spill] sm:$0xff] %v8253_v51  ;;  %4740 = vpow2.f32 %v2887_v43  ;;  %v8262_v60 = vmax.f32 %v2572_v48, %v2573_v9  ;;  %v3928_v58 = vmul.f32 %v7534_v61, %v3399_v46  ;;  %v4059_v41 = vadd.f32 %v4058_v53, %v3927_v1  ;;  %v3404_v23 = vpop.permute.xlu0 %3403  ;;  %v5086_v33 = vld [vmem:[%s5299_s9 + $0x308] sm:$0xff]  ;;  %v9747_v43 = vld [vmem:[#allocation36_spill] sm:$0xff]  ;;  %v5087_v46 = vld [vmem:[%s5299_s9 + $0x300] sm:$0xff] }
 0x2f0   : > { %9743 = vst [vmem:[#allocation114_spill] sm:$0xff] %v8257_v18  ;;  %v2891_v15 = vmul.f32 1.442695, %v2691_v39  ;;  %v8267_v38 = vadd.f32 %v9745_v37, %v9744_v24  ;;  %v2579_v11 = vmax.f32 %v2578_v28, %v8221_v62  ;;  %3728 = vperm.xlu1 %4589, %v8196_v10   ;;  %v3228_v0 = vadd.f32 %v6813_v2, %v3099_v8  ;;  %v9748_v53 = vld [vmem:[#allocation94_spill] sm:$0xff] }
 0x2f1   : > { %v3101_v48 = vmul.f32 %v5086_v33, %v6619_v34  ;;  %v3929_v9 = vmul.f32 %v9747_v43, %v3404_v23  ;;  %v4060_v61 = vadd.f32 %v4059_v41, %v3928_v58  ;;  %3723 = vperm.xlu0 %4588, %v8199_v26   ;;  %v3227_v39 = vadd.f32 %v6813_v2, %v3098_v27  ;;  %v9749_v26 = vld [vmem:[#allocation48_spill] sm:$0xff] }
 0x2f2   : > { %9746 = vst [vmem:[#allocation64_spill] sm:$0xff] %v8267_v38  ;;  %v3100_v1 = vmul.f32 %v5087_v46, %v6619_v34  ;;  %v4271_v28 = vadd.f32 %v8113_v63, %v4270_v7  ;;  %v4281_v10 = vadd.f32 %v8233_v19, %v8184_v31  ;;  %4742 = vpow2.f32 %v2893_v50  ;;  %v3419_v14 = vpop.permute.xlu1 %3418  ;;  %v9750_v27 = vld [vmem:[#allocation108_spill] sm:$0xff]  ;;  %v5088_v50 = vld [vmem:[%s5299_s9 + $0x380] sm:$0xff] }
 0x2f3   : > { %v2897_v8 = vmul.f32 1.442695, %v2694_v42  ;;  %v3930_v55 = vmul.f32 %v9748_v53, %v3409_v20  ;;  %v4061_v49 = vadd.f32 %v4060_v61, %v3929_v9  ;;  %v2693_v58 = vsub.f32 %v9749_v26, %v8021_v21  ;;  %v3414_v37 = vpop.permute.xlu0 %3413  ;;  %v5089_v20 = vld [vmem:[%s5299_s9 + $0x310] sm:$0xff] }
 0x2f4   : > { %v8287_v24 = vpop.eup %4734  ;;  %v2575_v7 = vrot.slane %v8262_v60, 1  ;;  %3738 = vperm.xlu1 %4589, %v3228_v0   ;;  %v3230_v23 = vadd.f32 %v6813_v2, %v3101_v48  ;;  %v3116_v42 = vmul.f32 %v5088_v50, %v6619_v34  ;;  %v3102_v33 = vmul.f32 %v5089_v20, %v6619_v34  ;;  %v9751_v9 = vld [vmem:[#allocation96_spill] sm:$0xff]  ;;  %v9752_v0 = vld [vmem:[#allocation77_spill] sm:$0xff] }
 0x2f5   : > { %v2580_v43 = vmax.f32 %v2579_v11, %v8267_v38  ;;  %v3931_v61 = vmul.f32 %v9751_v9, %v3414_v37  ;;  %v4062_v46 = vadd.f32 %v4061_v49, %v3930_v55  ;;  %3733 = vperm.xlu0 %4588, %v3227_v39   ;;  %v3229_v53 = vadd.f32 %v6813_v2, %v3100_v1  ;;  %v9753_v41 = vld [vmem:[#allocation92_spill] sm:$0xff] }
 0x2f6   : > { %v8298_v26 = vpop.eup %4736  ;;  %v8302_v48 = vadd.f32 %v9753_v41, %v9752_v0  ;;  %v4272_v50 = vadd.f32 %v8105_v4, %v4271_v28  ;;  %v4282_v62 = vadd.f32 %v8253_v51, %v4281_v10  ;;  %4744 = vpow2.f32 %v2891_v15  ;;  %v9755_v11 = vld [vmem:[#allocation52_spill] sm:$0xff]  ;;  %v3429_v39 = vpop.permute.xlu1 %3428  ;;  %v9756_v41 = vld [vmem:[#allocation91_spill] sm:$0xff] }
 0x2f7   : > { %v3932_v37 = vmul.f32 %v9755_v11, %v3419_v14  ;;  %v4063_v55 = vadd.f32 %v4062_v46, %v3931_v61  ;;  %v5090_v49 = vld [vmem:[%s5299_s9 + $0x390] sm:$0xff]  ;;  %4746 = vpow2.f32 %v2897_v8  ;;  %v3424_v28 = vpop.permute.xlu0 %3423  ;;  %v3245_v15 = vadd.f32 %v6813_v2, %v3116_v42  ;;  %v9759_v61 = vld [vmem:[#allocation38_spill] sm:$0xff]  ;;  %v9760_v46 = vld [vmem:[#allocation137_spill] sm:$0xff] }
 0x2f8   : > { %9754 = vst [vmem:[#allocation27_spill] sm:$0xff] %v8302_v48  ;;  %v8306_v20 = vpop.eup %4738  ;;  %v3118_v1 = vmul.f32 %v5090_v49, %v6619_v34  ;;  %v9757_v0 = vld [vmem:[#allocation136_spill] sm:$0xff]  ;;  %3748 = vperm.xlu1 %4589, %v3230_v23   ;;  %v3231_v10 = vadd.f32 %v6813_v2, %v3102_v33  ;;  %v3117_v14 = vmul.f32 %v5091_v6, %v6619_v34  ;;  %v9762_v49 = vld [vmem:[#allocation9_spill] sm:$0xff]  ;;  %v9764_v42 = vld [vmem:[#allocation78_spill] sm:$0xff] }
 0x2f9   : > { %v8311_v9 = vpop.eup %4740  ;;  %v8315_v38 = vadd.f32 %v9757_v0, %v9756_v41  ;;  %v8323_v11 = vadd.f32 %v9760_v46, %v9759_v61  ;;  %v4064_v8 = vadd.f32 %v4063_v55, %v3932_v37  ;;  %v3934_v40 = vmul.f32 %v9762_v49, %v3429_v39  ;;  %3743 = vperm.xlu0 %4588, %v3229_v53   ;;  %v9765_v41 = vld [vmem:[#allocation30_spill] sm:$0xff]  ;;  %v9767_v61 = vld [vmem:[#allocation41_spill] sm:$0xff]  ;;  %v9768_v46 = vld [vmem:[#allocation47_spill] sm:$0xff] }
 0x2fa   : > { %v3933_v51 = vmul.f32 %v9763_v47, %v3424_v28  ;;  %v8328_v23 = vmax.f32 %v8262_v60, %v2575_v7  ;;  %v8332_v33 = vadd.f32 %v9765_v41, %v9764_v42  ;;  %v2581_v6 = vmax.f32 %v2580_v43, %v8257_v18  ;;  %v3439_v39 = vpop.permute.xlu1 %3438  ;;  %v9770_v47 = vld [vmem:[#allocation117_spill] sm:$0xff]  ;;  %v9771_v18 = vld [vmem:[#allocation32_spill] sm:$0xff] }
 0x2fb   : > { %9758 = vst [vmem:[#allocation116_spill] sm:$0xff] %v8315_v38  ;;  %9761 = vst [vmem:[#allocation13_spill] sm:$0xff] %v8323_v11  ;;  %v2895_v0 = vmul.f32 1.442695, %v2693_v58  ;;  %v8337_v37 = vadd.f32 %v9768_v46, %v9767_v61  ;;  %v4065_v55 = vrot.slane %v4064_v8, 4  ;;  %v4273_v28 = vadd.f32 %v9770_v47, %v4272_v50  ;;  %v3434_v7 = vpop.permute.xlu0 %3433  ;;  %v5092_v58 = vld [vmem:[%s5299_s9 + $0x398] sm:$0xff] }
 0x2fc   : > { %9766 = vst [vmem:[#allocation119_spill] sm:$0xff] %v8332_v33  ;;  %v8341_v53 = vadd.f32 %v8239_v56, %v4282_v62  ;;  %v8343_v60 = vpop.eup %4742  ;;  %3823 = vperm.xlu1 %4589, %v3245_v15   ;;  %v3247_v49 = vadd.f32 %v6813_v2, %v3118_v1  ;;  %v3246_v43 = vadd.f32 %v6813_v2, %v3117_v14  ;;  %v5093_v41 = vld [vmem:[%s5299_s9 + $0x318] sm:$0xff]  ;;  %v9783_v31 = vld [vmem:[#allocation140_spill] sm:$0xff] }
 0x2fd   : > { %9769 = vst [vmem:[#allocation63_spill] sm:$0xff] %v8337_v37  ;;  %v3119_v42 = vmul.f32 %v5092_v58, %v6619_v34  ;;  %v3103_v61 = vmul.f32 %v5093_v41, %v6619_v34  ;;  %v2598_v50 = vmax.f32 %v8323_v11, %v8315_v38  ;;  %v4066_v46 = vadd.f32 %v4065_v55, %v4064_v8  ;;  %v9773_v58 = vld [vmem:[#allocation66_spill] sm:$0xff]  ;;  %v9774_v8 = vld [vmem:[#allocation44_spill] sm:$0xff] }
 0x2fe   : > { %v4071_v62 = vadd.f32 %v3934_v40, %v3933_v51  ;;  %v3935_v56 = vmul.f32 %v9771_v18, %v3434_v7  ;;  %3753 = vperm.xlu0 %4588, %v3231_v10   ;;  %v2582_v15 = vmax.f32 %v2581_v6, %v8332_v33  ;;  %4748 = vpow2.f32 %v2895_v0  ;;  %v3449_v18 = vpop.permute.xlu1 %3448  ;;  %v9775_v33 = vld [vmem:[#allocation39_spill] sm:$0xff] }
 0x2ff   : > { %v9772_v1 = vsub.f32 %v9750_v27, %v8021_v21  ;;  %v2695_v41 = vsub.f32 %v9773_v58, %v8021_v21  ;;  %v2599_v19 = vmax.f32 %v2598_v50, %v8337_v37  ;;  %v4067_v38 = vrot.slane %v4066_v46, 2  ;;  %v3444_v10 = vpop.permute.xlu0 %3443  ;;  %v5094_v27 = vld [vmem:[%s5299_s9 + $0x3a0] sm:$0xff] }
 0x300   : > { %v3936_v40 = vmul.f32 %v9774_v8, %v3439_v39  ;;  %v4072_v51 = vadd.f32 %v4071_v62, %v3935_v56  ;;  %v8362_v55 = vpop.eup %4744  ;;  %3833 = vperm.xlu1 %4589, %v3247_v49   ;;  %v3248_v6 = vadd.f32 %v6813_v2, %v3119_v42  ;;  %v3232_v0 = vadd.f32 %v6813_v2, %v3103_v61  ;;  %v9776_v39 = vld [vmem:[#allocation138_spill] sm:$0xff]  ;;  %v9778_v8 = vld [vmem:[#allocation40_spill] sm:$0xff]  ;;  %v9780_v61 = vld [vmem:[#allocation21_spill] sm:$0xff] }
 0x301   : > { %v2901_v14 = vmul.f32 1.442695, %v9772_v1  ;;  %v3120_v7 = vmul.f32 %v5094_v27, %v6619_v34  ;;  %v5095_v1 = vld [vmem:[%s5299_s9 + $0x320] sm:$0xff]  ;;  %v8370_v50 = vpop.eup %4746  ;;  %v8374_v56 = vadd.f32 %v9776_v39, %v9775_v33  ;;  %v4068_v62 = vadd.f32 %v4067_v38, %v4066_v46  ;;  %v9779_v42 = vld [vmem:[#allocation80_spill] sm:$0xff] }
 0x302   : > { %v3104_v58 = vmul.f32 %v5095_v1, %v6619_v34  ;;  %v3937_v49 = vmul.f32 %v9778_v8, %v3444_v10  ;;  %v4073_v37 = vadd.f32 %v4072_v51, %v3936_v40  ;;  %3828 = vperm.xlu0 %4588, %v3246_v43   ;;  %v8379_v11 = vadd.f32 %v9780_v61, %v9779_v42  ;;  %v9782_v1 = vld [vmem:[#allocation43_spill] sm:$0xff]  ;;  %v9785_v10 = vld [vmem:[#allocation98_spill] sm:$0xff]  ;;  %v3459_v43 = vpop.permute.xlu1 %3458 }
 0x303   : > { %9777 = vst [vmem:[#allocation134_spill] sm:$0xff] %v8374_v56  ;;  %v2583_v27 = vmax.f32 %v2582_v15, %v8302_v48  ;;  %v8384_v30 = vadd.f32 %v9783_v31, %v9782_v1  ;;  %v8387_v33 = vadd.f32 %v8128_v54, %v4273_v28  ;;  %v2600_v38 = vmax.f32 %v2599_v19, %v8374_v56  ;;  %v3454_v39 = vpop.permute.xlu0 %3453  ;;  %v5096_v42 = vld [vmem:[%s5299_s9 + $0x3a8] sm:$0xff]  ;;  %v9786_v28 = vld [vmem:[#allocation50_spill] sm:$0xff] }
 0x304   : > { %9781 = vst [vmem:[#allocation12_spill] sm:$0xff] %v8379_v11  ;;  %v4069_v46 = vrot.slane %v4068_v62, 1  ;;  %v3938_v40 = vmul.f32 %v9785_v10, %v3449_v18  ;;  %v4074_v51 = vadd.f32 %v4073_v37, %v3937_v49  ;;  %3838 = vperm.xlu1 %4589, %v3248_v6   ;;  %v3249_v8 = vadd.f32 %v6813_v2, %v3120_v7  ;;  %v5097_v61 = vld [vmem:[%s5299_s9 + $0x328] sm:$0xff] }
 0x305   : > { %9784 = vst [vmem:[#allocation67_spill] sm:$0xff] %v8384_v30  ;;  %v3121_v15 = vmul.f32 %v5096_v42, %v6619_v34  ;;  %v3105_v31 = vmul.f32 %v5097_v61, %v6619_v34  ;;  %v2698_v1 = vsub.f32 %v9786_v28, %v8021_v21  ;;  %v9787_v19 = vld [vmem:[#allocation135_spill] sm:$0xff]  ;;  %v3233_v37 = vadd.f32 %v6813_v2, %v3104_v58  ;;  %v9791_v21 = vld [vmem:[#allocation60_spill] sm:$0xff] }
 0x306   : > { %v4070_v48 = vadd.f32 %v4069_v46, %v4068_v62  ;;  %v3939_v56 = vmul.f32 %v9787_v19, %v3454_v39  ;;  %v4075_v54 = vadd.f32 %v4074_v51, %v3938_v40  ;;  %3758 = vperm.xlu0 %4588, %v3232_v0   ;;  %v9788_v18 = vld [vmem:[#allocation79_spill] sm:$0xff]  ;;  %v2584_v49 = vmax.f32 %v2583_v27, %v8379_v11  ;;  %v9792_v46 = vld [vmem:[#allocation104_spill] sm:$0xff]  ;;  %v3469_v0 = vpop.permute.xlu1 %3468 }
 0x307   : > { %v9789_v6 = vld [vmem:[#allocation23_spill] sm:$0xff]  ;;  %4750 = vpow2.f32 %v2901_v14  ;;  %v2899_v10 = vmul.f32 1.442695, %v2695_v41  ;;  %v2601_v42 = vmax.f32 %v2600_v38, %v8384_v30  ;;  %v3940_v39 = vmul.f32 %v9792_v46, %v3459_v43  ;;  %v3464_v58 = vpop.permute.xlu0 %3463  ;;  %v5098_v19 = vld [vmem:[%s5299_s9 + $0x3b0] sm:$0xff]  ;;  %v9800_v46 = vld [vmem:[#allocation97_spill] sm:$0xff] }
 0x308   : > { %v8402_v7 = vadd.f32 %v9789_v6, %v9788_v18  ;;  %v4368_v62 = vmul.f32 %v9791_v21, %v4070_v48  ;;  %v4076_v40 = vadd.f32 %v4075_v54, %v3939_v56  ;;  %v8408_v51 = vpop.eup %4748  ;;  %3843 = vperm.xlu1 %4589, %v3249_v8   ;;  %v3250_v61 = vadd.f32 %v6813_v2, %v3121_v15  ;;  %v5099_v41 = vld [vmem:[%s5299_s9 + $0x330] sm:$0xff]  ;;  %v9793_v38 = vld [vmem:[#allocation35_spill] sm:$0xff]  ;;  %v9796_v56 = vld [vmem:[#allocation49_spill] sm:$0xff] }
 0x309   : > { %v3234_v28 = vadd.f32 %v6813_v2, %v3105_v31  ;;  %v3122_v14 = vmul.f32 %v5098_v19, %v6619_v34  ;;  %v3106_v27 = vmul.f32 %v5099_v41, %v6619_v34  ;;  %v9794_v48 = vld [vmem:[#allocation139_spill] sm:$0xff]  ;;  %v3941_v43 = vmul.f32 %v9796_v56, %v3464_v58  ;;  %v9797_v15 = vld [vmem:[#allocation113_spill] sm:$0xff]  ;;  %v9798_v6 = vld [vmem:[#allocation34_spill] sm:$0xff] }
 0x30a   : > { %9790 = vst [vmem:[#allocation19_spill] sm:$0xff] %v8402_v7  ;;  %v8418_v18 = vadd.f32 %v9794_v48, %v9793_v38  ;;  %v4383_v54 = vadd.f32 %v8040_v5, %v4368_v62  ;;  %v4077_v8 = vadd.f32 %v4076_v40, %v3940_v39  ;;  %3763 = vperm.xlu0 %4588, %v3233_v37   ;;  %v9801_v19 = vld [vmem:[#allocation142_spill] sm:$0xff]  ;;  %v9803_v38 = vld [vmem:[#allocation53_spill] sm:$0xff]  ;;  %v9804_v58 = vld [vmem:[#allocation76_spill] sm:$0xff]  ;;  %v3479_v40 = vpop.permute.xlu1 %3478  ;;  %4752 = vpow2.f32 %v2899_v10 }
 0x30b   : > { %v8424_v31 = vadd.f32 %v9798_v6, %v9797_v15  ;;  %v2585_v21 = vmax.f32 %v2584_v49, %v8402_v7  ;;  %v8429_v41 = vadd.f32 %v9801_v19, %v9800_v46  ;;  %v2700_v48 = vsub.f32 %v9803_v38, %v8328_v23  ;;  %v3474_v56 = vpop.permute.xlu0 %3473  ;;  %v5100_v49 = vld [vmem:[%s5299_s9 + $0x3b8] sm:$0xff]  ;;  %v9811_v10 = vld [vmem:[#allocation95_spill] sm:$0xff] }
 0x30c   : > { %9795 = vst [vmem:[#allocation28_spill] sm:$0xff] %v8418_v18  ;;  %v2602_v62 = vmax.f32 %v2601_v42, %v8418_v18  ;;  %v4391_v11 = vand.u32 2147483647, %v4383_v54  ;;  %v3942_v37 = vmul.f32 %v9804_v58, %v3469_v0  ;;  %v4078_v39 = vadd.f32 %v4077_v8, %v3941_v43  ;;  %3848 = vperm.xlu1 %4589, %v3250_v61   ;;  %v9805_v42 = vld [vmem:[#allocation51_spill] sm:$0xff]  ;;  %v5101_v43 = vld [vmem:[%s5299_s9 + $0x338] sm:$0xff]  ;;  %v9806_v58 = vld [vmem:[#allocation54_spill] sm:$0xff] }
 0x30d   : > { %9799 = vst [vmem:[#allocation65_spill] sm:$0xff] %v8424_v31  ;;  %9802 = vst [vmem:[#allocation29_spill] sm:$0xff] %v8429_v41  ;;  %v3251_v15 = vadd.f32 %v6813_v2, %v3122_v14  ;;  %v3123_v6 = vmul.f32 %v5100_v49, %v6619_v34  ;;  %v4275_v46 = vrot.slane %v8387_v33, 4  ;;  %v4284_v19 = vadd.f32 %v8298_v26, %v8341_v53  ;;  %v9807_v53 = vld [vmem:[#allocation145_spill] sm:$0xff]  ;;  %v9818_v18 = vld [vmem:[#allocation99_spill] sm:$0xff] }
 0x30e   : > { %4399 = vst [vmem:[%s8246_s29 + $0x1] sm:$0x1] %v4391_v11  ;;  %v3943_v54 = vmul.f32 %v9805_v42, %v3474_v56  ;;  %v4079_v38 = vadd.f32 %v4078_v39, %v3942_v37  ;;  %3768 = vperm.xlu0 %4588, %v3234_v28   ;;  %v3235_v0 = vadd.f32 %v6813_v2, %v3106_v27  ;;  %v8447_v8 = vmul.f32 1.442695, %v2698_v1  ;;  %v3489_v37 = vpop.permute.xlu1 %3488  ;;  %v9808_v42 = vld [vmem:[#allocation82_spill] sm:$0xff]  ;;  %v9812_v1 = vld [vmem:[#allocation141_spill] sm:$0xff] }
 0x30f   : > { %v3107_v61 = vmul.f32 %v5101_v43, %v6619_v34  ;;  %v2586_v14 = vmax.f32 %v2585_v21, %v8424_v31  ;;  %v2699_v49 = vsub.f32 %v9806_v58, %v8328_v23  ;;  %v2603_v11 = vmax.f32 %v2602_v62, %v8429_v41  ;;  %v9809_v43 = vld [vmem:[#allocation93_spill] sm:$0xff]  ;;  %v3484_v31 = vpop.permute.xlu0 %3483  ;;  %v5102_v58 = vld [vmem:[%s5299_s9 + $0x3c0] sm:$0xff] }
 0x310   : > { %v3944_v56 = vmul.f32 %v9807_v53, %v3479_v40  ;;  %v4080_v28 = vadd.f32 %v4079_v38, %v3943_v54  ;;  %v2909_v27 = vmul.f32 1.442695, %v2700_v48  ;;  %v8457_v7 = vadd.f32 %v9809_v43, %v9808_v42  ;;  %3853 = vperm.xlu1 %4589, %v3251_v15   ;;  %v9814_v54 = vld [vmem:[#allocation86_spill] sm:$0xff] }
 0x311   : > { %v8453_v39 = vpop.eup %4750  ;;  %v8461_v21 = vadd.f32 %v9812_v1, %v9811_v10  ;;  %v3252_v62 = vadd.f32 %v6813_v2, %v3123_v6  ;;  %v3124_v40 = vmul.f32 %v5102_v58, %v6619_v34  ;;  %v3945_v38 = vmul.f32 %v9814_v54, %v3484_v31  ;;  %v5103_v42 = vld [vmem:[%s5299_s9 + $0x340] sm:$0xff]  ;;  %v9815_v10 = vld [vmem:[#allocation85_spill] sm:$0xff]  ;;  %v9819_v31 = vld [vmem:[#allocation144_spill] sm:$0xff] }
 0x312   : > { %9810 = vst [vmem:[#allocation68_spill] sm:$0xff] %v8457_v7  ;;  %v4081_v48 = vadd.f32 %v4080_v28, %v3944_v56  ;;  %3773 = vperm.xlu0 %4588, %v3235_v0   ;;  %v3236_v53 = vadd.f32 %v6813_v2, %v3107_v61  ;;  %v3108_v43 = vmul.f32 %v5103_v42, %v6619_v34  ;;  %v9816_v1 = vld [vmem:[#allocation46_spill] sm:$0xff]  ;;  %v2907_v58 = vmul.f32 1.442695, %v2699_v49  ;;  %v3499_v30 = vpop.permute.xlu1 %3498 }
 0x313   : > { %9813 = vst [vmem:[#allocation123_spill] sm:$0xff] %v8461_v21  ;;  %v8472_v41 = vadd.f32 %v9816_v1, %v9815_v10  ;;  %v2587_v15 = vmax.f32 %v2586_v14, %v8457_v7  ;;  %v4285_v6 = vadd.f32 %v8287_v24, %v4284_v19  ;;  %v8478_v56 = vadd.f32 %v9819_v31, %v9818_v18  ;;  %v9821_v61 = vld [vmem:[#allocation150_spill] sm:$0xff]  ;;  %v3494_v42 = vpop.permute.xlu0 %3493  ;;  %v5104_v1 = vld [vmem:[%s5299_s9 + $0x3c8] sm:$0xff]  ;;  %v9823_v31 = vld [vmem:[#allocation37_spill] sm:$0xff] }
 0x314   : > { %v2604_v0 = vmax.f32 %v2603_v11, %v8461_v21  ;;  %v3946_v28 = vmul.f32 %v9821_v61, %v3489_v37  ;;  %v4082_v54 = vadd.f32 %v4081_v48, %v3945_v38  ;;  %3858 = vperm.xlu1 %4589, %v3252_v62   ;;  %v3253_v10 = vadd.f32 %v6813_v2, %v3124_v40  ;;  %v5105_v7 = vld [vmem:[%s5299_s9 + $0x348] sm:$0xff]  ;;  %v9824_v37 = vld [vmem:[#allocation148_spill] sm:$0xff] }
 0x315   : > { %9817 = vst [vmem:[#allocation128_spill] sm:$0xff] %v8472_v41  ;;  %9820 = vst [vmem:[#allocation129_spill] sm:$0xff] %v8478_v56  ;;  %v3125_v14 = vmul.f32 %v5104_v1, %v6619_v34  ;;  %v3109_v19 = vmul.f32 %v5105_v7, %v6619_v34  ;;  %v8488_v49 = vadd.f32 %v4275_v46, %v8387_v33  ;;  %v9822_v18 = vld [vmem:[#allocation83_spill] sm:$0xff]  ;;  %4754 = vpow2.f32 %v2909_v27  ;;  %v9825_v33 = vld [vmem:[#allocation56_spill] sm:$0xff] }
 0x316   : > { %v8492_v11 = vadd.f32 %v9823_v31, %v9822_v18  ;;  %v3947_v38 = vmul.f32 %v9824_v37, %v3494_v42  ;;  %v4083_v48 = vadd.f32 %v4082_v54, %v3946_v28  ;;  %3778 = vperm.xlu0 %4588, %v3236_v53   ;;  %v3237_v62 = vadd.f32 %v6813_v2, %v3108_v43  ;;  %v9826_v1 = vld [vmem:[#allocation26_spill] sm:$0xff]  ;;  %v3509_v28 = vpop.permute.xlu1 %3508  ;;  %v8504_v53 = vpop.eup %4752  ;;  %v9827_v43 = vld [vmem:[#allocation109_spill] sm:$0xff]  ;;  %v9828_v54 = vld [vmem:[#allocation143_spill] sm:$0xff] }
 0x317   : > { %v8497_v40 = vmax.f32 %v2587_v15, %v8472_v41  ;;  %v4286_v61 = vadd.f32 %v8311_v9, %v4285_v6  ;;  %v2701_v7 = vsub.f32 %v9825_v33, %v8328_v23  ;;  %v2605_v46 = vmax.f32 %v2604_v0, %v8478_v56  ;;  %v3504_v31 = vpop.permute.xlu0 %3503  ;;  %v5106_v37 = vld [vmem:[%s5299_s9 + $0x3d0] sm:$0xff]  ;;  %v5109_v41 = vld [vmem:[%s5299_s9 + $0x358] sm:$0xff] }
 0x318   : > { %v3948_v18 = vmul.f32 %v9826_v1, %v3499_v30  ;;  %v4084_v42 = vadd.f32 %v4083_v48, %v3947_v38  ;;  %4756 = vpow2.f32 %v2907_v58  ;;  %v8508_v15 = vadd.f32 %v9828_v54, %v9827_v43  ;;  %3863 = vperm.xlu1 %4589, %v3253_v10   ;;  %v5107_v48 = vld [vmem:[%s5299_s9 + $0x350] sm:$0xff]  ;;  %v9830_v1 = vld [vmem:[#allocation90_spill] sm:$0xff]  ;;  %v9831_v10 = vld [vmem:[#allocation45_spill] sm:$0xff] }
 0x319   : > { %v3254_v27 = vadd.f32 %v6813_v2, %v3125_v14  ;;  %v3238_v6 = vadd.f32 %v6813_v2, %v3109_v19  ;;  %v3126_v0 = vmul.f32 %v5106_v37, %v6619_v34  ;;  %v3950_v38 = vmul.f32 %v7983_v25, %v3509_v28  ;;  %v9832_v19 = vld [vmem:[#allocation55_spill] sm:$0xff]  ;;  %v9833_v25 = vld [vmem:[#allocation102_spill] sm:$0xff] }
 0x31a   : > { %9829 = vst [vmem:[#allocation111_spill] sm:$0xff] %v8508_v15  ;;  %v4085_v30 = vadd.f32 %v4084_v42, %v3948_v18  ;;  %v3949_v58 = vmul.f32 %v7985_v35, %v3504_v31  ;;  %3783 = vperm.xlu0 %4588, %v3237_v62   ;;  %v3110_v33 = vmul.f32 %v5107_v48, %v6619_v34  ;;  %v2911_v42 = vmul.f32 1.442695, %v2701_v7  ;;  %v9834_v28 = vld [vmem:[#allocation147_spill] sm:$0xff]  ;;  %v3519_v31 = vpop.permute.xlu1 %3518 }
 0x31b   : > { %v8520_v43 = vadd.f32 %v9831_v10, %v9830_v1  ;;  %v2702_v18 = vsub.f32 %v9832_v19, %v8328_v23  ;;  %v8528_v35 = vadd.f32 %v9834_v28, %v9833_v25  ;;  %v2606_v62 = vmax.f32 %v2605_v46, %v8508_v15  ;;  %v3514_v48 = vpop.permute.xlu0 %3513  ;;  %v5108_v10 = vld [vmem:[%s5299_s9 + $0x3d8] sm:$0xff] }
 0x31c   : > { %v4086_v54 = vrot.slane %v4085_v30, 4  ;;  %3868 = vperm.xlu1 %4589, %v3254_v27   ;;  %v3255_v1 = vadd.f32 %v6813_v2, %v3126_v0  ;;  %v3127_v14 = vmul.f32 %v5108_v10, %v6619_v34  ;;  %v3111_v7 = vmul.f32 %v5109_v41, %v6619_v34  ;;  %v9836_v27 = vld [vmem:[#allocation130_spill] sm:$0xff] }
 0x31d   : > { %9835 = vst [vmem:[#allocation124_spill] sm:$0xff] %v8528_v35  ;;  %v4287_v19 = vadd.f32 %v8306_v20, %v4286_v61  ;;  %v4092_v28 = vadd.f32 %v3950_v38, %v3949_v58  ;;  %v3951_v46 = vmul.f32 %v8011_v13, %v3514_v48  ;;  %v3239_v37 = vadd.f32 %v6813_v2, %v3110_v33  ;;  %v9837_v10 = vld [vmem:[#allocation58_spill] sm:$0xff]  ;;  %v9838_v58 = vld [vmem:[#allocation101_spill] sm:$0xff] }
 0x31e   : > { %v4087_v25 = vadd.f32 %v4086_v54, %v4085_v30  ;;  %3788 = vperm.xlu0 %4588, %v3238_v6   ;;  %v2913_v15 = vmul.f32 1.442695, %v2702_v18  ;;  %4758 = vpow2.f32 %v2911_v42  ;;  %v2704_v0 = vsub.f32 %v9836_v27, %v8328_v23  ;;  %v3529_v13 = vpop.permute.xlu1 %3528  ;;  %v9839_v33 = vld [vmem:[#allocation146_spill] sm:$0xff] }
 0x31f   : > { %v2703_v56 = vsub.f32 %v9837_v10, %v8328_v23  ;;  %v2607_v41 = vmax.f32 %v2606_v62, %v8528_v35  ;;  %v3952_v30 = vmul.f32 %v8019_v22, %v3519_v31  ;;  %v4093_v38 = vadd.f32 %v4092_v28, %v3951_v46  ;;  %v8546_v6 = vpop.eup %4754  ;;  %v3524_v42 = vpop.permute.xlu0 %3523  ;;  %v5110_v48 = vld [vmem:[%s5299_s9 + $0x3e0] sm:$0xff] }
 0x320   : > { %v4088_v61 = vrot.slane %v4087_v25, 2  ;;  %v8550_v18 = vadd.f32 %v9839_v33, %v9838_v58  ;;  %3873 = vperm.xlu1 %4589, %v3255_v1   ;;  %v3256_v54 = vadd.f32 %v6813_v2, %v3127_v14  ;;  %v3128_v27 = vmul.f32 %v5110_v48, %v6619_v34  ;;  %v5111_v10 = vld [vmem:[%s5299_s9 + $0x360] sm:$0xff]  ;;  %v9841_v58 = vld [vmem:[#allocation149_spill] sm:$0xff] }
 0x321   : > { %v3112_v62 = vmul.f32 %v5111_v10, %v6619_v34  ;;  %v3953_v31 = vmul.f32 %v8045_v45, %v3524_v42  ;;  %v4094_v28 = vadd.f32 %v4093_v38, %v3952_v30  ;;  %v3240_v46 = vadd.f32 %v6813_v2, %v3111_v7  ;;  %v9840_v1 = vld [vmem:[#allocation62_spill] sm:$0xff]  ;;  %v5112_v7 = vld [vmem:[%s5299_s9 + $0x3e8] sm:$0xff] }
 0x322   : > { %v8557_v35 = vpop.eup %4756  ;;  %v4089_v22 = vadd.f32 %v4088_v61, %v4087_v25  ;;  %3793 = vperm.xlu0 %4588, %v3239_v37   ;;  %v8563_v14 = vadd.f32 %v9841_v58, %v9840_v1  ;;  %v4288_v33 = vadd.f32 %v8362_v55, %v4287_v19  ;;  %4760 = vpow2.f32 %v2913_v15  ;;  %v3539_v61 = vpop.permute.xlu1 %3538  ;;  %v5113_v42 = vld [vmem:[%s5299_s9 + $0x368] sm:$0xff]  ;;  %v9844_v58 = vld [vmem:[#allocation16_spill] sm:$0xff] }
 0x323   : > { %v2915_v48 = vmul.f32 1.442695, %v2703_v56  ;;  %v2608_v10 = vmax.f32 %v2607_v41, %v8550_v18  ;;  %v3954_v25 = vmul.f32 %v8032_v29, %v3529_v13  ;;  %v4095_v45 = vadd.f32 %v4094_v28, %v3953_v31  ;;  %v3534_v30 = vpop.permute.xlu0 %3533 }
 0x324   : > { %v4090_v21 = vrot.slane %v4089_v22, 1  ;;  %3878 = vperm.xlu1 %4589, %v3256_v54   ;;  %v3257_v37 = vadd.f32 %v6813_v2, %v3128_v27  ;;  %v3129_v38 = vmul.f32 %v5112_v7, %v6619_v34  ;;  %v3113_v1 = vmul.f32 %v5113_v42, %v6619_v34  ;;  %v9842_v27 = vld [vmem:[#allocation57_spill] sm:$0xff]  ;;  %v5115_v7 = vld [vmem:[%s5299_s9 + $0x370] sm:$0xff] }
 0x325   : > { %v2917_v19 = vmul.f32 1.442695, %v2704_v0  ;;  %v3955_v56 = vmul.f32 %v8056_v36, %v3534_v30  ;;  %v4096_v41 = vadd.f32 %v4095_v45, %v3954_v25  ;;  %v3241_v29 = vadd.f32 %v6813_v2, %v3112_v62 }
 0x326   : > { %v4091_v15 = vadd.f32 %v4090_v21, %v4089_v22  ;;  %3798 = vperm.xlu0 %4588, %v3240_v46   ;;  %v4289_v13 = vadd.f32 %v8343_v60, %v4288_v33  ;;  %v4302_v54 = vadd.f32 %v8557_v35, %v8546_v6  ;;  %4762 = vpow2.f32 %v2915_v48  ;;  %v3549_v22 = vpop.permute.xlu1 %3548  ;;  %v9843_v46 = vld [vmem:[#allocation103_spill] sm:$0xff] }
 0x327   : > { %v2705_v31 = vsub.f32 %v9842_v27, %v8328_v23  ;;  %v2609_v28 = vmax.f32 %v2608_v10, %v8563_v14  ;;  %v3956_v36 = vmul.f32 %v8049_v44, %v3539_v61  ;;  %v4097_v0 = vadd.f32 %v4096_v41, %v3955_v56  ;;  %v3544_v25 = vpop.permute.xlu0 %3543  ;;  %v5114_v10 = vld [vmem:[%s5299_s9 + $0x3f0] sm:$0xff]  ;;  %v9846_v56 = vld [vmem:[#allocation89_spill] sm:$0xff] }
 0x328   : > { %v4370_v21 = vmul.f32 %v8217_v17, %v4091_v15  ;;  %v8583_v62 = vpop.eup %4758  ;;  %v8587_v33 = vadd.f32 %v9844_v58, %v9843_v46  ;;  %3883 = vperm.xlu1 %4589, %v3257_v37   ;;  %v3258_v48 = vadd.f32 %v6813_v2, %v3129_v38  ;;  %v3242_v45 = vadd.f32 %v6813_v2, %v3113_v1  ;;  %v9845_v15 = vld [vmem:[#allocation106_spill] sm:$0xff] }
 0x329   : > { %v3130_v17 = vmul.f32 %v5114_v10, %v6619_v34  ;;  %v3957_v44 = vmul.f32 %v8085_v32, %v3544_v25  ;;  %v4098_v61 = vadd.f32 %v4097_v0, %v3956_v36  ;;  %v3114_v42 = vmul.f32 %v5115_v7, %v6619_v34 }
 0x32a   : > { %v4384_v30 = vadd.f32 %v8040_v5, %v4370_v21  ;;  %3803 = vperm.xlu0 %4588, %v3241_v29   ;;  %v8599_v37 = vadd.f32 %v9846_v56, %v9845_v15  ;;  %v4290_v38 = vadd.f32 %v8408_v51, %v4289_v13  ;;  %4764 = vpow2.f32 %v2917_v19  ;;  %v3559_v21 = vpop.permute.xlu1 %3558  ;;  %v5116_v13 = vld [vmem:[%s5299_s9 + $0x3f8] sm:$0xff] }
 0x32b   : > { %v2706_v1 = vsub.f32 %v7979_v57, %v8328_v23  ;;  %v2610_v41 = vmax.f32 %v2609_v28, %v8587_v33  ;;  %v3958_v29 = vmul.f32 %v8066_v52, %v3549_v22  ;;  %v4099_v27 = vadd.f32 %v4098_v61, %v3957_v44  ;;  %v3554_v0 = vpop.permute.xlu0 %3553  ;;  %v5117_v22 = vld [vmem:[%s5299_s9 + $0x378] sm:$0xff]  ;;  %s5203_s9 = smov [#allocation5]  }
 0x32c   : > { %v4392_v32 = vand.u32 2147483647, %v4384_v30  ;;  %v8606_v36 = vpop.eup %4760  ;;  %3888 = vperm.xlu1 %4589, %v3258_v48   ;;  %v3259_v46 = vadd.f32 %v6813_v2, %v3130_v17  ;;  %v3131_v19 = vmul.f32 %v5116_v13, %v6619_v34  ;;  %v4303_v58 = vadd.f32 %v8583_v62, %v4302_v54  ;;  %v9847_v30 = vld [vmem:[#allocation88_spill] sm:$0xff]  ;;  %s5137_s10 = sshll.u32 %s5203_s9, 4  ;;  %s5138_s10 = int_to_ptr.vmem [resolvable:$false] %s5137_s10 }
 0x32d   : > { %v2919_v57 = vmul.f32 1.442695, %v2705_v31  ;;  %v3959_v28 = vmul.f32 %v8098_v12, %v3554_v0  ;;  %v4100_v25 = vadd.f32 %v4099_v27, %v3958_v29  ;;  %v3243_v52 = vadd.f32 %v6813_v2, %v3114_v42  ;;  %v9848_v48 = vld [vmem:[#allocation100_spill] sm:$0xff]  ;;  %s5139_s11 = scalar_lea.vmem %s5138_s10, 256  ;;  %p5140_p13 = scmp.lt.s32.totalorder %s8967_s4, %s5138_s10 }
 0x32e   : > { %4400 = vst [vmem:[%s8246_s29 + $0x2] sm:$0x1] %v4392_v32  ;;  %3808 = vperm.xlu0 %4588, %v3242_v45   ;;  %v3115_v10 = vmul.f32 %v5117_v22, %v6619_v34  ;;  %v8619_v44 = vadd.f32 %v9848_v48, %v9847_v30  ;;  %v9849_v17 = vmax.f32 %v8497_v40, %v8492_v11  ;;  %v9850_v31 = vrot.slane %v8488_v49, 2  ;;  %v3569_v34 = vpop.permute.xlu1 %3568  ;;  %v9853_v48 = vld [vmem:[#allocation15_spill] sm:$0xff]  ;;  %p5141_p0 = scmp.lt.s32.totalorder %s5139_s11, %s5133_s8 }
 0x32f   : > { %v2921_v61 = vmul.f32 1.442695, %v2706_v1  ;;  %v2611_v45 = vmax.f32 %v2610_v41, %v8599_v37  ;;  %v3960_v7 = vmul.f32 %v8092_v16, %v3559_v21  ;;  %v4101_v42 = vadd.f32 %v4100_v25, %v3959_v28  ;;  %v9851_v1 = vld [vmem:[#allocation105_spill] sm:$0xff]  ;;  %v9852_v41 = vld [vmem:[#allocation151_spill] sm:$0xff] }
 0x330   : > { %v2590_v54 = vmax.f32 %v9849_v17, %v8520_v43  ;;  %v4278_v12 = vadd.f32 %v9850_v31, %v8488_v49  ;;  %v4291_v15 = vadd.f32 %v8370_v50, %v4290_v38  ;;  %v8631_v56 = vpop.eup %4762  ;;  %v3564_v32 = vpop.permute.xlu0 %3563  ;;  %3893 = vperm.xlu1 %4589, %v3259_v46   ;;  %v3260_v40 = vadd.f32 %v6813_v2, %v3131_v19  ;;  %p5142_p1 = por %p5141_p0, %p5140_p13 }
 0x331   : > { %v4304_v29 = vadd.f32 %v8606_v36, %v4303_v58  ;;  %4766 = vpow2.f32 %v2919_v57  ;;  %v2707_v49 = vsub.f32 %v7989_v59, %v8328_v23  ;;  %v8639_v27 = vadd.f32 %v9852_v41, %v9851_v1 }
 0x332   : > { %v3961_v16 = vmul.f32 %v8113_v63, %v3564_v32  ;;  %v4102_v21 = vadd.f32 %v4101_v42, %v3960_v7  ;;  %3813 = vperm.xlu0 %4588, %v3243_v52   ;;  %v3244_v38 = vadd.f32 %v6813_v2, %v3115_v10  ;;  %v2591_v0 = vmax.f32 %v2590_v54, %v8619_v44  ;;  %v9855_v32 = vld [vmem:[#allocation110_spill] sm:$0xff]  ;;  %p5143_p2 = pnand %p5142_p1, %p5136_p12 }
 0x333   : > { %v2612_v46 = vmax.f32 %v2611_v45, %v8639_v27  ;;  %v3962_v13 = vmul.f32 %v8105_v4, %v3569_v34  ;;  %v3579_v58 = vpop.permute.xlu1 %3578  ;;  %v4279_v57 = vrot.slane %v4278_v12, 1  ;;  %v4292_v25 = vadd.f32 %v8504_v53, %v4291_v15 }
 0x334   : > { %v4103_v19 = vadd.f32 %v4102_v21, %v3961_v16  ;;  %v8646_v59 = vpop.eup %4764  ;;  %v3574_v28 = vpop.permute.xlu0 %3573  ;;  %3898 = vperm.xlu1 %4589, %v3260_v40   ;;  %4768 = vpow2.f32 %v8447_v8  ;;  %v4305_v63 = vadd.f32 %v8631_v56, %v4304_v29  ;;  %v2708_v2 = vsub.f32 %v8015_v3, %v8328_v23  ;;  %v9854_v3 = vld [vmem:[#allocation22_spill] sm:$0xff]  ;;  %v9856_v40 = vld [vmem:[#allocation127_spill] sm:$0xff] }
 0x335   : > { %v3963_v52 = vmul.f32 %v9770_v47, %v3574_v28  ;;  %4770 = vpow2.f32 %v2921_v61  ;;  %v2923_v4 = vmul.f32 1.442695, %v2707_v49  ;;  %v2592_v10 = vrot.slane %v2591_v0, 4 }
 0x336   : > { %v4104_v22 = vadd.f32 %v4103_v19, %v3962_v13  ;;  %3818 = vperm.xlu0 %4588, %v3244_v38   ;;  %v2613_v30 = vrot.slane %v2612_v46, 4  ;;  %v3964_v17 = vmul.f32 %v9853_v48, %v3579_v58  ;;  %v4280_v31 = vadd.f32 %v4279_v57, %v4278_v12  ;;  %v9857_v38 = vld [vmem:[#allocation59_spill] sm:$0xff]  ;;  %v9858_v58 = vld [vmem:[#allocation70_spill] sm:$0xff] }
 0x337   : > { %v3589_v45 = vpop.permute.xlu1 %3588  ;;  %v4293_v8 = vadd.f32 %v8453_v39, %v4292_v25  ;;  %v4306_v42 = vadd.f32 %v8646_v59, %v4305_v63  ;;  %v2925_v34 = vmul.f32 1.442695, %v2708_v2  ;;  %v2709_v47 = vsub.f32 %v9854_v3, %v8328_v23  ;;  %v9859_v63 = vld [vmem:[#allocation132_spill] sm:$0xff] }
 0x338   : > { %v4105_v54 = vadd.f32 %v4104_v22, %v3963_v52  ;;  %v3584_v7 = vpop.permute.xlu0 %3583  ;;  %v3966_v61 = vmul.f32 %v9855_v32, %v3589_v45  ;;  %4772 = vpow2.f32 %v2923_v4  ;;  %v2593_v1 = vmax.f32 %v2591_v0, %v2592_v10 }
 0x339   : > { %v3965_v29 = vmul.f32 %v9856_v40, %v3584_v7  ;;  %v2614_v12 = vmax.f32 %v2612_v46, %v2613_v30  ;;  %4774 = vrcp.f32 %v4280_v31  ;;  %v4294_v13 = vadd.f32 %v9857_v38, %v4293_v8  ;;  %v9860_v30 = vld [vmem:[#allocation61_spill] sm:$0xff] }
 0x33a   : > { %v4106_v15 = vadd.f32 %v4105_v54, %v3964_v17  ;;  %4776 = vpow2.f32 %v2925_v34  ;;  %v2710_v57 = vsub.f32 %v9858_v58, %v8328_v23  ;;  %v2927_v52 = vmul.f32 1.442695, %v2709_v47 }
 0x33b   : > { %v8661_v49 = vpop.eup %4766  ;;  %v3599_v16 = vpop.permute.xlu1 %3598  ;;  %v4113_v25 = vadd.f32 %v3966_v61, %v3965_v29  ;;  %v2594_v0 = vrot.slane %v2593_v1, 2  ;;  %v2615_v4 = vrot.slane %v2614_v12, 2 }
 0x33c   : > { %v4107_v41 = vrot.slane %v4106_v15, 4  ;;  %v3594_v21 = vpop.permute.xlu0 %3593  ;;  %v4307_v19 = vadd.f32 %v8661_v49, %v4306_v42  ;;  %v3968_v48 = vmul.f32 %v9860_v30, %v3599_v16  ;;  %v2929_v8 = vmul.f32 1.442695, %v2710_v57  ;;  %v9861_v42 = vld [vmem:[#allocation73_spill] sm:$0xff] }
 0x33d   : > { %v3967_v2 = vmul.f32 %v9859_v63, %v3594_v21  ;;  %v2711_v34 = vsub.f32 %v9861_v42, %v8328_v23  ;;  %4778 = vpow2.f32 %v2927_v52  ;;  %v2595_v32 = vmax.f32 %v2593_v1, %v2594_v0  ;;  %v9862_v57 = vld [vmem:[#allocation121_spill] sm:$0xff] }
 0x33e   : > { %v4108_v28 = vadd.f32 %v4107_v41, %v4106_v15  ;;  %v8668_v22 = vpop.eup %4768  ;;  %v2616_v40 = vmax.f32 %v2614_v12, %v2615_v4  ;;  %4780 = vpow2.f32 %v2929_v8 }
 0x33f   : > { %v8670_v46 = vpop.eup %4770  ;;  %v4114_v17 = vadd.f32 %v4113_v25, %v3967_v2  ;;  %v3609_v54 = vpop.permute.xlu1 %3608  ;;  %v4295_v45 = vadd.f32 %v8668_v22, %v4294_v13  ;;  %v2931_v2 = vmul.f32 1.442695, %v2711_v34  ;;  %v2596_v52 = vrot.slane %v2595_v32, 1 }
 0x340   : > { %v4109_v10 = vrot.slane %v4108_v28, 2  ;;  %v3604_v31 = vpop.permute.xlu0 %3603  ;;  %v4308_v7 = vadd.f32 %v8670_v46, %v4307_v19  ;;  %v3970_v41 = vmul.f32 %v8287_v24, %v3609_v54  ;;  %v2617_v24 = vrot.slane %v2616_v40, 1 }
 0x341   : > { %v3969_v47 = vmul.f32 %v8298_v26, %v3604_v31  ;;  %v4115_v15 = vadd.f32 %v4114_v17, %v3968_v48  ;;  %v4296_v19 = vrot.slane %v4295_v45, 4  ;;  %v9863_v48 = vld [vmem:[#allocation122_spill] sm:$0xff]  ;;  %4782 = vpow2.f32 %v2931_v2 }
 0x342   : > { %v4110_v3 = vadd.f32 %v4109_v10, %v4108_v28  ;;  %v8678_v61 = vpop.eup %4772  ;;  %v2712_v28 = vsub.f32 %v9862_v57, %v8328_v23  ;;  %v2713_v17 = vsub.f32 %v9863_v48, %v8328_v23  ;;  %v9868_v48 = vld [vmem:[#allocation120_spill] sm:$0xff] }
 0x343   : > { %v4116_v16 = vadd.f32 %v4115_v15, %v3969_v47  ;;  %v3619_v21 = vpop.permute.xlu1 %3618  ;;  %v4309_v58 = vadd.f32 %v8678_v61, %v4308_v7  ;;  %v4775_v26 = vpop.eup %4774  ;;  %v4297_v31 = vadd.f32 %v4296_v19, %v4295_v45  ;;  %v8697_v47 = vmax.f32 %v2616_v40, %v2617_v24 }
 0x344   : > { %v4111_v29 = vrot.slane %v4110_v3, 1  ;;  %v3614_v13 = vpop.permute.xlu0 %3613  ;;  %v8685_v12 = vpop.eup %4776  ;;  %v3972_v4 = vmul.f32 %v8306_v20, %v3619_v21  ;;  %v2933_v8 = vmul.f32 1.442695, %v2712_v28  ;;  %v9865_v28 = vld [vmem:[#allocation81_spill] sm:$0xff] }
 0x345   : > { %v3971_v1 = vmul.f32 %v8311_v9, %v3614_v13  ;;  %v4117_v63 = vadd.f32 %v4116_v16, %v3970_v41  ;;  %v4310_v7 = vadd.f32 %v8685_v12, %v4309_v58  ;;  %v2935_v16 = vmul.f32 1.442695, %v2713_v17 }
 0x346   : > { %v4112_v25 = vadd.f32 %v4111_v29, %v4110_v3  ;;  %v8693_v3 = vmax.f32 %v2595_v32, %v2596_v52  ;;  %v4298_v13 = vrot.slane %v4297_v31, 2  ;;  %4784 = vpow2.f32 %v2933_v8  ;;  %v9864_v32 = vld [vmem:[#allocation131_spill] sm:$0xff] }
 0x347   : > { %v4118_v10 = vadd.f32 %v4117_v63, %v3971_v1  ;;  %v3629_v30 = vpop.permute.xlu1 %3628  ;;  %v8695_v20 = vpop.eup %4778  ;;  %v2714_v57 = vsub.f32 %v9864_v32, %v8328_v23  ;;  %v9866_v63 = vld [vmem:[#allocation13_spill] sm:$0xff]  ;;  %4786 = vpow2.f32 %v2935_v16  ;;  %v9869_v16 = vld [vmem:[#allocation63_spill] sm:$0xff] }
 0x348   : > { %v4372_v0 = vmul.f32 %v4775_v26, %v4112_v25  ;;  %v3624_v54 = vpop.permute.xlu0 %3623  ;;  %v3974_v29 = vmul.f32 %v8343_v60, %v3629_v30  ;;  %v4311_v19 = vadd.f32 %v8695_v20, %v4310_v7  ;;  %v8705_v40 = vpop.eup %4780  ;;  %v2716_v60 = vsub.f32 %v9865_v28, %v8693_v3 }
 0x349   : > { %v3973_v42 = vmul.f32 %v8362_v55, %v3624_v54  ;;  %v4119_v34 = vadd.f32 %v4118_v10, %v3972_v4  ;;  %v2731_v2 = vsub.f32 %v9866_v63, %v8697_v47  ;;  %v2937_v30 = vmul.f32 1.442695, %v2714_v57  ;;  %v9871_v63 = vld [vmem:[#allocation134_spill] sm:$0xff] }
 0x34a   : > { %v4385_v9 = vadd.f32 %v8040_v5, %v4372_v0  ;;  %v4312_v24 = vadd.f32 %v8705_v40, %v4311_v19  ;;  %v9867_v0 = vld [vmem:[#allocation116_spill] sm:$0xff]  ;;  %v2941_v17 = vmul.f32 1.442695, %v2716_v60 }
 0x34b   : > { %v4120_v45 = vadd.f32 %v4119_v34, %v3973_v42  ;;  %v3639_v41 = vpop.permute.xlu1 %3638  ;;  %v2732_v23 = vsub.f32 %v9867_v0, %v8697_v47  ;;  %v8718_v54 = vpop.eup %4782  ;;  %4788 = vpow2.f32 %v2937_v30 }
 0x34c   : > { %v4393_v15 = vand.u32 2147483647, %v4385_v9  ;;  %v3634_v21 = vpop.permute.xlu0 %3633  ;;  %v3976_v26 = vmul.f32 %v8370_v50, %v3639_v41  ;;  %v2715_v50 = vsub.f32 %v9868_v48, %v8693_v3  ;;  %4790 = vpow2.f32 %v2941_v17 }
 0x34d   : > { %v3975_v55 = vmul.f32 %v8408_v51, %v3634_v21  ;;  %v4121_v58 = vadd.f32 %v4120_v45, %v3974_v29  ;;  %v4299_v51 = vadd.f32 %v4298_v13, %v4297_v31  ;;  %v2971_v31 = vmul.f32 1.442695, %v2731_v2 }
 0x34e   : > { %4401 = vst [vmem:[%s8246_s29 + $0x3] sm:$0x1] %v4393_v15  ;;  %v4313_v15 = vadd.f32 %v8718_v54, %v4312_v24  ;;  %v2973_v29 = vmul.f32 1.442695, %v2732_v23  ;;  %v2939_v41 = vmul.f32 1.442695, %v2715_v50  ;;  %v2733_v21 = vsub.f32 %v9869_v16, %v8697_v47 }
 0x34f   : > { %v4122_v25 = vadd.f32 %v4121_v58, %v3975_v55  ;;  %v3649_v1 = vpop.permute.xlu1 %3648  ;;  %v4300_v34 = vrot.slane %v4299_v51, 1  ;;  %4792 = vpow2.f32 %v2971_v31  ;;  %v9870_v58 = vld [vmem:[#allocation87_spill] sm:$0xff]  ;;  %v2734_v2 = vsub.f32 %v9871_v63, %v8697_v47 }
 0x350   : > { %v3644_v52 = vpop.permute.xlu0 %3643  ;;  %v3978_v7 = vmul.f32 %v8453_v39, %v3649_v1  ;;  %v8725_v13 = vpop.eup %4784  ;;  %v2717_v32 = vsub.f32 %v9870_v58, %v8693_v3  ;;  %4794 = vpow2.f32 %v2973_v29 }
 0x351   : > { %v3977_v4 = vmul.f32 %v8504_v53, %v3644_v52  ;;  %v4123_v10 = vadd.f32 %v4122_v25, %v3976_v26  ;;  %v4301_v57 = vadd.f32 %v4300_v34, %v4299_v51  ;;  %4796 = vpow2.f32 %v2939_v41  ;;  %v8733_v1 = vpop.eup %4786  ;;  %v9872_v52 = vld [vmem:[#allocation84_spill] sm:$0xff] }
 0x352   : > { %v2718_v24 = vsub.f32 %v9872_v52, %v8693_v3  ;;  %v2943_v23 = vmul.f32 1.442695, %v2717_v32  ;;  %v2977_v17 = vmul.f32 1.442695, %v2734_v2  ;;  %v9877_v2 = vld [vmem:[#allocation119_spill] sm:$0xff] }
 0x353   : > { %v4124_v8 = vadd.f32 %v4123_v10, %v3977_v4  ;;  %v3659_v9 = vpop.permute.xlu1 %3658  ;;  %4798 = vrcp.f32 %v4301_v57  ;;  %v9876_v57 = vld [vmem:[#allocation114_spill] sm:$0xff]  ;;  %v2721_v52 = vsub.f32 %v9877_v2, %v8693_v3  ;;  %v9881_v2 = vld [vmem:[#allocation129_spill] sm:$0xff] }
 0x354   : > { %v3654_v42 = vpop.permute.xlu0 %3653  ;;  %v3980_v39 = vmul.f32 %v8668_v22, %v3659_v9  ;;  %v2975_v22 = vmul.f32 1.442695, %v2733_v21 }
 0x355   : > { %v3979_v53 = vmul.f32 %v9857_v38, %v3654_v42  ;;  %v4125_v45 = vadd.f32 %v4124_v8, %v3978_v7  ;;  %v4314_v38 = vadd.f32 %v8725_v13, %v4313_v15  ;;  %v2945_v7 = vmul.f32 1.442695, %v2718_v24  ;;  %v9874_v8 = vld [vmem:[#allocation67_spill] sm:$0xff]  ;;  %v8745_v31 = vpop.eup %4788 }
 0x356   : > { %4800 = vpow2.f32 %v2975_v22  ;;  %v2735_v9 = vsub.f32 %v9874_v8, %v8697_v47 }
 0x357   : > { %v4126_v19 = vadd.f32 %v4125_v45, %v3979_v53  ;;  %v3669_v55 = vpop.permute.xlu1 %3668  ;;  %v4315_v10 = vadd.f32 %v8733_v1, %v4314_v38  ;;  %4802 = vpow2.f32 %v2943_v23  ;;  %v8748_v53 = vpop.eup %4790 }
 0x358   : > { %v3664_v28 = vpop.permute.xlu0 %3663  ;;  %v3982_v26 = vmul.f32 %v8546_v6, %v3669_v55  ;;  %v9873_v6 = vld [vmem:[#allocation64_spill] sm:$0xff]  ;;  %4804 = vpow2.f32 %v2977_v17  ;;  %v2979_v58 = vmul.f32 1.442695, %v2735_v9 }
 0x359   : > { %v4127_v60 = vadd.f32 %v4126_v19, %v3980_v39  ;;  %v3981_v25 = vmul.f32 %v8557_v35, %v3664_v28  ;;  %v2719_v35 = vsub.f32 %v9873_v6, %v8693_v3  ;;  %v4316_v41 = vadd.f32 %v8745_v31, %v4315_v10  ;;  %v8751_v16 = vpop.eup %4792  ;;  %v9878_v6 = vld [vmem:[#allocation29_spill] sm:$0xff] }
 0x35a   : > { %v8754_v55 = vpop.eup %4794  ;;  %v2720_v28 = vsub.f32 %v9876_v57, %v8693_v3  ;;  %4806 = vpow2.f32 %v2945_v7 }
 0x35b   : > { %v4128_v51 = vrot.slane %v4127_v60, 4  ;;  %v3679_v0 = vpop.permute.xlu1 %3678  ;;  %v4134_v48 = vadd.f32 %v3982_v26, %v3981_v25  ;;  %v8760_v38 = vpop.eup %4796  ;;  %v4317_v63 = vrot.slane %v4316_v41, 4  ;;  %v4344_v23 = vadd.f32 %v8754_v55, %v8751_v16 }
 0x35c   : > { %v3674_v4 = vpop.permute.xlu0 %3673  ;;  %v3984_v34 = vmul.f32 %v8606_v36, %v3679_v0  ;;  %v9875_v36 = vld [vmem:[#allocation28_spill] sm:$0xff]  ;;  %v2949_v7 = vmul.f32 1.442695, %v2720_v28 }
 0x35d   : > { %v4129_v30 = vadd.f32 %v4128_v51, %v4127_v60  ;;  %v3983_v50 = vmul.f32 %v8583_v62, %v3674_v4  ;;  %v2947_v62 = vmul.f32 1.442695, %v2719_v35  ;;  %v2736_v32 = vsub.f32 %v9875_v36, %v8697_v47  ;;  %v4799_v4 = vpop.eup %4798 }
 0x35e   : > { %v2737_v35 = vsub.f32 %v9878_v6, %v8697_v47  ;;  %v4318_v9 = vadd.f32 %v4317_v63, %v4316_v41  ;;  %v9880_v41 = vld [vmem:[#allocation123_spill] sm:$0xff] }
 0x35f   : > { %v4130_v42 = vrot.slane %v4129_v30, 2  ;;  %v4135_v15 = vadd.f32 %v4134_v48, %v3983_v50  ;;  %v3689_v29 = vpop.permute.xlu1 %3688  ;;  %4808 = vpow2.f32 %v2947_v62  ;;  %v2981_v10 = vmul.f32 1.442695, %v2736_v32 }
 0x360   : > { %v3684_v45 = vpop.permute.xlu0 %3683  ;;  %v3986_v26 = vmul.f32 %v8646_v59, %v3689_v29  ;;  %v4323_v59 = vadd.f32 %v8760_v38, %v8748_v53  ;;  %4810 = vpow2.f32 %v2979_v58  ;;  %v2738_v58 = vsub.f32 %v9880_v41, %v8697_v47 }
 0x361   : > { %v4131_v21 = vadd.f32 %v4130_v42, %v4129_v30  ;;  %v3985_v39 = vmul.f32 %v8631_v56, %v3684_v45  ;;  %v4136_v19 = vadd.f32 %v4135_v15, %v3984_v34  ;;  %v2951_v42 = vmul.f32 1.442695, %v2721_v52  ;;  %v9879_v34 = vld [vmem:[#allocation27_spill] sm:$0xff] }
 0x362   : > { %v2722_v15 = vsub.f32 %v9879_v34, %v8693_v3  ;;  %4812 = vpow2.f32 %v2981_v10  ;;  %v2739_v52 = vsub.f32 %v9881_v2, %v8697_v47 }
 0x363   : > { %v4132_v60 = vrot.slane %v4131_v21, 1  ;;  %v4137_v25 = vadd.f32 %v4136_v19, %v3985_v39  ;;  %v3699_v22 = vpop.permute.xlu1 %3698  ;;  %v2983_v19 = vmul.f32 1.442695, %v2737_v35  ;;  %4814 = vpow2.f32 %v2949_v7 }
 0x364   : > { %v3694_v56 = vpop.permute.xlu0 %3693  ;;  %v3988_v48 = vmul.f32 %v8670_v46, %v3699_v22  ;;  %v2987_v7 = vmul.f32 1.442695, %v2739_v52 }
 0x365   : > { %v4133_v24 = vadd.f32 %v4132_v60, %v4131_v21  ;;  %v3987_v51 = vmul.f32 %v8661_v49, %v3694_v56  ;;  %v4138_v0 = vadd.f32 %v4137_v25, %v3986_v26  ;;  %v8773_v49 = vpop.eup %4800  ;;  %v4319_v26 = vrot.slane %v4318_v9, 2 }
 0x366   : > { %v8777_v29 = vpop.eup %4802  ;;  %v4345_v46 = vadd.f32 %v8773_v49, %v4344_v23  ;;  %4816 = vpow2.f32 %v2983_v19 }
 0x367   : > { %v4374_v30 = vmul.f32 %v4799_v4, %v4133_v24  ;;  %v4139_v50 = vadd.f32 %v4138_v0, %v3987_v51  ;;  %v3709_v17 = vpop.permute.xlu1 %3708  ;;  %v4324_v39 = vadd.f32 %v8777_v29, %v4323_v59  ;;  %v8786_v60 = vpop.eup %4804  ;;  %v2985_v51 = vmul.f32 1.442695, %v2738_v58  ;;  %v9882_v0 = vld [vmem:[#allocation12_spill] sm:$0xff] }
 0x368   : > { %v3704_v8 = vpop.permute.xlu0 %3703  ;;  %v3990_v32 = vmul.f32 %v8685_v12, %v3709_v17  ;;  %v8788_v25 = vpop.eup %4806  ;;  %v4346_v63 = vadd.f32 %v8786_v60, %v4345_v46  ;;  %v2723_v23 = vsub.f32 %v9882_v0, %v8693_v3  ;;  %4818 = vpow2.f32 %v2951_v42 }
 0x369   : > { %v4386_v45 = vadd.f32 %v8040_v5, %v4374_v30  ;;  %v3989_v62 = vmul.f32 %v8678_v61, %v3704_v8  ;;  %v4140_v21 = vadd.f32 %v4139_v50, %v3988_v48  ;;  %v8795_v24 = vpop.eup %4808  ;;  %v4325_v12 = vadd.f32 %v8788_v25, %v4324_v39 }
 0x36a   : > { %v8801_v6 = vpop.eup %4810  ;;  %v4320_v30 = vadd.f32 %v4319_v26, %v4318_v9  ;;  %4820 = vpow2.f32 %v2985_v51  ;;  %v2955_v34 = vmul.f32 1.442695, %v2723_v23  ;;  %v9884_v9 = vld [vmem:[#allocation19_spill] sm:$0xff] }
 0x36b   : > { %v4394_v36 = vand.u32 2147483647, %v4386_v45  ;;  %v4141_v57 = vadd.f32 %v4140_v21, %v3989_v62  ;;  %v3719_v28 = vpop.permute.xlu1 %3718  ;;  %v4347_v17 = vadd.f32 %v8801_v6, %v4346_v63  ;;  %v4326_v8 = vadd.f32 %v8795_v24, %v4325_v12  ;;  %v9886_v63 = vld [vmem:[#allocation65_spill] sm:$0xff] }
 0x36c   : > { %v3714_v61 = vpop.permute.xlu0 %3713  ;;  %v3992_v4 = vmul.f32 %v8705_v40, %v3719_v28  ;;  %v9883_v40 = vld [vmem:[#allocation111_spill] sm:$0xff]  ;;  %v2724_v21 = vsub.f32 %v9884_v9, %v8693_v3  ;;  %v4321_v39 = vrot.slane %v4320_v30, 1 }
 0x36d   : > { %4402 = vst [vmem:[%s8246_s29 + $0x4] sm:$0x1] %v4394_v36  ;;  %v3991_v22 = vmul.f32 %v8695_v20, %v3714_v61  ;;  %v4142_v56 = vadd.f32 %v4141_v57, %v3990_v32  ;;  %v2953_v20 = vmul.f32 1.442695, %v2722_v15  ;;  %v2740_v45 = vsub.f32 %v9883_v40, %v8697_v47  ;;  %v9885_v57 = vld [vmem:[#allocation124_spill] sm:$0xff] }
 0x36e   : > { %v2741_v28 = vsub.f32 %v9885_v57, %v8697_v47  ;;  %v4322_v52 = vadd.f32 %v4321_v39, %v4320_v30  ;;  %v9887_v30 = vld [vmem:[#allocation68_spill] sm:$0xff] }
 0x36f   : > { %v4143_v59 = vadd.f32 %v4142_v56, %v3991_v22  ;;  %v3729_v10 = vpop.permute.xlu1 %3728  ;;  %4822 = vpow2.f32 %v2953_v20  ;;  %v2989_v32 = vmul.f32 1.442695, %v2740_v45  ;;  %v2957_v56 = vmul.f32 1.442695, %v2724_v21  ;;  %v9888_v21 = vld [vmem:[#allocation128_spill] sm:$0xff] }
 0x370   : > { %v3724_v35 = vpop.permute.xlu0 %3723  ;;  %v3994_v42 = vmul.f32 %v8725_v13, %v3729_v10  ;;  %4824 = vpow2.f32 %v2987_v7  ;;  %v2743_v45 = vsub.f32 %v8563_v14, %v8697_v47 }
 0x371   : > { %v3993_v48 = vmul.f32 %v8718_v54, %v3724_v35  ;;  %v4144_v50 = vadd.f32 %v4143_v59, %v3992_v4  ;;  %v8811_v54 = vpop.eup %4812  ;;  %4826 = vpow2.f32 %v2955_v34  ;;  %v2742_v59 = vsub.f32 %v8550_v18, %v8697_v47 }
 0x372   : > { %v8813_v19 = vpop.eup %4814  ;;  %v4348_v36 = vadd.f32 %v8811_v54, %v4347_v17  ;;  %4828 = vpow2.f32 %v2989_v32  ;;  %v2995_v14 = vmul.f32 1.442695, %v2743_v45  ;;  %v2744_v32 = vsub.f32 %v8587_v33, %v8697_v47 }
 0x373   : > { %v4145_v15 = vadd.f32 %v4144_v50, %v3993_v48  ;;  %v3739_v62 = vpop.permute.xlu1 %3738  ;;  %v4327_v13 = vadd.f32 %v8813_v19, %v4326_v8  ;;  %v8825_v2 = vpop.eup %4816  ;;  %4830 = vpow2.f32 %v2957_v56  ;;  %v2726_v48 = vsub.f32 %v9887_v30, %v8693_v3 }
 0x374   : > { %v3734_v46 = vpop.permute.xlu0 %3733  ;;  %v3996_v61 = vmul.f32 %v8745_v31, %v3739_v62  ;;  %v8829_v51 = vpop.eup %4818  ;;  %v4349_v23 = vadd.f32 %v8825_v2, %v4348_v36  ;;  %v2991_v31 = vmul.f32 1.442695, %v2741_v28  ;;  %4832 = vrcp.f32 %v4322_v52 }
 0x375   : > { %v3995_v41 = vmul.f32 %v8733_v1, %v3734_v46  ;;  %v4146_v58 = vadd.f32 %v4145_v15, %v3994_v42  ;;  %v2725_v1 = vsub.f32 %v9886_v63, %v8693_v3  ;;  %v4328_v4 = vadd.f32 %v8829_v51, %v4327_v13  ;;  %v8839_v50 = vpop.eup %4820 }
 0x376   : > { %v4350_v34 = vadd.f32 %v8839_v50, %v4349_v23  ;;  %4834 = vpow2.f32 %v2991_v31  ;;  %v2993_v40 = vmul.f32 1.442695, %v2742_v59  ;;  %v2961_v9 = vmul.f32 1.442695, %v2726_v48 }
 0x377   : > { %v4147_v26 = vadd.f32 %v4146_v58, %v3995_v41  ;;  %v8821_v22 = vpop.permute.xlu1 %3748  ;;  %v2959_v35 = vmul.f32 1.442695, %v2725_v1  ;;  %v2727_v46 = vsub.f32 %v9888_v21, %v8693_v3  ;;  %v2745_v33 = vsub.f32 %v8599_v37, %v8697_v47 }
 0x378   : > { %v8827_v12 = vpop.permute.xlu0 %3743  ;;  %v2997_v31 = vmul.f32 1.442695, %v2744_v32  ;;  %v2730_v21 = vsub.f32 %v8619_v44, %v8693_v3 }
 0x379   : > { %v4148_v0 = vadd.f32 %v4147_v26, %v3996_v61  ;;  %v8843_v7 = vpop.eup %4822  ;;  %4836 = vpow2.f32 %v2959_v35  ;;  %v2963_v61 = vmul.f32 1.442695, %v2727_v46  ;;  %v2728_v26 = vsub.f32 %v8492_v11, %v8693_v3 }
 0x37a   : > { %v4329_v18 = vadd.f32 %v8843_v7, %v4328_v4  ;;  %v8849_v42 = vpop.eup %4824  ;;  %4838 = vpow2.f32 %v2993_v40  ;;  %v2729_v11 = vsub.f32 %v8520_v43, %v8693_v3  ;;  %v2746_v43 = vsub.f32 %v8639_v27, %v8697_v47 }
 0x37b   : > { %v4149_v10 = vrot.slane %v4148_v0, 4  ;;  %v8835_v20 = vpop.permute.xlu1 %3823  ;;  %v8855_v39 = vpop.eup %4826  ;;  %v4351_v36 = vadd.f32 %v8849_v42, %v4350_v34  ;;  %4840 = vpow2.f32 %v2961_v9  ;;  %v2965_v35 = vmul.f32 1.442695, %v2728_v26 }
 0x37c   : > { %v4330_v13 = vadd.f32 %v8855_v39, %v4329_v18  ;;  %v8865_v56 = vpop.eup %4828  ;;  %4842 = vpow2.f32 %v2995_v14  ;;  %v2999_v18 = vmul.f32 1.442695, %v2745_v33  ;;  %v2967_v45 = vmul.f32 1.442695, %v2729_v11 }
 0x37d   : > { %v8841_v17 = vpop.permute.xlu0 %3753  ;;  %v4150_v8 = vadd.f32 %v4149_v10, %v4148_v0  ;;  %v8869_v1 = vpop.eup %4830  ;;  %v4352_v0 = vadd.f32 %v8865_v56, %v4351_v36  ;;  %4844 = vpow2.f32 %v2963_v61  ;;  %v3001_v32 = vmul.f32 1.442695, %v2746_v43 }
 0x37e   : > { %v4833_v23 = vpop.eup %4832  ;;  %v4331_v4 = vadd.f32 %v8869_v1, %v4330_v13  ;;  %4846 = vpow2.f32 %v2997_v31  ;;  %v2969_v47 = vmul.f32 1.442695, %v2730_v21  ;;  %v4013_v33 = vmul.f32 %v8751_v16, %v8835_v20 }
 0x37f   : > { %v4151_v15 = vrot.slane %v4150_v8, 2  ;;  %v8851_v62 = vpop.permute.xlu1 %3833  ;;  %4848 = vpow2.f32 %v2965_v35 }
 0x380   : > { %v8877_v30 = vpop.eup %4834  ;;  %4850 = vpow2.f32 %v2999_v18  ;;  %v4015_v16 = vmul.f32 %v8773_v49, %v8851_v62 }
 0x381   : > { %v3829_v41 = vpop.permute.xlu0 %3828  ;;  %v4152_v58 = vadd.f32 %v4151_v15, %v4150_v8  ;;  %v4353_v37 = vadd.f32 %v8877_v30, %v4352_v0  ;;  %4852 = vpow2.f32 %v2967_v45 }
 0x382   : > { %v4014_v3 = vmul.f32 %v8754_v55, %v3829_v41  ;;  %4854 = vpow2.f32 %v3001_v32  ;;  %v3998_v55 = vmul.f32 %v8748_v53, %v8821_v22  ;;  %v3997_v41 = vmul.f32 %v8760_v38, %v8827_v12 }
 0x383   : > { %v4153_v57 = vrot.slane %v4152_v58, 1  ;;  %v8861_v28 = vpop.permute.xlu1 %3838  ;;  %v8879_v8 = vpop.eup %4836  ;;  %4856 = vpow2.f32 %v2969_v47 }
 0x384   : > { %v4332_v40 = vadd.f32 %v8879_v8, %v4331_v4  ;;  %v8888_v46 = vpop.eup %4838  ;;  %v4016_v53 = vmul.f32 %v8786_v60, %v8861_v28  ;;  %v4155_v12 = vadd.f32 %v3998_v55, %v3997_v41 }
 0x385   : > { %v8867_v63 = vpop.permute.xlu0 %3758  ;;  %v4154_v52 = vadd.f32 %v4153_v57, %v4152_v58  ;;  %v8890_v36 = vpop.eup %4840  ;;  %v4354_v13 = vadd.f32 %v8888_v46, %v4353_v37 }
 0x386   : > { %v4333_v14 = vadd.f32 %v8890_v36, %v4332_v40  ;;  %v8895_v57 = vpop.eup %4842  ;;  %v3999_v40 = vmul.f32 %v8777_v29, %v8841_v17  ;;  %v4000_v45 = vmul.f32 %v8788_v25, %v8867_v63 }
 0x387   : > { %v4376_v59 = vmul.f32 %v4833_v23, %v4154_v52  ;;  %v3844_v10 = vpop.permute.xlu1 %3843  ;;  %v8897_v26 = vpop.eup %4844  ;;  %v4355_v44 = vadd.f32 %v8895_v57, %v4354_v13 }
 0x388   : > { %v4334_v52 = vadd.f32 %v8897_v26, %v4333_v14  ;;  %v8902_v23 = vpop.eup %4846  ;;  %v4017_v62 = vmul.f32 %v8801_v6, %v3844_v10  ;;  %v4156_v29 = vadd.f32 %v4155_v12, %v3999_v40 }
 0x389   : > { %v3764_v48 = vpop.permute.xlu0 %3763  ;;  %v4387_v34 = vadd.f32 %v8040_v5, %v4376_v59  ;;  %v8906_v31 = vpop.eup %4848  ;;  %v4356_v11 = vadd.f32 %v8902_v23, %v4355_v44  ;;  %v4176_v59 = vadd.f32 %v4014_v3, %v4013_v33 }
 0x38a   : > { %v4335_v35 = vadd.f32 %v8906_v31, %v4334_v52  ;;  %v8914_v37 = vpop.eup %4850  ;;  %v4001_v17 = vmul.f32 %v8795_v24, %v3764_v48  ;;  %v4157_v47 = vadd.f32 %v4156_v29, %v4000_v45 }
 0x38b   : > { %v4395_v15 = vand.u32 2147483647, %v4387_v34  ;;  %v3849_v9 = vpop.permute.xlu1 %3848  ;;  %v8918_v18 = vpop.eup %4852  ;;  %v4357_v43 = vadd.f32 %v8914_v37, %v4356_v11  ;;  %v4177_v22 = vadd.f32 %v4176_v59, %v4015_v16 }
 0x38c   : > { %v4336_v38 = vadd.f32 %v8918_v18, %v4335_v35  ;;  %v8928_v49 = vpop.eup %4854  ;;  %v4018_v14 = vmul.f32 %v8811_v54, %v3849_v9  ;;  %v4158_v3 = vadd.f32 %v4157_v47, %v4001_v17 }
 0x38d   : > { %v3769_v58 = vpop.permute.xlu0 %3768  ;;  %4403 = vst [vmem:[%s8246_s29 + $0x5] sm:$0x1] %v4395_v15  ;;  %v8931_v13 = vpop.eup %4856  ;;  %v4358_v60 = vadd.f32 %v8928_v49, %v4357_v43  ;;  %v4178_v28 = vadd.f32 %v4177_v22, %v4016_v53 }
 0x38e   : > { %v4337_v32 = vadd.f32 %v8931_v13, %v4336_v38  ;;  %v4002_v25 = vmul.f32 %v8813_v19, %v3769_v58 }
 0x38f   : > { %v3854_v27 = vpop.permute.xlu1 %3853  ;;  %v4179_v44 = vadd.f32 %v4178_v28, %v4017_v62  ;;  %v4359_v33 = vrot.slane %v4358_v60, 4 }
 0x390   : > { %v4019_v6 = vmul.f32 %v8825_v2, %v3854_v27  ;;  %v4338_v11 = vrot.slane %v4337_v32, 4  ;;  %v4159_v59 = vadd.f32 %v4158_v3, %v4002_v25 }
 0x391   : > { %v3774_v61 = vpop.permute.xlu0 %3773  ;;  %v4180_v24 = vadd.f32 %v4179_v44, %v4018_v14  ;;  %v4360_v27 = vadd.f32 %v4359_v33, %v4358_v60 }
 0x392   : > { %v4003_v52 = vmul.f32 %v8829_v51, %v3774_v61  ;;  %v4339_v61 = vadd.f32 %v4338_v11, %v4337_v32 }
 0x393   : > { %v3859_v0 = vpop.permute.xlu1 %3858  ;;  %v4181_v35 = vadd.f32 %v4180_v24, %v4019_v6 }
 0x394   : > { %v4020_v48 = vmul.f32 %v8839_v50, %v3859_v0  ;;  %v4160_v55 = vadd.f32 %v4159_v59, %v4003_v52 }
 0x395   : > { %v3779_v4 = vpop.permute.xlu0 %3778 }
 0x396   : > { %v4004_v54 = vmul.f32 %v8843_v7, %v3779_v4  ;;  %v4182_v41 = vadd.f32 %v4181_v35, %v4020_v48 }
 0x397   : > { %v3864_v34 = vpop.permute.xlu1 %3863 }
 0x398   : > { %v4021_v19 = vmul.f32 %v8849_v42, %v3864_v34  ;;  %v4161_v16 = vadd.f32 %v4160_v55, %v4004_v54  ;;  %v4361_v34 = vrot.slane %v4360_v27, 2 }
 0x399   : > { %v3784_v20 = vpop.permute.xlu0 %3783 }
 0x39a   : > { %v4005_v2 = vmul.f32 %v8855_v39, %v3784_v20  ;;  %v4183_v40 = vadd.f32 %v4182_v41, %v4021_v19  ;;  %v4340_v20 = vrot.slane %v4339_v61, 2  ;;  %v4362_v62 = vadd.f32 %v4361_v34, %v4360_v27 }
 0x39b   : > { %v3869_v15 = vpop.permute.xlu1 %3868 }
 0x39c   : > { %v4022_v51 = vmul.f32 %v8865_v56, %v3869_v15  ;;  %v4162_v43 = vadd.f32 %v4161_v16, %v4005_v2  ;;  %v4341_v29 = vadd.f32 %v4340_v20, %v4339_v61  ;;  %v4363_v47 = vrot.slane %v4362_v62, 1 }
 0x39d   : > { %v3789_v21 = vpop.permute.xlu0 %3788 }
 0x39e   : > { %v4006_v50 = vmul.f32 %v8869_v1, %v3789_v21  ;;  %v4184_v53 = vadd.f32 %v4183_v40, %v4022_v51  ;;  %v4364_v52 = vadd.f32 %v4363_v47, %v4362_v62 }
 0x39f   : > { %v3874_v63 = vpop.permute.xlu1 %3873 }
 0x3a0   : > { %v4023_v7 = vmul.f32 %v8877_v30, %v3874_v63  ;;  %v4163_v22 = vadd.f32 %v4162_v43, %v4006_v50  ;;  %v4342_v63 = vrot.slane %v4341_v29, 1  ;;  %4858 = vrcp.f32 %v4364_v52 }
 0x3a1   : > { %v3794_v10 = vpop.permute.xlu0 %3793 }
 0x3a2   : > { %v4007_v42 = vmul.f32 %v8879_v8, %v3794_v10  ;;  %v4185_v12 = vadd.f32 %v4184_v53, %v4023_v7  ;;  %v4343_v24 = vadd.f32 %v4342_v63, %v4341_v29 }
 0x3a3   : > { %v3879_v9 = vpop.permute.xlu1 %3878 }
 0x3a4   : > { %v4024_v39 = vmul.f32 %v8888_v46, %v3879_v9  ;;  %v4164_v15 = vadd.f32 %v4163_v22, %v4007_v42  ;;  %4860 = vrcp.f32 %v4343_v24 }
 0x3a5   : > { %v3799_v58 = vpop.permute.xlu0 %3798 }
 0x3a6   : > { %v4008_v56 = vmul.f32 %v8890_v36, %v3799_v58  ;;  %v4186_v21 = vadd.f32 %v4185_v12, %v4024_v39 }
 0x3a7   : > { %v3884_v0 = vpop.permute.xlu1 %3883 }
 0x3a8   : > { %v4025_v1 = vmul.f32 %v8895_v57, %v3884_v0  ;;  %v4165_v17 = vadd.f32 %v4164_v15, %v4008_v56 }
 0x3a9   : > { %v3804_v4 = vpop.permute.xlu0 %3803 }
 0x3aa   : > { %v4009_v30 = vmul.f32 %v8897_v26, %v3804_v4  ;;  %v4187_v28 = vadd.f32 %v4186_v21, %v4025_v1  ;;  %v4859_v55 = vpop.eup %4858 }
 0x3ab   : > { %v3889_v38 = vpop.permute.xlu1 %3888 }
 0x3ac   : > { %v4026_v8 = vmul.f32 %v8902_v23, %v3889_v38  ;;  %v4166_v32 = vadd.f32 %v4165_v17, %v4009_v30 }
 0x3ad   : > { %v3809_v45 = vpop.permute.xlu0 %3808 }
 0x3ae   : > { %v4010_v46 = vmul.f32 %v8906_v31, %v3809_v45  ;;  %v4188_v25 = vadd.f32 %v4187_v28, %v4026_v8  ;;  %v4861_v27 = vpop.eup %4860 }
 0x3af   : > { %v3894_v60 = vpop.permute.xlu1 %3893 }
 0x3b0   : > { %v4027_v36 = vmul.f32 %v8914_v37, %v3894_v60  ;;  %v4167_v26 = vadd.f32 %v4166_v32, %v4010_v46 }
 0x3b1   : > { %v3814_v14 = vpop.permute.xlu0 %3813 }
 0x3b2   : > { %v4011_v57 = vmul.f32 %v8918_v18, %v3814_v14  ;;  %v4189_v6 = vadd.f32 %v4188_v25, %v4027_v36 }
 0x3b3   : > { %v3899_v44 = vpop.permute.xlu1 %3898 }
 0x3b4   : > { %v4028_v23 = vmul.f32 %v8928_v49, %v3899_v44  ;;  %v4168_v3 = vadd.f32 %v4167_v26, %v4011_v57 }
 0x3b5   : > { %v3819_v10 = vpop.permute.xlu0 %3818 }
 0x3b6   : > { %v4012_v31 = vmul.f32 %v8931_v13, %v3819_v10  ;;  %v4190_v33 = vadd.f32 %v4189_v6, %v4028_v23 }
 0x3b8   : > { %v4169_v37 = vadd.f32 %v4168_v3, %v4012_v31  ;;  %v4191_v48 = vrot.slane %v4190_v33, 4 }
 0x3ba   : > { %v4170_v11 = vrot.slane %v4169_v37, 4  ;;  %v4192_v18 = vadd.f32 %v4191_v48, %v4190_v33 }
 0x3bc   : > { %v4171_v59 = vadd.f32 %v4170_v11, %v4169_v37  ;;  %v4193_v54 = vrot.slane %v4192_v18, 2 }
 0x3be   : > { %v4172_v9 = vrot.slane %v4171_v59, 2  ;;  %v4194_v35 = vadd.f32 %v4193_v54, %v4192_v18 }
 0x3c0   : > { %v4173_v49 = vadd.f32 %v4172_v9, %v4171_v59  ;;  %v4195_v19 = vrot.slane %v4194_v35, 1 }
 0x3c2   : > { %v4174_v58 = vrot.slane %v4173_v49, 1  ;;  %v4196_v13 = vadd.f32 %v4195_v19, %v4194_v35 }
 0x3c4   : > { %v4175_v2 = vadd.f32 %v4174_v58, %v4173_v49  ;;  %v4380_v41 = vmul.f32 %v4859_v55, %v4196_v13 }
 0x3c6   : > { %v4378_v51 = vmul.f32 %v4861_v27, %v4175_v2  ;;  %v4389_v61 = vadd.f32 %v8040_v5, %v4380_v41 }
 0x3c8   : > { %v4388_v16 = vadd.f32 %v8040_v5, %v4378_v51  ;;  %v4397_v50 = vand.u32 2147483647, %v4389_v61 }
 0x3ca   : > { %v4396_v0 = vand.u32 2147483647, %v4388_v16  ;;  %4405 = vst [vmem:[%s8246_s29 + $0x7] sm:$0x1] %v4397_v50 }
 0x3cc   : > { %4404 = vst [vmem:[%s8246_s29 + $0x6] sm:$0x1] %v4396_v0 }
 0x3cd   : > { %5146 = shalt.err (!%p5143_p2)
}
 0x3ce   : > { %s5147_s17 = scalar_lea.hbm %s8965_s7, 128  ;;  %s5151_s24 = scalar_lea.hbm %s9017_s3, 256 }
 0x3cf   : > { %p5148_p3 = scmp.ne.s32.totalorder %s8965_s7, %s5147_s17  ;;  %p5152_p8 = scmp.lt.u32.totalorder %s8965_s7, %s9017_s3 }
 0x3d0   : > { %p5153_p11 = scmp.lt.u32.totalorder %s5151_s24, %s5147_s17  ;;  %p5155_p10 = scmp.lt.u32.totalorder %s5147_s17, %s8965_s7 }
 0x3d1   : > { %p5149_p4 = pnand %p5148_p3, %p5264_p5 }
 0x3d2   : > { %p5154_p9 = por %p5153_p11, %p5152_p8 }
 0x3d3   : > { %p5150_p7 = pneg %p5149_p4 }
 0x3d4   : > { %p5156_p12 = por %p5155_p10, %p5154_p9 }
 0x3d6   : > { %p5157_p13 = pnand %p5156_p12, %p5150_p7 }
 0x3d8   : > { %5160 = shalt.err (!%p5157_p13)
}
 0x3d9   : > { %s5204_s27 = smov 16   ;;  %s5205_s28 = smov 1  }
 0x3da   : > { %4539 = dma.vmem_to_hbm [thread:$0]  (%p5264_p5), %s8967_s4, 128, %s8965_s7, %s8973_s16, %s5204_s27, %s5204_s27, %s5205_s28  }
 0x3db PF: > { %p4551_p0 = scmp.ge.s32.totalorder %s5199_s15, 2  ;;  %s4435_s29 = sand.u32 1, %s5187_s12  }
 0x3dc   : > { %s4436_s30 = scalar_lea.sflag [#allocation3], %s4435_s29 }
 0x3dd   : > { %p4546_p1 = pnand %p4551_p0, %p5268_p6 }
 0x3df   : > { %5182 = dma.done.wait (!%p4546_p1), %s4436_s30, 128  }
 0x3e0   : > { %5184 = vsyncadd (!%p4546_p1), %s4436_s30, 4294967168  ;;  %p14_p2 = scmp.ge.s32.totalorder %s5251_s18, 4   ;;  %s9889_s12 = smov %s5191_s13 }
 0x3e1   : > { %s9890_s13 = smov %s5195_s14  ;;  %s9891_s14 = smov %s5262_s21 }
 0x3e2   : > { %s9892_s15 = smov %s5251_s18  ;;  %16 = sbr.rel (!%p14_p2) target bundleno = 4 (0x4), region = 75 }
 0x3e9   :  { %4441 = vsyncpa [#allocation3], 1 }
 0x3ea   :  { %4443 = vsyncpa [#allocation3 + $0x1], 1 }
 0x3eb   :  { %4444 = vsyncpa [#allocation4], 1 }
 0x3ec   :  { %4446 = vsyncpa [#allocation4 + $0x1], 1 }

</bundles_post_ra>
